<compile_context>
chip_gen: v7x
topology: tpu7x:2x2x1
jax: 0.10.0
libtpu: 0.0.40
codegen_flags: <defaults>
</compile_context>

<pallas_src>
import math

import jax
import jax.numpy as jnp
from jax import lax
from jax.experimental import pallas as pl
from jax.experimental.pallas import tpu as pltpu

# ---- model hyper-parameters (small, consistent with the module) -------------
D_MODEL = 32
N_HEAD = 4
D_HID = 64
N_LAYERS = 2
SEQ = 8          # text length == image-token length (required by DyIntra broadcast)
BATCH = 2
EPS = 1e-5       # nn.LayerNorm default eps
NEG_INF = -1e30

# ---- vector-pack row indices (one padded (N_VEC_ROWS, 128) slab per layer) ---
(_V_N1G, _V_N1B, _V_N2G, _V_N2B, _V_N3G, _V_N3B, _V_GNG, _V_GNB) = range(8)
(_V_SAINB, _V_IMGB, _V_TXTB, _V_SAOUTB, _V_CAOUTB, _V_FF1B, _V_FF2B,
 _V_PAD) = range(8, 16)
N_VEC_ROWS = 16
VEC_WIDTH = 128


# ---- in-kernel math helpers --------------------------------------------------
def _layernorm(x, g, b):
    mu = jnp.mean(x, axis=-1, keepdims=True)
    var = jnp.mean((x - mu) ** 2, axis=-1, keepdims=True)
    return (x - mu) * lax.rsqrt(var + EPS) * g + b


def _softmax(x):
    m = jnp.max(x, axis=-1, keepdims=True)
    e = jnp.exp(x - m)
    return e * pl.reciprocal(jnp.sum(e, axis=-1, keepdims=True), approx=True)


def _gelu(x):
    # exact (erf-based) GELU, matching torch.nn.GELU default
    return 0.5 * x * (1.0 + lax.erf(x * (1.0 / math.sqrt(2.0))))


def _attention(q, k, v, out_w, out_b, mask):
    """Multi-head attention core on pre-projected q/k/v.

    q: (Lq, D), k/v: (Lk, D), out_w: (D, D) pre-transposed, out_b: (1, D).
    Heads are unrolled statically; the output projection is accumulated per head
    so no lane-axis concat is ever materialized.
    """
    lq, d = q.shape
    dh = d // N_HEAD
    q = q * (1.0 / math.sqrt(dh))
    acc = jnp.zeros((lq, d), jnp.float32)
    for h in range(N_HEAD):
        sl = slice(h * dh, (h + 1) * dh)
        # scores = q_h @ k_h.T  (contract last dims, no explicit transpose)
        s = lax.dot_general(q[:, sl], k[:, sl], (((1,), (1,)), ((), ())),
                            preferred_element_type=jnp.float32)
        if mask is not None:
            s = s + mask
        p = _softmax(s)
        ctx = jnp.dot(p, v[:, sl], preferred_element_type=jnp.float32)
        acc = acc + jnp.dot(ctx, out_w[sl, :], preferred_element_type=jnp.float32)
    return acc + out_b


# ---- the fused whole-decoder kernel (both layers, one batch element) ---------
def decoder_kernel(tgt_ref, img_ref, vec_ref, w3_ref, w2_ref, sq_ref, ff2_ref,
                   out_ref):
    L, D = tgt_ref.shape
    x = tgt_ref[...]            # (L, D)
    img = img_ref[...]          # (L, D)

    # causal additive mask, built in-kernel (== generate_square_subsequent_mask)
    row_i = lax.broadcasted_iota(jnp.int32, (L, L), 0)
    col_i = lax.broadcasted_iota(jnp.int32, (L, L), 1)
    causal = jnp.where(col_i > row_i, NEG_INF, 0.0).astype(jnp.float32)

    for layer in range(N_LAYERS):
        V = vec_ref[layer]                                   # (16, 128)

        def vrow(i, width):
            return V[i:i + 1, :width]                        # (1, width)

        n1_g, n1_b = vrow(_V_N1G, D), vrow(_V_N1B, D)
        n2_g, n2_b = vrow(_V_N2G, D), vrow(_V_N2B, D)
        n3_g, n3_b = vrow(_V_N3G, D), vrow(_V_N3B, D)
        gn_g, gn_b = vrow(_V_GNG, D), vrow(_V_GNB, D)
        sa_in_b = vrow(_V_SAINB, 3 * D)      # [q_b | k_b | v_b]       (self-attn)
        img_b = vrow(_V_IMGB, 3 * D)         # [ca_k_b | ca_v_b | dy_b]
        txt_b = vrow(_V_TXTB, 2 * D)         # [ca_q_b | gate_b]
        sa_out_b = vrow(_V_SAOUTB, D)
        ca_out_b = vrow(_V_CAOUTB, D)
        ff1_b = vrow(_V_FF1B, D_HID)
        ff2_b = vrow(_V_FF2B, D)

        sa_in_w = w3_ref[layer, 0]                           # (D, 3D)
        img_w = w3_ref[layer, 1]                             # (D, 3D) [ca_kv | dy]
        txt_w = w2_ref[layer, 0][:, :2 * D]                  # (D, 2D) [ca_q | gate_txt]
        ff1_w = w2_ref[layer, 1][:, :D_HID]                  # (D, H)
        sa_out_w = sq_ref[layer, 0]                          # (D, D)
        ca_out_w = sq_ref[layer, 1]
        gate_w_img = sq_ref[layer, 2]
        ff2_w = ff2_ref[layer]                               # (H, D)

        # --- causal self-attention block (dropout == identity, eval mode) ---
        tn = _layernorm(x, n1_g, n1_b)
        qkv = jnp.dot(tn, sa_in_w, preferred_element_type=jnp.float32) + sa_in_b
        x = x + _attention(qkv[:, :D], qkv[:, D:2 * D], qkv[:, 2 * D:],
                           sa_out_w, sa_out_b, causal)

        # --- cross-attention + DyIntra modulation + DynamicGating ---
        tn2 = _layernorm(x, n2_g, n2_b)
        # fused text-side projection: cross-attn Q | gate_fc text half
        txt = jnp.dot(tn2, txt_w, preferred_element_type=jnp.float32) + txt_b
        # fused image-side projection: cross-attn K | V | DyIntra modulation
        imgp = jnp.dot(img, img_w, preferred_element_type=jnp.float32) + img_b
        ca = _attention(txt[:, :D], imgp[:, :D], imgp[:, D:2 * D],
                        ca_out_w, ca_out_b, None)
        mod = jax.nn.sigmoid(imgp[:, 2 * D:])
        ca_mod = ca * (1.0 + mod)
        # DynamicGating without the lane concat: gate_fc split into two halves
        g = jax.nn.sigmoid(
            txt[:, D:]
            + jnp.dot(ca_mod, gate_w_img, preferred_element_type=jnp.float32))
        fused = _layernorm(g * tn2 + (1.0 - g) * ca_mod, gn_g, gn_b)
        x = x + fused

        # --- feed-forward block ---
        tn3 = _layernorm(x, n3_g, n3_b)
        h1 = _gelu(jnp.dot(tn3, ff1_w, preferred_element_type=jnp.float32) + ff1_b)
        x = x + jnp.dot(h1, ff2_w, preferred_element_type=jnp.float32) + ff2_b

    out_ref[...] = x


# ---- wrapper ------------------------------------------------------------------
def multimodal_decoder_forward(tgt, image_memory, packed_params):
    """Full MultimodalDecoder forward (eval mode; causal tgt_mask; no key padding)."""
    B, L, D = tgt.shape
    assert image_memory.shape == (B, L, D), (
        "DyIntra modulation requires image_memory length == tgt length")
    vec, w3, w2, sq, ff2 = packed_params

    act_spec = pl.BlockSpec((None, L, D), lambda b: (b, 0, 0))

    def full_spec(a):
        nd = a.ndim
        return pl.BlockSpec(a.shape, lambda b, _nd=nd: (0,) * _nd)

    return pl.pallas_call(
        decoder_kernel,
        grid=(B,),
        in_specs=[act_spec, act_spec] + [full_spec(w)
                                         for w in (vec, w3, w2, sq, ff2)],
        out_specs=pl.BlockSpec((None, L, D), lambda b: (b, 0, 0)),
        out_shape=jax.ShapeDtypeStruct((B, L, D), jnp.float32),
        compiler_params=pltpu.CompilerParams(dimension_semantics=("parallel",)),
    )(tgt, image_memory, vec, w3, w2, sq, ff2)


# ---- deterministic parameter construction & packing ---------------------------
def init_layer_params(key, d_model, d_hid):
    ks = jax.random.split(key, 16)
    s = 0.05

    def lin(k, out_f, in_f):
        # stored PyTorch-style (out, in); pre-transposed to (in, out) for `x @ W`
        return (jax.random.normal(k, (out_f, in_f), jnp.float32) * s).T

    def bias(k, n):
        return jax.random.normal(k, (n,), jnp.float32) * s

    p = {}
    for i, name in enumerate(["n1", "n2", "n3", "gn"]):
        p[f"{name}_g"] = 1.0 + jax.random.normal(ks[i], (d_model,), jnp.float32) * 0.01
        p[f"{name}_b"] = jax.random.normal(ks[i + 4], (d_model,), jnp.float32) * 0.01
    p["sa_in_w"] = lin(ks[8], 3 * d_model, d_model)        # (D, 3D)
    p["sa_in_b"] = bias(ks[8], 3 * d_model)
    p["sa_out_w"] = lin(ks[9], d_model, d_model)           # (D, D)
    p["sa_out_b"] = bias(ks[9], d_model)
    p["ca_in_w"] = lin(ks[10], 3 * d_model, d_model)       # (D, 3D): [q | k | v]
    p["ca_in_b"] = bias(ks[10], 3 * d_model)
    p["ca_out_w"] = lin(ks[11], d_model, d_model)
    p["ca_out_b"] = bias(ks[11], d_model)
    p["dy_w"] = lin(ks[12], d_model, d_model)
    p["dy_b"] = bias(ks[12], d_model)
    p["gate_w"] = lin(ks[13], d_model, 2 * d_model)        # (2D, D): [text; image]
    p["gate_b"] = bias(ks[13], d_model)
    p["ff1_w"] = lin(ks[14], d_hid, d_model)               # (D, H)
    p["ff1_b"] = bias(ks[14], d_hid)
    p["ff2_w"] = lin(ks[15], d_model, d_hid)               # (H, D)
    p["ff2_b"] = bias(ks[15], d_model)
    return p


def pack_params(layer_params, d_model, d_hid):
    """Pack per-layer params into 5 stacked buffers (layer axis leading).

    Fusions done here (so the kernel does fewer, wider matmuls):
      * cross-attn Q weight + gate_fc text half  -> txt_w (D, 2D)
      * cross-attn KV weight + DyIntra gate      -> img_w (D, 3D)
    """
    assert 3 * d_model <= VEC_WIDTH and d_hid <= VEC_WIDTH
    D = d_model
    W2 = max(2 * D, d_hid)

    def pad_row(v):
        return jnp.pad(v, (0, VEC_WIDTH - v.shape[0]))

    def pad_cols(w, width):
        return jnp.pad(w, ((0, 0), (0, width - w.shape[1])))

    vec_l, w3_l, w2_l, sq_l, ff2_l = [], [], [], [], []
    for p in layer_params:
        ca_in_w, ca_in_b = p["ca_in_w"], p["ca_in_b"]
        gate_w = p["gate_w"]                                             # (2D, D)
        txt_w = jnp.concatenate([ca_in_w[:, :D], gate_w[:D]], axis=1)    # (D, 2D)
        txt_b = jnp.concatenate([ca_in_b[:D], p["gate_b"]])              # (2D,)
        img_w = jnp.concatenate([ca_in_w[:, D:], p["dy_w"]], axis=1)     # (D, 3D)
        img_b = jnp.concatenate([ca_in_b[D:], p["dy_b"]])                # (3D,)

        rows = [None] * N_VEC_ROWS
        rows[_V_N1G], rows[_V_N1B] = p["n1_g"], p["n1_b"]
        rows[_V_N2G], rows[_V_N2B] = p["n2_g"], p["n2_b"]
        rows[_V_N3G], rows[_V_N3B] = p["n3_g"], p["n3_b"]
        rows[_V_GNG], rows[_V_GNB] = p["gn_g"], p["gn_b"]
        rows[_V_SAINB] = p["sa_in_b"]
        rows[_V_IMGB] = img_b
        rows[_V_TXTB] = txt_b
        rows[_V_SAOUTB] = p["sa_out_b"]
        rows[_V_CAOUTB] = p["ca_out_b"]
        rows[_V_FF1B] = p["ff1_b"]
        rows[_V_FF2B] = p["ff2_b"]
        rows[_V_PAD] = jnp.zeros((VEC_WIDTH,), jnp.float32)
        vec_l.append(jnp.stack([pad_row(r) for r in rows]))              # (16, 128)

        w3_l.append(jnp.stack([p["sa_in_w"], img_w]))                    # (2, D, 3D)
        w2_l.append(jnp.stack([pad_cols(txt_w, W2),
                               pad_cols(p["ff1_w"], W2)]))               # (2, D, W2)
        sq_l.append(jnp.stack([p["sa_out_w"], p["ca_out_w"],
                               gate_w[D:]]))                             # (3, D, D)
        ff2_l.append(p["ff2_w"])                                         # (H, D)
    return (jnp.stack(vec_l), jnp.stack(w3_l), jnp.stack(w2_l),
            jnp.stack(sq_l), jnp.stack(ff2_l))


if __name__ == "__main__":
    root = jax.random.PRNGKey(0)
    k_tgt, k_img, k_params = jax.random.split(root, 3)

    tgt = jax.random.normal(k_tgt, (BATCH, SEQ, D_MODEL), jnp.float32)
    image_memory = jax.random.normal(k_img, (BATCH, SEQ, D_MODEL), jnp.float32)

    layer_keys = jax.random.split(k_params, N_LAYERS)
    layer_params = [init_layer_params(k, D_MODEL, D_HID) for k in layer_keys]
    packed = pack_params(layer_params, D_MODEL, D_HID)

    # TODO(synk): dropout layers are identity (eval mode); tgt_key_padding_mask=None;
    #             the causal tgt_mask (generate_square_subsequent_mask) is built in-kernel.
    out = multimodal_decoder_forward(tgt, image_memory, packed)
    out = jax.block_until_ready(out)

    assert out.shape == (BATCH, SEQ, D_MODEL)
    assert bool(jnp.all(jnp.isfinite(out)))
    print("KERNEL_OK")
</pallas_src>

<mosaic_0001>
module attributes {stable_mosaic.version = 11 : i64} {
  func.func @decoder_kernel(%arg0: i32, %arg1: memref<1x8x32xf32, #tpu.memory_space<vmem>>, %arg2: memref<1x8x32xf32, #tpu.memory_space<vmem>>, %arg3: memref<2x16x128xf32, #tpu.memory_space<vmem>>, %arg4: memref<2x2x32x96xf32, #tpu.memory_space<vmem>>, %arg5: memref<2x2x32x64xf32, #tpu.memory_space<vmem>>, %arg6: memref<2x3x32x32xf32, #tpu.memory_space<vmem>>, %arg7: memref<2x64x32xf32, #tpu.memory_space<vmem>>, %arg8: memref<1x8x32xf32, #tpu.memory_space<vmem>>) attributes {dimension_semantics = [#tpu.dimension_semantics<parallel>], iteration_bounds = array<i64: 2>, scalar_prefetch = 0 : i64, scratch_operands = 0 : i64, tpu.core_type = #tpu.core_type<tc>, window_params = [{transform_indices = @transform_0, window_bounds = array<i64: 1, 8, 32>}, {transform_indices = @transform_1, window_bounds = array<i64: 1, 8, 32>}, {pipeline_mode = #tpu.pipeline_mode<synchronous>, transform_indices = @transform_2, window_bounds = array<i64: 2, 16, 128>}, {pipeline_mode = #tpu.pipeline_mode<synchronous>, transform_indices = @transform_3, window_bounds = array<i64: 2, 2, 32, 96>}, {pipeline_mode = #tpu.pipeline_mode<synchronous>, transform_indices = @transform_4, window_bounds = array<i64: 2, 2, 32, 64>}, {pipeline_mode = #tpu.pipeline_mode<synchronous>, transform_indices = @transform_5, window_bounds = array<i64: 2, 3, 32, 32>}, {pipeline_mode = #tpu.pipeline_mode<synchronous>, transform_indices = @transform_6, window_bounds = array<i64: 2, 64, 32>}, {transform_indices = @transform_7, window_bounds = array<i64: 1, 8, 32>}]} {
    %c0 = arith.constant 0 : index
    %c0_0 = arith.constant 0 : index
    %c0_1 = arith.constant 0 : index
    %0 = vector.load %arg1[%c0, %c0_0, %c0_1] : memref<1x8x32xf32, #tpu.memory_space<vmem>>, vector<1x8x32xf32>
    %1 = vector.shape_cast %0 : vector<1x8x32xf32> to vector<8x32xf32>
    %c0_2 = arith.constant 0 : index
    %c0_3 = arith.constant 0 : index
    %c0_4 = arith.constant 0 : index
    %2 = vector.load %arg2[%c0_2, %c0_3, %c0_4] : memref<1x8x32xf32, #tpu.memory_space<vmem>>, vector<1x8x32xf32>
    %3 = vector.shape_cast %2 : vector<1x8x32xf32> to vector<8x32xf32>
    %4 = tpu.iota {dimensions = array<i32: 0>} : vector<8x8xi32>
    %5 = tpu.iota {dimensions = array<i32: 1>} : vector<8x8xi32>
    %6 = arith.cmpi sgt, %5, %4 : vector<8x8xi32>
    %cst = arith.constant -1.000000e+30 : f32
    %cst_5 = arith.constant 0.000000e+00 : f32
    %7 = vector.broadcast %cst : f32 to vector<8x8xf32>
    %8 = vector.broadcast %cst_5 : f32 to vector<8x8xf32>
    %9 = arith.select %6, %7, %8 : vector<8x8xi1>, vector<8x8xf32>
    %c0_6 = arith.constant 0 : index
    %c0_7 = arith.constant 0 : index
    %c0_8 = arith.constant 0 : index
    %10 = vector.load %arg3[%c0_6, %c0_7, %c0_8] : memref<2x16x128xf32, #tpu.memory_space<vmem>>, vector<1x16x128xf32>
    %11 = vector.shape_cast %10 : vector<1x16x128xf32> to vector<16x128xf32>
    %12 = vector.extract_strided_slice %11 {offsets = [0, 0], sizes = [1, 32], strides = [1, 1]} : vector<16x128xf32> to vector<1x32xf32>
    %13 = vector.extract_strided_slice %11 {offsets = [1, 0], sizes = [1, 32], strides = [1, 1]} : vector<16x128xf32> to vector<1x32xf32>
    %14 = vector.extract_strided_slice %11 {offsets = [2, 0], sizes = [1, 32], strides = [1, 1]} : vector<16x128xf32> to vector<1x32xf32>
    %15 = vector.extract_strided_slice %11 {offsets = [3, 0], sizes = [1, 32], strides = [1, 1]} : vector<16x128xf32> to vector<1x32xf32>
    %16 = vector.extract_strided_slice %11 {offsets = [4, 0], sizes = [1, 32], strides = [1, 1]} : vector<16x128xf32> to vector<1x32xf32>
    %17 = vector.extract_strided_slice %11 {offsets = [5, 0], sizes = [1, 32], strides = [1, 1]} : vector<16x128xf32> to vector<1x32xf32>
    %18 = vector.extract_strided_slice %11 {offsets = [6, 0], sizes = [1, 32], strides = [1, 1]} : vector<16x128xf32> to vector<1x32xf32>
    %19 = vector.extract_strided_slice %11 {offsets = [7, 0], sizes = [1, 32], strides = [1, 1]} : vector<16x128xf32> to vector<1x32xf32>
    %20 = vector.extract_strided_slice %11 {offsets = [8, 0], sizes = [1, 96], strides = [1, 1]} : vector<16x128xf32> to vector<1x96xf32>
    %21 = vector.extract_strided_slice %11 {offsets = [9, 0], sizes = [1, 96], strides = [1, 1]} : vector<16x128xf32> to vector<1x96xf32>
    %22 = vector.extract_strided_slice %11 {offsets = [10, 0], sizes = [1, 64], strides = [1, 1]} : vector<16x128xf32> to vector<1x64xf32>
    %23 = vector.extract_strided_slice %11 {offsets = [11, 0], sizes = [1, 32], strides = [1, 1]} : vector<16x128xf32> to vector<1x32xf32>
    %24 = vector.extract_strided_slice %11 {offsets = [12, 0], sizes = [1, 32], strides = [1, 1]} : vector<16x128xf32> to vector<1x32xf32>
    %25 = vector.extract_strided_slice %11 {offsets = [13, 0], sizes = [1, 64], strides = [1, 1]} : vector<16x128xf32> to vector<1x64xf32>
    %26 = vector.extract_strided_slice %11 {offsets = [14, 0], sizes = [1, 32], strides = [1, 1]} : vector<16x128xf32> to vector<1x32xf32>
    %c0_9 = arith.constant 0 : index
    %c0_10 = arith.constant 0 : index
    %c0_11 = arith.constant 0 : index
    %c0_12 = arith.constant 0 : index
    %27 = vector.load %arg4[%c0_9, %c0_10, %c0_11, %c0_12] : memref<2x2x32x96xf32, #tpu.memory_space<vmem>>, vector<1x1x32x96xf32>
    %28 = vector.shape_cast %27 : vector<1x1x32x96xf32> to vector<32x96xf32>
    %c0_13 = arith.constant 0 : index
    %c1 = arith.constant 1 : index
    %c0_14 = arith.constant 0 : index
    %c0_15 = arith.constant 0 : index
    %29 = vector.load %arg4[%c0_13, %c1, %c0_14, %c0_15] : memref<2x2x32x96xf32, #tpu.memory_space<vmem>>, vector<1x1x32x96xf32>
    %30 = vector.shape_cast %29 : vector<1x1x32x96xf32> to vector<32x96xf32>
    %c0_16 = arith.constant 0 : index
    %c0_17 = arith.constant 0 : index
    %c0_18 = arith.constant 0 : index
    %c0_19 = arith.constant 0 : index
    %31 = vector.load %arg5[%c0_16, %c0_17, %c0_18, %c0_19] : memref<2x2x32x64xf32, #tpu.memory_space<vmem>>, vector<1x1x32x64xf32>
    %32 = vector.shape_cast %31 : vector<1x1x32x64xf32> to vector<32x64xf32>
    %c0_20 = arith.constant 0 : index
    %c1_21 = arith.constant 1 : index
    %c0_22 = arith.constant 0 : index
    %c0_23 = arith.constant 0 : index
    %33 = vector.load %arg5[%c0_20, %c1_21, %c0_22, %c0_23] : memref<2x2x32x64xf32, #tpu.memory_space<vmem>>, vector<1x1x32x64xf32>
    %34 = vector.shape_cast %33 : vector<1x1x32x64xf32> to vector<32x64xf32>
    %c0_24 = arith.constant 0 : index
    %c0_25 = arith.constant 0 : index
    %c0_26 = arith.constant 0 : index
    %c0_27 = arith.constant 0 : index
    %35 = vector.load %arg6[%c0_24, %c0_25, %c0_26, %c0_27] : memref<2x3x32x32xf32, #tpu.memory_space<vmem>>, vector<1x1x32x32xf32>
    %36 = vector.shape_cast %35 : vector<1x1x32x32xf32> to vector<32x32xf32>
    %c0_28 = arith.constant 0 : index
    %c1_29 = arith.constant 1 : index
    %c0_30 = arith.constant 0 : index
    %c0_31 = arith.constant 0 : index
    %37 = vector.load %arg6[%c0_28, %c1_29, %c0_30, %c0_31] : memref<2x3x32x32xf32, #tpu.memory_space<vmem>>, vector<1x1x32x32xf32>
    %38 = vector.shape_cast %37 : vector<1x1x32x32xf32> to vector<32x32xf32>
    %c0_32 = arith.constant 0 : index
    %c2 = arith.constant 2 : index
    %c0_33 = arith.constant 0 : index
    %c0_34 = arith.constant 0 : index
    %39 = vector.load %arg6[%c0_32, %c2, %c0_33, %c0_34] : memref<2x3x32x32xf32, #tpu.memory_space<vmem>>, vector<1x1x32x32xf32>
    %40 = vector.shape_cast %39 : vector<1x1x32x32xf32> to vector<32x32xf32>
    %c0_35 = arith.constant 0 : index
    %c0_36 = arith.constant 0 : index
    %c0_37 = arith.constant 0 : index
    %41 = vector.load %arg7[%c0_35, %c0_36, %c0_37] : memref<2x64x32xf32, #tpu.memory_space<vmem>>, vector<1x64x32xf32>
    %42 = vector.shape_cast %41 : vector<1x64x32xf32> to vector<64x32xf32>
    %cst_38 = arith.constant dense<0.000000e+00> : vector<8xf32>
    %43 = vector.multi_reduction <add>, %1, %cst_38 [1] : vector<8x32xf32> to vector<8xf32>
    %44 = vector.shape_cast %43 : vector<8xf32> to vector<8x1xf32>
    %cst_39 = arith.constant 3.200000e+01 : f32
    %45 = vector.broadcast %cst_39 : f32 to vector<8x1xf32>
    %46 = arith.divf %44, %45 : vector<8x1xf32>
    %47 = vector.broadcast %46 : vector<8x1xf32> to vector<8x32xf32>
    %48 = arith.subf %1, %47 : vector<8x32xf32>
    %49 = arith.mulf %48, %48 : vector<8x32xf32>
    %cst_40 = arith.constant dense<0.000000e+00> : vector<8xf32>
    %50 = vector.multi_reduction <add>, %49, %cst_40 [1] : vector<8x32xf32> to vector<8xf32>
    %51 = vector.shape_cast %50 : vector<8xf32> to vector<8x1xf32>
    %cst_41 = arith.constant 3.200000e+01 : f32
    %52 = vector.broadcast %cst_41 : f32 to vector<8x1xf32>
    %53 = arith.divf %51, %52 : vector<8x1xf32>
    %54 = vector.broadcast %46 : vector<8x1xf32> to vector<8x32xf32>
    %55 = arith.subf %1, %54 : vector<8x32xf32>
    %cst_42 = arith.constant 9.99999974E-6 : f32
    %56 = vector.broadcast %cst_42 : f32 to vector<8x1xf32>
    %57 = arith.addf %53, %56 : vector<8x1xf32>
    %58 = math.rsqrt %57 : vector<8x1xf32>
    %59 = vector.broadcast %58 : vector<8x1xf32> to vector<8x32xf32>
    %60 = arith.mulf %55, %59 : vector<8x32xf32>
    %61 = vector.broadcast %12 : vector<1x32xf32> to vector<8x32xf32>
    %62 = arith.mulf %60, %61 : vector<8x32xf32>
    %63 = vector.broadcast %13 : vector<1x32xf32> to vector<8x32xf32>
    %64 = arith.addf %62, %63 : vector<8x32xf32>
    %cst_43 = arith.constant dense<0.000000e+00> : vector<8x96xf32>
    %65 = tpu.matmul %64, %28, %cst_43 {dimension_numbers = #tpu.dot_dimension_numbers<[1], [0], [0], [1], [0, 0, 1, 1], [], []>} : vector<8x32xf32>, vector<32x96xf32>, vector<8x96xf32> -> vector<8x96xf32>
    %66 = vector.broadcast %20 : vector<1x96xf32> to vector<8x96xf32>
    %67 = arith.addf %65, %66 : vector<8x96xf32>
    %68 = vector.extract_strided_slice %67 {offsets = [0, 0], sizes = [8, 32], strides = [1, 1]} : vector<8x96xf32> to vector<8x32xf32>
    %69 = vector.extract_strided_slice %67 {offsets = [0, 32], sizes = [8, 32], strides = [1, 1]} : vector<8x96xf32> to vector<8x32xf32>
    %70 = vector.extract_strided_slice %67 {offsets = [0, 64], sizes = [8, 32], strides = [1, 1]} : vector<8x96xf32> to vector<8x32xf32>
    %cst_44 = arith.constant 0.353553385 : f32
    %71 = vector.broadcast %cst_44 : f32 to vector<8x32xf32>
    %72 = arith.mulf %68, %71 : vector<8x32xf32>
    %cst_45 = arith.constant 0.000000e+00 : f32
    %73 = vector.broadcast %cst_45 : f32 to vector<8x32xf32>
    %74 = vector.extract_strided_slice %72 {offsets = [0, 0], sizes = [8, 8], strides = [1, 1]} : vector<8x32xf32> to vector<8x8xf32>
    %75 = vector.extract_strided_slice %69 {offsets = [0, 0], sizes = [8, 8], strides = [1, 1]} : vector<8x32xf32> to vector<8x8xf32>
    %cst_46 = arith.constant dense<0.000000e+00> : vector<8x8xf32>
    %76 = tpu.matmul %74, %75, %cst_46 {dimension_numbers = #tpu.dot_dimension_numbers<[1], [1], [0], [0], [0, 0, 1, 0], [], []>} : vector<8x8xf32>, vector<8x8xf32>, vector<8x8xf32> -> vector<8x8xf32>
    %77 = arith.addf %76, %9 : vector<8x8xf32>
    %cst_47 = arith.constant dense<0xFF800000> : vector<8xf32>
    %78 = vector.multi_reduction <maximumf>, %77, %cst_47 [1] : vector<8x8xf32> to vector<8xf32>
    %79 = vector.shape_cast %78 : vector<8xf32> to vector<8x1xf32>
    %80 = vector.broadcast %79 : vector<8x1xf32> to vector<8x8xf32>
    %81 = arith.subf %77, %80 : vector<8x8xf32>
    %82 = math.exp %81 : vector<8x8xf32>
    %cst_48 = arith.constant dense<0.000000e+00> : vector<8xf32>
    %83 = vector.multi_reduction <add>, %82, %cst_48 [1] : vector<8x8xf32> to vector<8xf32>
    %84 = vector.shape_cast %83 : vector<8xf32> to vector<8x1xf32>
    %85 = tpu.reciprocal %84 {approx = true} : vector<8x1xf32> -> vector<8x1xf32>
    %86 = vector.broadcast %85 : vector<8x1xf32> to vector<8x8xf32>
    %87 = arith.mulf %82, %86 : vector<8x8xf32>
    %88 = vector.extract_strided_slice %70 {offsets = [0, 0], sizes = [8, 8], strides = [1, 1]} : vector<8x32xf32> to vector<8x8xf32>
    %cst_49 = arith.constant dense<0.000000e+00> : vector<8x8xf32>
    %89 = tpu.matmul %87, %88, %cst_49 {dimension_numbers = #tpu.dot_dimension_numbers<[1], [0], [0], [1], [0, 0, 1, 1], [], []>} : vector<8x8xf32>, vector<8x8xf32>, vector<8x8xf32> -> vector<8x8xf32>
    %90 = vector.extract_strided_slice %36 {offsets = [0, 0], sizes = [8, 32], strides = [1, 1]} : vector<32x32xf32> to vector<8x32xf32>
    %cst_50 = arith.constant dense<0.000000e+00> : vector<8x32xf32>
    %91 = tpu.matmul %89, %90, %cst_50 {dimension_numbers = #tpu.dot_dimension_numbers<[1], [0], [0], [1], [0, 0, 1, 1], [], []>} : vector<8x8xf32>, vector<8x32xf32>, vector<8x32xf32> -> vector<8x32xf32>
    %92 = arith.addf %73, %91 : vector<8x32xf32>
    %93 = vector.extract_strided_slice %72 {offsets = [0, 8], sizes = [8, 8], strides = [1, 1]} : vector<8x32xf32> to vector<8x8xf32>
    %94 = vector.extract_strided_slice %69 {offsets = [0, 8], sizes = [8, 8], strides = [1, 1]} : vector<8x32xf32> to vector<8x8xf32>
    %cst_51 = arith.constant dense<0.000000e+00> : vector<8x8xf32>
    %95 = tpu.matmul %93, %94, %cst_51 {dimension_numbers = #tpu.dot_dimension_numbers<[1], [1], [0], [0], [0, 0, 1, 0], [], []>} : vector<8x8xf32>, vector<8x8xf32>, vector<8x8xf32> -> vector<8x8xf32>
    %96 = arith.addf %95, %9 : vector<8x8xf32>
    %cst_52 = arith.constant dense<0xFF800000> : vector<8xf32>
    %97 = vector.multi_reduction <maximumf>, %96, %cst_52 [1] : vector<8x8xf32> to vector<8xf32>
    %98 = vector.shape_cast %97 : vector<8xf32> to vector<8x1xf32>
    %99 = vector.broadcast %98 : vector<8x1xf32> to vector<8x8xf32>
    %100 = arith.subf %96, %99 : vector<8x8xf32>
    %101 = math.exp %100 : vector<8x8xf32>
    %cst_53 = arith.constant dense<0.000000e+00> : vector<8xf32>
    %102 = vector.multi_reduction <add>, %101, %cst_53 [1] : vector<8x8xf32> to vector<8xf32>
    %103 = vector.shape_cast %102 : vector<8xf32> to vector<8x1xf32>
    %104 = tpu.reciprocal %103 {approx = true} : vector<8x1xf32> -> vector<8x1xf32>
    %105 = vector.broadcast %104 : vector<8x1xf32> to vector<8x8xf32>
    %106 = arith.mulf %101, %105 : vector<8x8xf32>
    %107 = vector.extract_strided_slice %70 {offsets = [0, 8], sizes = [8, 8], strides = [1, 1]} : vector<8x32xf32> to vector<8x8xf32>
    %cst_54 = arith.constant dense<0.000000e+00> : vector<8x8xf32>
    %108 = tpu.matmul %106, %107, %cst_54 {dimension_numbers = #tpu.dot_dimension_numbers<[1], [0], [0], [1], [0, 0, 1, 1], [], []>} : vector<8x8xf32>, vector<8x8xf32>, vector<8x8xf32> -> vector<8x8xf32>
    %109 = vector.extract_strided_slice %36 {offsets = [8, 0], sizes = [8, 32], strides = [1, 1]} : vector<32x32xf32> to vector<8x32xf32>
    %cst_55 = arith.constant dense<0.000000e+00> : vector<8x32xf32>
    %110 = tpu.matmul %108, %109, %cst_55 {dimension_numbers = #tpu.dot_dimension_numbers<[1], [0], [0], [1], [0, 0, 1, 1], [], []>} : vector<8x8xf32>, vector<8x32xf32>, vector<8x32xf32> -> vector<8x32xf32>
    %111 = arith.addf %92, %110 : vector<8x32xf32>
    %112 = vector.extract_strided_slice %72 {offsets = [0, 16], sizes = [8, 8], strides = [1, 1]} : vector<8x32xf32> to vector<8x8xf32>
    %113 = vector.extract_strided_slice %69 {offsets = [0, 16], sizes = [8, 8], strides = [1, 1]} : vector<8x32xf32> to vector<8x8xf32>
    %cst_56 = arith.constant dense<0.000000e+00> : vector<8x8xf32>
    %114 = tpu.matmul %112, %113, %cst_56 {dimension_numbers = #tpu.dot_dimension_numbers<[1], [1], [0], [0], [0, 0, 1, 0], [], []>} : vector<8x8xf32>, vector<8x8xf32>, vector<8x8xf32> -> vector<8x8xf32>
    %115 = arith.addf %114, %9 : vector<8x8xf32>
    %cst_57 = arith.constant dense<0xFF800000> : vector<8xf32>
    %116 = vector.multi_reduction <maximumf>, %115, %cst_57 [1] : vector<8x8xf32> to vector<8xf32>
    %117 = vector.shape_cast %116 : vector<8xf32> to vector<8x1xf32>
    %118 = vector.broadcast %117 : vector<8x1xf32> to vector<8x8xf32>
    %119 = arith.subf %115, %118 : vector<8x8xf32>
    %120 = math.exp %119 : vector<8x8xf32>
    %cst_58 = arith.constant dense<0.000000e+00> : vector<8xf32>
    %121 = vector.multi_reduction <add>, %120, %cst_58 [1] : vector<8x8xf32> to vector<8xf32>
    %122 = vector.shape_cast %121 : vector<8xf32> to vector<8x1xf32>
    %123 = tpu.reciprocal %122 {approx = true} : vector<8x1xf32> -> vector<8x1xf32>
    %124 = vector.broadcast %123 : vector<8x1xf32> to vector<8x8xf32>
    %125 = arith.mulf %120, %124 : vector<8x8xf32>
    %126 = vector.extract_strided_slice %70 {offsets = [0, 16], sizes = [8, 8], strides = [1, 1]} : vector<8x32xf32> to vector<8x8xf32>
    %cst_59 = arith.constant dense<0.000000e+00> : vector<8x8xf32>
    %127 = tpu.matmul %125, %126, %cst_59 {dimension_numbers = #tpu.dot_dimension_numbers<[1], [0], [0], [1], [0, 0, 1, 1], [], []>} : vector<8x8xf32>, vector<8x8xf32>, vector<8x8xf32> -> vector<8x8xf32>
    %128 = vector.extract_strided_slice %36 {offsets = [16, 0], sizes = [8, 32], strides = [1, 1]} : vector<32x32xf32> to vector<8x32xf32>
    %cst_60 = arith.constant dense<0.000000e+00> : vector<8x32xf32>
    %129 = tpu.matmul %127, %128, %cst_60 {dimension_numbers = #tpu.dot_dimension_numbers<[1], [0], [0], [1], [0, 0, 1, 1], [], []>} : vector<8x8xf32>, vector<8x32xf32>, vector<8x32xf32> -> vector<8x32xf32>
    %130 = arith.addf %111, %129 : vector<8x32xf32>
    %131 = vector.extract_strided_slice %72 {offsets = [0, 24], sizes = [8, 8], strides = [1, 1]} : vector<8x32xf32> to vector<8x8xf32>
    %132 = vector.extract_strided_slice %69 {offsets = [0, 24], sizes = [8, 8], strides = [1, 1]} : vector<8x32xf32> to vector<8x8xf32>
    %cst_61 = arith.constant dense<0.000000e+00> : vector<8x8xf32>
    %133 = tpu.matmul %131, %132, %cst_61 {dimension_numbers = #tpu.dot_dimension_numbers<[1], [1], [0], [0], [0, 0, 1, 0], [], []>} : vector<8x8xf32>, vector<8x8xf32>, vector<8x8xf32> -> vector<8x8xf32>
    %134 = arith.addf %133, %9 : vector<8x8xf32>
    %cst_62 = arith.constant dense<0xFF800000> : vector<8xf32>
    %135 = vector.multi_reduction <maximumf>, %134, %cst_62 [1] : vector<8x8xf32> to vector<8xf32>
    %136 = vector.shape_cast %135 : vector<8xf32> to vector<8x1xf32>
    %137 = vector.broadcast %136 : vector<8x1xf32> to vector<8x8xf32>
    %138 = arith.subf %134, %137 : vector<8x8xf32>
    %139 = math.exp %138 : vector<8x8xf32>
    %cst_63 = arith.constant dense<0.000000e+00> : vector<8xf32>
    %140 = vector.multi_reduction <add>, %139, %cst_63 [1] : vector<8x8xf32> to vector<8xf32>
    %141 = vector.shape_cast %140 : vector<8xf32> to vector<8x1xf32>
    %142 = tpu.reciprocal %141 {approx = true} : vector<8x1xf32> -> vector<8x1xf32>
    %143 = vector.broadcast %142 : vector<8x1xf32> to vector<8x8xf32>
    %144 = arith.mulf %139, %143 : vector<8x8xf32>
    %145 = vector.extract_strided_slice %70 {offsets = [0, 24], sizes = [8, 8], strides = [1, 1]} : vector<8x32xf32> to vector<8x8xf32>
    %cst_64 = arith.constant dense<0.000000e+00> : vector<8x8xf32>
    %146 = tpu.matmul %144, %145, %cst_64 {dimension_numbers = #tpu.dot_dimension_numbers<[1], [0], [0], [1], [0, 0, 1, 1], [], []>} : vector<8x8xf32>, vector<8x8xf32>, vector<8x8xf32> -> vector<8x8xf32>
    %147 = vector.extract_strided_slice %36 {offsets = [24, 0], sizes = [8, 32], strides = [1, 1]} : vector<32x32xf32> to vector<8x32xf32>
    %cst_65 = arith.constant dense<0.000000e+00> : vector<8x32xf32>
    %148 = tpu.matmul %146, %147, %cst_65 {dimension_numbers = #tpu.dot_dimension_numbers<[1], [0], [0], [1], [0, 0, 1, 1], [], []>} : vector<8x8xf32>, vector<8x32xf32>, vector<8x32xf32> -> vector<8x32xf32>
    %149 = arith.addf %130, %148 : vector<8x32xf32>
    %150 = vector.broadcast %23 : vector<1x32xf32> to vector<8x32xf32>
    %151 = arith.addf %149, %150 : vector<8x32xf32>
    %152 = arith.addf %1, %151 : vector<8x32xf32>
    %cst_66 = arith.constant dense<0.000000e+00> : vector<8xf32>
    %153 = vector.multi_reduction <add>, %152, %cst_66 [1] : vector<8x32xf32> to vector<8xf32>
    %154 = vector.shape_cast %153 : vector<8xf32> to vector<8x1xf32>
    %cst_67 = arith.constant 3.200000e+01 : f32
    %155 = vector.broadcast %cst_67 : f32 to vector<8x1xf32>
    %156 = arith.divf %154, %155 : vector<8x1xf32>
    %157 = vector.broadcast %156 : vector<8x1xf32> to vector<8x32xf32>
    %158 = arith.subf %152, %157 : vector<8x32xf32>
    %159 = arith.mulf %158, %158 : vector<8x32xf32>
    %cst_68 = arith.constant dense<0.000000e+00> : vector<8xf32>
    %160 = vector.multi_reduction <add>, %159, %cst_68 [1] : vector<8x32xf32> to vector<8xf32>
    %161 = vector.shape_cast %160 : vector<8xf32> to vector<8x1xf32>
    %cst_69 = arith.constant 3.200000e+01 : f32
    %162 = vector.broadcast %cst_69 : f32 to vector<8x1xf32>
    %163 = arith.divf %161, %162 : vector<8x1xf32>
    %164 = vector.broadcast %156 : vector<8x1xf32> to vector<8x32xf32>
    %165 = arith.subf %152, %164 : vector<8x32xf32>
    %cst_70 = arith.constant 9.99999974E-6 : f32
    %166 = vector.broadcast %cst_70 : f32 to vector<8x1xf32>
    %167 = arith.addf %163, %166 : vector<8x1xf32>
    %168 = math.rsqrt %167 : vector<8x1xf32>
    %169 = vector.broadcast %168 : vector<8x1xf32> to vector<8x32xf32>
    %170 = arith.mulf %165, %169 : vector<8x32xf32>
    %171 = vector.broadcast %14 : vector<1x32xf32> to vector<8x32xf32>
    %172 = arith.mulf %170, %171 : vector<8x32xf32>
    %173 = vector.broadcast %15 : vector<1x32xf32> to vector<8x32xf32>
    %174 = arith.addf %172, %173 : vector<8x32xf32>
    %cst_71 = arith.constant dense<0.000000e+00> : vector<8x64xf32>
    %175 = tpu.matmul %174, %32, %cst_71 {dimension_numbers = #tpu.dot_dimension_numbers<[1], [0], [0], [1], [0, 0, 1, 1], [], []>} : vector<8x32xf32>, vector<32x64xf32>, vector<8x64xf32> -> vector<8x64xf32>
    %176 = vector.broadcast %22 : vector<1x64xf32> to vector<8x64xf32>
    %177 = arith.addf %175, %176 : vector<8x64xf32>
    %cst_72 = arith.constant dense<0.000000e+00> : vector<8x96xf32>
    %178 = tpu.matmul %3, %30, %cst_72 {dimension_numbers = #tpu.dot_dimension_numbers<[1], [0], [0], [1], [0, 0, 1, 1], [], []>} : vector<8x32xf32>, vector<32x96xf32>, vector<8x96xf32> -> vector<8x96xf32>
    %179 = vector.broadcast %21 : vector<1x96xf32> to vector<8x96xf32>
    %180 = arith.addf %178, %179 : vector<8x96xf32>
    %181 = vector.extract_strided_slice %177 {offsets = [0, 0], sizes = [8, 32], strides = [1, 1]} : vector<8x64xf32> to vector<8x32xf32>
    %182 = vector.extract_strided_slice %180 {offsets = [0, 0], sizes = [8, 32], strides = [1, 1]} : vector<8x96xf32> to vector<8x32xf32>
    %183 = vector.extract_strided_slice %180 {offsets = [0, 32], sizes = [8, 32], strides = [1, 1]} : vector<8x96xf32> to vector<8x32xf32>
    %cst_73 = arith.constant 0.353553385 : f32
    %184 = vector.broadcast %cst_73 : f32 to vector<8x32xf32>
    %185 = arith.mulf %181, %184 : vector<8x32xf32>
    %cst_74 = arith.constant 0.000000e+00 : f32
    %186 = vector.broadcast %cst_74 : f32 to vector<8x32xf32>
    %187 = vector.extract_strided_slice %185 {offsets = [0, 0], sizes = [8, 8], strides = [1, 1]} : vector<8x32xf32> to vector<8x8xf32>
    %188 = vector.extract_strided_slice %182 {offsets = [0, 0], sizes = [8, 8], strides = [1, 1]} : vector<8x32xf32> to vector<8x8xf32>
    %cst_75 = arith.constant dense<0.000000e+00> : vector<8x8xf32>
    %189 = tpu.matmul %187, %188, %cst_75 {dimension_numbers = #tpu.dot_dimension_numbers<[1], [1], [0], [0], [0, 0, 1, 0], [], []>} : vector<8x8xf32>, vector<8x8xf32>, vector<8x8xf32> -> vector<8x8xf32>
    %cst_76 = arith.constant dense<0xFF800000> : vector<8xf32>
    %190 = vector.multi_reduction <maximumf>, %189, %cst_76 [1] : vector<8x8xf32> to vector<8xf32>
    %191 = vector.shape_cast %190 : vector<8xf32> to vector<8x1xf32>
    %192 = vector.broadcast %191 : vector<8x1xf32> to vector<8x8xf32>
    %193 = arith.subf %189, %192 : vector<8x8xf32>
    %194 = math.exp %193 : vector<8x8xf32>
    %cst_77 = arith.constant dense<0.000000e+00> : vector<8xf32>
    %195 = vector.multi_reduction <add>, %194, %cst_77 [1] : vector<8x8xf32> to vector<8xf32>
    %196 = vector.shape_cast %195 : vector<8xf32> to vector<8x1xf32>
    %197 = tpu.reciprocal %196 {approx = true} : vector<8x1xf32> -> vector<8x1xf32>
    %198 = vector.broadcast %197 : vector<8x1xf32> to vector<8x8xf32>
    %199 = arith.mulf %194, %198 : vector<8x8xf32>
    %200 = vector.extract_strided_slice %183 {offsets = [0, 0], sizes = [8, 8], strides = [1, 1]} : vector<8x32xf32> to vector<8x8xf32>
    %cst_78 = arith.constant dense<0.000000e+00> : vector<8x8xf32>
    %201 = tpu.matmul %199, %200, %cst_78 {dimension_numbers = #tpu.dot_dimension_numbers<[1], [0], [0], [1], [0, 0, 1, 1], [], []>} : vector<8x8xf32>, vector<8x8xf32>, vector<8x8xf32> -> vector<8x8xf32>
    %202 = vector.extract_strided_slice %38 {offsets = [0, 0], sizes = [8, 32], strides = [1, 1]} : vector<32x32xf32> to vector<8x32xf32>
    %cst_79 = arith.constant dense<0.000000e+00> : vector<8x32xf32>
    %203 = tpu.matmul %201, %202, %cst_79 {dimension_numbers = #tpu.dot_dimension_numbers<[1], [0], [0], [1], [0, 0, 1, 1], [], []>} : vector<8x8xf32>, vector<8x32xf32>, vector<8x32xf32> -> vector<8x32xf32>
    %204 = arith.addf %186, %203 : vector<8x32xf32>
    %205 = vector.extract_strided_slice %185 {offsets = [0, 8], sizes = [8, 8], strides = [1, 1]} : vector<8x32xf32> to vector<8x8xf32>
    %206 = vector.extract_strided_slice %182 {offsets = [0, 8], sizes = [8, 8], strides = [1, 1]} : vector<8x32xf32> to vector<8x8xf32>
    %cst_80 = arith.constant dense<0.000000e+00> : vector<8x8xf32>
    %207 = tpu.matmul %205, %206, %cst_80 {dimension_numbers = #tpu.dot_dimension_numbers<[1], [1], [0], [0], [0, 0, 1, 0], [], []>} : vector<8x8xf32>, vector<8x8xf32>, vector<8x8xf32> -> vector<8x8xf32>
    %cst_81 = arith.constant dense<0xFF800000> : vector<8xf32>
    %208 = vector.multi_reduction <maximumf>, %207, %cst_81 [1] : vector<8x8xf32> to vector<8xf32>
    %209 = vector.shape_cast %208 : vector<8xf32> to vector<8x1xf32>
    %210 = vector.broadcast %209 : vector<8x1xf32> to vector<8x8xf32>
    %211 = arith.subf %207, %210 : vector<8x8xf32>
    %212 = math.exp %211 : vector<8x8xf32>
    %cst_82 = arith.constant dense<0.000000e+00> : vector<8xf32>
    %213 = vector.multi_reduction <add>, %212, %cst_82 [1] : vector<8x8xf32> to vector<8xf32>
    %214 = vector.shape_cast %213 : vector<8xf32> to vector<8x1xf32>
    %215 = tpu.reciprocal %214 {approx = true} : vector<8x1xf32> -> vector<8x1xf32>
    %216 = vector.broadcast %215 : vector<8x1xf32> to vector<8x8xf32>
    %217 = arith.mulf %212, %216 : vector<8x8xf32>
    %218 = vector.extract_strided_slice %183 {offsets = [0, 8], sizes = [8, 8], strides = [1, 1]} : vector<8x32xf32> to vector<8x8xf32>
    %cst_83 = arith.constant dense<0.000000e+00> : vector<8x8xf32>
    %219 = tpu.matmul %217, %218, %cst_83 {dimension_numbers = #tpu.dot_dimension_numbers<[1], [0], [0], [1], [0, 0, 1, 1], [], []>} : vector<8x8xf32>, vector<8x8xf32>, vector<8x8xf32> -> vector<8x8xf32>
    %220 = vector.extract_strided_slice %38 {offsets = [8, 0], sizes = [8, 32], strides = [1, 1]} : vector<32x32xf32> to vector<8x32xf32>
    %cst_84 = arith.constant dense<0.000000e+00> : vector<8x32xf32>
    %221 = tpu.matmul %219, %220, %cst_84 {dimension_numbers = #tpu.dot_dimension_numbers<[1], [0], [0], [1], [0, 0, 1, 1], [], []>} : vector<8x8xf32>, vector<8x32xf32>, vector<8x32xf32> -> vector<8x32xf32>
    %222 = arith.addf %204, %221 : vector<8x32xf32>
    %223 = vector.extract_strided_slice %185 {offsets = [0, 16], sizes = [8, 8], strides = [1, 1]} : vector<8x32xf32> to vector<8x8xf32>
    %224 = vector.extract_strided_slice %182 {offsets = [0, 16], sizes = [8, 8], strides = [1, 1]} : vector<8x32xf32> to vector<8x8xf32>
    %cst_85 = arith.constant dense<0.000000e+00> : vector<8x8xf32>
    %225 = tpu.matmul %223, %224, %cst_85 {dimension_numbers = #tpu.dot_dimension_numbers<[1], [1], [0], [0], [0, 0, 1, 0], [], []>} : vector<8x8xf32>, vector<8x8xf32>, vector<8x8xf32> -> vector<8x8xf32>
    %cst_86 = arith.constant dense<0xFF800000> : vector<8xf32>
    %226 = vector.multi_reduction <maximumf>, %225, %cst_86 [1] : vector<8x8xf32> to vector<8xf32>
    %227 = vector.shape_cast %226 : vector<8xf32> to vector<8x1xf32>
    %228 = vector.broadcast %227 : vector<8x1xf32> to vector<8x8xf32>
    %229 = arith.subf %225, %228 : vector<8x8xf32>
    %230 = math.exp %229 : vector<8x8xf32>
    %cst_87 = arith.constant dense<0.000000e+00> : vector<8xf32>
    %231 = vector.multi_reduction <add>, %230, %cst_87 [1] : vector<8x8xf32> to vector<8xf32>
    %232 = vector.shape_cast %231 : vector<8xf32> to vector<8x1xf32>
    %233 = tpu.reciprocal %232 {approx = true} : vector<8x1xf32> -> vector<8x1xf32>
    %234 = vector.broadcast %233 : vector<8x1xf32> to vector<8x8xf32>
    %235 = arith.mulf %230, %234 : vector<8x8xf32>
    %236 = vector.extract_strided_slice %183 {offsets = [0, 16], sizes = [8, 8], strides = [1, 1]} : vector<8x32xf32> to vector<8x8xf32>
    %cst_88 = arith.constant dense<0.000000e+00> : vector<8x8xf32>
    %237 = tpu.matmul %235, %236, %cst_88 {dimension_numbers = #tpu.dot_dimension_numbers<[1], [0], [0], [1], [0, 0, 1, 1], [], []>} : vector<8x8xf32>, vector<8x8xf32>, vector<8x8xf32> -> vector<8x8xf32>
    %238 = vector.extract_strided_slice %38 {offsets = [16, 0], sizes = [8, 32], strides = [1, 1]} : vector<32x32xf32> to vector<8x32xf32>
    %cst_89 = arith.constant dense<0.000000e+00> : vector<8x32xf32>
    %239 = tpu.matmul %237, %238, %cst_89 {dimension_numbers = #tpu.dot_dimension_numbers<[1], [0], [0], [1], [0, 0, 1, 1], [], []>} : vector<8x8xf32>, vector<8x32xf32>, vector<8x32xf32> -> vector<8x32xf32>
    %240 = arith.addf %222, %239 : vector<8x32xf32>
    %241 = vector.extract_strided_slice %185 {offsets = [0, 24], sizes = [8, 8], strides = [1, 1]} : vector<8x32xf32> to vector<8x8xf32>
    %242 = vector.extract_strided_slice %182 {offsets = [0, 24], sizes = [8, 8], strides = [1, 1]} : vector<8x32xf32> to vector<8x8xf32>
    %cst_90 = arith.constant dense<0.000000e+00> : vector<8x8xf32>
    %243 = tpu.matmul %241, %242, %cst_90 {dimension_numbers = #tpu.dot_dimension_numbers<[1], [1], [0], [0], [0, 0, 1, 0], [], []>} : vector<8x8xf32>, vector<8x8xf32>, vector<8x8xf32> -> vector<8x8xf32>
    %cst_91 = arith.constant dense<0xFF800000> : vector<8xf32>
    %244 = vector.multi_reduction <maximumf>, %243, %cst_91 [1] : vector<8x8xf32> to vector<8xf32>
    %245 = vector.shape_cast %244 : vector<8xf32> to vector<8x1xf32>
    %246 = vector.broadcast %245 : vector<8x1xf32> to vector<8x8xf32>
    %247 = arith.subf %243, %246 : vector<8x8xf32>
    %248 = math.exp %247 : vector<8x8xf32>
    %cst_92 = arith.constant dense<0.000000e+00> : vector<8xf32>
    %249 = vector.multi_reduction <add>, %248, %cst_92 [1] : vector<8x8xf32> to vector<8xf32>
    %250 = vector.shape_cast %249 : vector<8xf32> to vector<8x1xf32>
    %251 = tpu.reciprocal %250 {approx = true} : vector<8x1xf32> -> vector<8x1xf32>
    %252 = vector.broadcast %251 : vector<8x1xf32> to vector<8x8xf32>
    %253 = arith.mulf %248, %252 : vector<8x8xf32>
    %254 = vector.extract_strided_slice %183 {offsets = [0, 24], sizes = [8, 8], strides = [1, 1]} : vector<8x32xf32> to vector<8x8xf32>
    %cst_93 = arith.constant dense<0.000000e+00> : vector<8x8xf32>
    %255 = tpu.matmul %253, %254, %cst_93 {dimension_numbers = #tpu.dot_dimension_numbers<[1], [0], [0], [1], [0, 0, 1, 1], [], []>} : vector<8x8xf32>, vector<8x8xf32>, vector<8x8xf32> -> vector<8x8xf32>
    %256 = vector.extract_strided_slice %38 {offsets = [24, 0], sizes = [8, 32], strides = [1, 1]} : vector<32x32xf32> to vector<8x32xf32>
    %cst_94 = arith.constant dense<0.000000e+00> : vector<8x32xf32>
    %257 = tpu.matmul %255, %256, %cst_94 {dimension_numbers = #tpu.dot_dimension_numbers<[1], [0], [0], [1], [0, 0, 1, 1], [], []>} : vector<8x8xf32>, vector<8x32xf32>, vector<8x32xf32> -> vector<8x32xf32>
    %258 = arith.addf %240, %257 : vector<8x32xf32>
    %259 = vector.broadcast %24 : vector<1x32xf32> to vector<8x32xf32>
    %260 = arith.addf %258, %259 : vector<8x32xf32>
    %261 = vector.extract_strided_slice %180 {offsets = [0, 64], sizes = [8, 32], strides = [1, 1]} : vector<8x96xf32> to vector<8x32xf32>
    %262 = arith.negf %261 : vector<8x32xf32>
    %263 = math.exp %262 : vector<8x32xf32>
    %cst_95 = arith.constant 1.000000e+00 : f32
    %264 = vector.broadcast %cst_95 : f32 to vector<8x32xf32>
    %265 = arith.addf %264, %263 : vector<8x32xf32>
    %266 = arith.divf %264, %265 : vector<8x32xf32>
    %cst_96 = arith.constant 1.000000e+00 : f32
    %267 = vector.broadcast %cst_96 : f32 to vector<8x32xf32>
    %268 = arith.addf %267, %266 : vector<8x32xf32>
    %269 = arith.mulf %260, %268 : vector<8x32xf32>
    %270 = vector.extract_strided_slice %177 {offsets = [0, 32], sizes = [8, 32], strides = [1, 1]} : vector<8x64xf32> to vector<8x32xf32>
    %cst_97 = arith.constant dense<0.000000e+00> : vector<8x32xf32>
    %271 = tpu.matmul %269, %40, %cst_97 {dimension_numbers = #tpu.dot_dimension_numbers<[1], [0], [0], [1], [0, 0, 1, 1], [], []>} : vector<8x32xf32>, vector<32x32xf32>, vector<8x32xf32> -> vector<8x32xf32>
    %272 = arith.addf %270, %271 : vector<8x32xf32>
    %273 = arith.negf %272 : vector<8x32xf32>
    %274 = math.exp %273 : vector<8x32xf32>
    %cst_98 = arith.constant 1.000000e+00 : f32
    %275 = vector.broadcast %cst_98 : f32 to vector<8x32xf32>
    %276 = arith.addf %275, %274 : vector<8x32xf32>
    %277 = arith.divf %275, %276 : vector<8x32xf32>
    %278 = arith.mulf %277, %174 : vector<8x32xf32>
    %cst_99 = arith.constant 1.000000e+00 : f32
    %279 = vector.broadcast %cst_99 : f32 to vector<8x32xf32>
    %280 = arith.subf %279, %277 : vector<8x32xf32>
    %281 = arith.mulf %280, %269 : vector<8x32xf32>
    %282 = arith.addf %278, %281 : vector<8x32xf32>
    %cst_100 = arith.constant dense<0.000000e+00> : vector<8xf32>
    %283 = vector.multi_reduction <add>, %282, %cst_100 [1] : vector<8x32xf32> to vector<8xf32>
    %284 = vector.shape_cast %283 : vector<8xf32> to vector<8x1xf32>
    %cst_101 = arith.constant 3.200000e+01 : f32
    %285 = vector.broadcast %cst_101 : f32 to vector<8x1xf32>
    %286 = arith.divf %284, %285 : vector<8x1xf32>
    %287 = vector.broadcast %286 : vector<8x1xf32> to vector<8x32xf32>
    %288 = arith.subf %282, %287 : vector<8x32xf32>
    %289 = arith.mulf %288, %288 : vector<8x32xf32>
    %cst_102 = arith.constant dense<0.000000e+00> : vector<8xf32>
    %290 = vector.multi_reduction <add>, %289, %cst_102 [1] : vector<8x32xf32> to vector<8xf32>
    %291 = vector.shape_cast %290 : vector<8xf32> to vector<8x1xf32>
    %cst_103 = arith.constant 3.200000e+01 : f32
    %292 = vector.broadcast %cst_103 : f32 to vector<8x1xf32>
    %293 = arith.divf %291, %292 : vector<8x1xf32>
    %294 = vector.broadcast %286 : vector<8x1xf32> to vector<8x32xf32>
    %295 = arith.subf %282, %294 : vector<8x32xf32>
    %cst_104 = arith.constant 9.99999974E-6 : f32
    %296 = vector.broadcast %cst_104 : f32 to vector<8x1xf32>
    %297 = arith.addf %293, %296 : vector<8x1xf32>
    %298 = math.rsqrt %297 : vector<8x1xf32>
    %299 = vector.broadcast %298 : vector<8x1xf32> to vector<8x32xf32>
    %300 = arith.mulf %295, %299 : vector<8x32xf32>
    %301 = vector.broadcast %18 : vector<1x32xf32> to vector<8x32xf32>
    %302 = arith.mulf %300, %301 : vector<8x32xf32>
    %303 = vector.broadcast %19 : vector<1x32xf32> to vector<8x32xf32>
    %304 = arith.addf %302, %303 : vector<8x32xf32>
    %305 = arith.addf %152, %304 : vector<8x32xf32>
    %cst_105 = arith.constant dense<0.000000e+00> : vector<8xf32>
    %306 = vector.multi_reduction <add>, %305, %cst_105 [1] : vector<8x32xf32> to vector<8xf32>
    %307 = vector.shape_cast %306 : vector<8xf32> to vector<8x1xf32>
    %cst_106 = arith.constant 3.200000e+01 : f32
    %308 = vector.broadcast %cst_106 : f32 to vector<8x1xf32>
    %309 = arith.divf %307, %308 : vector<8x1xf32>
    %310 = vector.broadcast %309 : vector<8x1xf32> to vector<8x32xf32>
    %311 = arith.subf %305, %310 : vector<8x32xf32>
    %312 = arith.mulf %311, %311 : vector<8x32xf32>
    %cst_107 = arith.constant dense<0.000000e+00> : vector<8xf32>
    %313 = vector.multi_reduction <add>, %312, %cst_107 [1] : vector<8x32xf32> to vector<8xf32>
    %314 = vector.shape_cast %313 : vector<8xf32> to vector<8x1xf32>
    %cst_108 = arith.constant 3.200000e+01 : f32
    %315 = vector.broadcast %cst_108 : f32 to vector<8x1xf32>
    %316 = arith.divf %314, %315 : vector<8x1xf32>
    %317 = vector.broadcast %309 : vector<8x1xf32> to vector<8x32xf32>
    %318 = arith.subf %305, %317 : vector<8x32xf32>
    %cst_109 = arith.constant 9.99999974E-6 : f32
    %319 = vector.broadcast %cst_109 : f32 to vector<8x1xf32>
    %320 = arith.addf %316, %319 : vector<8x1xf32>
    %321 = math.rsqrt %320 : vector<8x1xf32>
    %322 = vector.broadcast %321 : vector<8x1xf32> to vector<8x32xf32>
    %323 = arith.mulf %318, %322 : vector<8x32xf32>
    %324 = vector.broadcast %16 : vector<1x32xf32> to vector<8x32xf32>
    %325 = arith.mulf %323, %324 : vector<8x32xf32>
    %326 = vector.broadcast %17 : vector<1x32xf32> to vector<8x32xf32>
    %327 = arith.addf %325, %326 : vector<8x32xf32>
    %cst_110 = arith.constant dense<0.000000e+00> : vector<8x64xf32>
    %328 = tpu.matmul %327, %34, %cst_110 {dimension_numbers = #tpu.dot_dimension_numbers<[1], [0], [0], [1], [0, 0, 1, 1], [], []>} : vector<8x32xf32>, vector<32x64xf32>, vector<8x64xf32> -> vector<8x64xf32>
    %329 = vector.broadcast %25 : vector<1x64xf32> to vector<8x64xf32>
    %330 = arith.addf %328, %329 : vector<8x64xf32>
    %cst_111 = arith.constant 5.000000e-01 : f32
    %331 = vector.broadcast %cst_111 : f32 to vector<8x64xf32>
    %332 = arith.mulf %331, %330 : vector<8x64xf32>
    %cst_112 = arith.constant 0.707106769 : f32
    %333 = vector.broadcast %cst_112 : f32 to vector<8x64xf32>
    %334 = arith.mulf %330, %333 : vector<8x64xf32>
    %335 = math.erf %334 : vector<8x64xf32>
    %cst_113 = arith.constant 1.000000e+00 : f32
    %336 = vector.broadcast %cst_113 : f32 to vector<8x64xf32>
    %337 = arith.addf %336, %335 : vector<8x64xf32>
    %338 = arith.mulf %332, %337 : vector<8x64xf32>
    %cst_114 = arith.constant dense<0.000000e+00> : vector<8x32xf32>
    %339 = tpu.matmul %338, %42, %cst_114 {dimension_numbers = #tpu.dot_dimension_numbers<[1], [0], [0], [1], [0, 0, 1, 1], [], []>} : vector<8x64xf32>, vector<64x32xf32>, vector<8x32xf32> -> vector<8x32xf32>
    %340 = arith.addf %305, %339 : vector<8x32xf32>
    %341 = vector.broadcast %26 : vector<1x32xf32> to vector<8x32xf32>
    %342 = arith.addf %340, %341 : vector<8x32xf32>
    %c1_115 = arith.constant 1 : index
    %c0_116 = arith.constant 0 : index
    %c0_117 = arith.constant 0 : index
    %343 = vector.load %arg3[%c1_115, %c0_116, %c0_117] : memref<2x16x128xf32, #tpu.memory_space<vmem>>, vector<1x16x128xf32>
    %344 = vector.shape_cast %343 : vector<1x16x128xf32> to vector<16x128xf32>
    %345 = vector.extract_strided_slice %344 {offsets = [0, 0], sizes = [1, 32], strides = [1, 1]} : vector<16x128xf32> to vector<1x32xf32>
    %346 = vector.extract_strided_slice %344 {offsets = [1, 0], sizes = [1, 32], strides = [1, 1]} : vector<16x128xf32> to vector<1x32xf32>
    %347 = vector.extract_strided_slice %344 {offsets = [2, 0], sizes = [1, 32], strides = [1, 1]} : vector<16x128xf32> to vector<1x32xf32>
    %348 = vector.extract_strided_slice %344 {offsets = [3, 0], sizes = [1, 32], strides = [1, 1]} : vector<16x128xf32> to vector<1x32xf32>
    %349 = vector.extract_strided_slice %344 {offsets = [4, 0], sizes = [1, 32], strides = [1, 1]} : vector<16x128xf32> to vector<1x32xf32>
    %350 = vector.extract_strided_slice %344 {offsets = [5, 0], sizes = [1, 32], strides = [1, 1]} : vector<16x128xf32> to vector<1x32xf32>
    %351 = vector.extract_strided_slice %344 {offsets = [6, 0], sizes = [1, 32], strides = [1, 1]} : vector<16x128xf32> to vector<1x32xf32>
    %352 = vector.extract_strided_slice %344 {offsets = [7, 0], sizes = [1, 32], strides = [1, 1]} : vector<16x128xf32> to vector<1x32xf32>
    %353 = vector.extract_strided_slice %344 {offsets = [8, 0], sizes = [1, 96], strides = [1, 1]} : vector<16x128xf32> to vector<1x96xf32>
    %354 = vector.extract_strided_slice %344 {offsets = [9, 0], sizes = [1, 96], strides = [1, 1]} : vector<16x128xf32> to vector<1x96xf32>
    %355 = vector.extract_strided_slice %344 {offsets = [10, 0], sizes = [1, 64], strides = [1, 1]} : vector<16x128xf32> to vector<1x64xf32>
    %356 = vector.extract_strided_slice %344 {offsets = [11, 0], sizes = [1, 32], strides = [1, 1]} : vector<16x128xf32> to vector<1x32xf32>
    %357 = vector.extract_strided_slice %344 {offsets = [12, 0], sizes = [1, 32], strides = [1, 1]} : vector<16x128xf32> to vector<1x32xf32>
    %358 = vector.extract_strided_slice %344 {offsets = [13, 0], sizes = [1, 64], strides = [1, 1]} : vector<16x128xf32> to vector<1x64xf32>
    %359 = vector.extract_strided_slice %344 {offsets = [14, 0], sizes = [1, 32], strides = [1, 1]} : vector<16x128xf32> to vector<1x32xf32>
    %c1_118 = arith.constant 1 : index
    %c0_119 = arith.constant 0 : index
    %c0_120 = arith.constant 0 : index
    %c0_121 = arith.constant 0 : index
    %360 = vector.load %arg4[%c1_118, %c0_119, %c0_120, %c0_121] : memref<2x2x32x96xf32, #tpu.memory_space<vmem>>, vector<1x1x32x96xf32>
    %361 = vector.shape_cast %360 : vector<1x1x32x96xf32> to vector<32x96xf32>
    %c1_122 = arith.constant 1 : index
    %c1_123 = arith.constant 1 : index
    %c0_124 = arith.constant 0 : index
    %c0_125 = arith.constant 0 : index
    %362 = vector.load %arg4[%c1_122, %c1_123, %c0_124, %c0_125] : memref<2x2x32x96xf32, #tpu.memory_space<vmem>>, vector<1x1x32x96xf32>
    %363 = vector.shape_cast %362 : vector<1x1x32x96xf32> to vector<32x96xf32>
    %c1_126 = arith.constant 1 : index
    %c0_127 = arith.constant 0 : index
    %c0_128 = arith.constant 0 : index
    %c0_129 = arith.constant 0 : index
    %364 = vector.load %arg5[%c1_126, %c0_127, %c0_128, %c0_129] : memref<2x2x32x64xf32, #tpu.memory_space<vmem>>, vector<1x1x32x64xf32>
    %365 = vector.shape_cast %364 : vector<1x1x32x64xf32> to vector<32x64xf32>
    %c1_130 = arith.constant 1 : index
    %c1_131 = arith.constant 1 : index
    %c0_132 = arith.constant 0 : index
    %c0_133 = arith.constant 0 : index
    %366 = vector.load %arg5[%c1_130, %c1_131, %c0_132, %c0_133] : memref<2x2x32x64xf32, #tpu.memory_space<vmem>>, vector<1x1x32x64xf32>
    %367 = vector.shape_cast %366 : vector<1x1x32x64xf32> to vector<32x64xf32>
    %c1_134 = arith.constant 1 : index
    %c0_135 = arith.constant 0 : index
    %c0_136 = arith.constant 0 : index
    %c0_137 = arith.constant 0 : index
    %368 = vector.load %arg6[%c1_134, %c0_135, %c0_136, %c0_137] : memref<2x3x32x32xf32, #tpu.memory_space<vmem>>, vector<1x1x32x32xf32>
    %369 = vector.shape_cast %368 : vector<1x1x32x32xf32> to vector<32x32xf32>
    %c1_138 = arith.constant 1 : index
    %c1_139 = arith.constant 1 : index
    %c0_140 = arith.constant 0 : index
    %c0_141 = arith.constant 0 : index
    %370 = vector.load %arg6[%c1_138, %c1_139, %c0_140, %c0_141] : memref<2x3x32x32xf32, #tpu.memory_space<vmem>>, vector<1x1x32x32xf32>
    %371 = vector.shape_cast %370 : vector<1x1x32x32xf32> to vector<32x32xf32>
    %c1_142 = arith.constant 1 : index
    %c2_143 = arith.constant 2 : index
    %c0_144 = arith.constant 0 : index
    %c0_145 = arith.constant 0 : index
    %372 = vector.load %arg6[%c1_142, %c2_143, %c0_144, %c0_145] : memref<2x3x32x32xf32, #tpu.memory_space<vmem>>, vector<1x1x32x32xf32>
    %373 = vector.shape_cast %372 : vector<1x1x32x32xf32> to vector<32x32xf32>
    %c1_146 = arith.constant 1 : index
    %c0_147 = arith.constant 0 : index
    %c0_148 = arith.constant 0 : index
    %374 = vector.load %arg7[%c1_146, %c0_147, %c0_148] : memref<2x64x32xf32, #tpu.memory_space<vmem>>, vector<1x64x32xf32>
    %375 = vector.shape_cast %374 : vector<1x64x32xf32> to vector<64x32xf32>
    %cst_149 = arith.constant dense<0.000000e+00> : vector<8xf32>
    %376 = vector.multi_reduction <add>, %342, %cst_149 [1] : vector<8x32xf32> to vector<8xf32>
    %377 = vector.shape_cast %376 : vector<8xf32> to vector<8x1xf32>
    %cst_150 = arith.constant 3.200000e+01 : f32
    %378 = vector.broadcast %cst_150 : f32 to vector<8x1xf32>
    %379 = arith.divf %377, %378 : vector<8x1xf32>
    %380 = vector.broadcast %379 : vector<8x1xf32> to vector<8x32xf32>
    %381 = arith.subf %342, %380 : vector<8x32xf32>
    %382 = arith.mulf %381, %381 : vector<8x32xf32>
    %cst_151 = arith.constant dense<0.000000e+00> : vector<8xf32>
    %383 = vector.multi_reduction <add>, %382, %cst_151 [1] : vector<8x32xf32> to vector<8xf32>
    %384 = vector.shape_cast %383 : vector<8xf32> to vector<8x1xf32>
    %cst_152 = arith.constant 3.200000e+01 : f32
    %385 = vector.broadcast %cst_152 : f32 to vector<8x1xf32>
    %386 = arith.divf %384, %385 : vector<8x1xf32>
    %387 = vector.broadcast %379 : vector<8x1xf32> to vector<8x32xf32>
    %388 = arith.subf %342, %387 : vector<8x32xf32>
    %cst_153 = arith.constant 9.99999974E-6 : f32
    %389 = vector.broadcast %cst_153 : f32 to vector<8x1xf32>
    %390 = arith.addf %386, %389 : vector<8x1xf32>
    %391 = math.rsqrt %390 : vector<8x1xf32>
    %392 = vector.broadcast %391 : vector<8x1xf32> to vector<8x32xf32>
    %393 = arith.mulf %388, %392 : vector<8x32xf32>
    %394 = vector.broadcast %345 : vector<1x32xf32> to vector<8x32xf32>
    %395 = arith.mulf %393, %394 : vector<8x32xf32>
    %396 = vector.broadcast %346 : vector<1x32xf32> to vector<8x32xf32>
    %397 = arith.addf %395, %396 : vector<8x32xf32>
    %cst_154 = arith.constant dense<0.000000e+00> : vector<8x96xf32>
    %398 = tpu.matmul %397, %361, %cst_154 {dimension_numbers = #tpu.dot_dimension_numbers<[1], [0], [0], [1], [0, 0, 1, 1], [], []>} : vector<8x32xf32>, vector<32x96xf32>, vector<8x96xf32> -> vector<8x96xf32>
    %399 = vector.broadcast %353 : vector<1x96xf32> to vector<8x96xf32>
    %400 = arith.addf %398, %399 : vector<8x96xf32>
    %401 = vector.extract_strided_slice %400 {offsets = [0, 0], sizes = [8, 32], strides = [1, 1]} : vector<8x96xf32> to vector<8x32xf32>
    %402 = vector.extract_strided_slice %400 {offsets = [0, 32], sizes = [8, 32], strides = [1, 1]} : vector<8x96xf32> to vector<8x32xf32>
    %403 = vector.extract_strided_slice %400 {offsets = [0, 64], sizes = [8, 32], strides = [1, 1]} : vector<8x96xf32> to vector<8x32xf32>
    %cst_155 = arith.constant 0.353553385 : f32
    %404 = vector.broadcast %cst_155 : f32 to vector<8x32xf32>
    %405 = arith.mulf %401, %404 : vector<8x32xf32>
    %cst_156 = arith.constant 0.000000e+00 : f32
    %406 = vector.broadcast %cst_156 : f32 to vector<8x32xf32>
    %407 = vector.extract_strided_slice %405 {offsets = [0, 0], sizes = [8, 8], strides = [1, 1]} : vector<8x32xf32> to vector<8x8xf32>
    %408 = vector.extract_strided_slice %402 {offsets = [0, 0], sizes = [8, 8], strides = [1, 1]} : vector<8x32xf32> to vector<8x8xf32>
    %cst_157 = arith.constant dense<0.000000e+00> : vector<8x8xf32>
    %409 = tpu.matmul %407, %408, %cst_157 {dimension_numbers = #tpu.dot_dimension_numbers<[1], [1], [0], [0], [0, 0, 1, 0], [], []>} : vector<8x8xf32>, vector<8x8xf32>, vector<8x8xf32> -> vector<8x8xf32>
    %410 = arith.addf %409, %9 : vector<8x8xf32>
    %cst_158 = arith.constant dense<0xFF800000> : vector<8xf32>
    %411 = vector.multi_reduction <maximumf>, %410, %cst_158 [1] : vector<8x8xf32> to vector<8xf32>
    %412 = vector.shape_cast %411 : vector<8xf32> to vector<8x1xf32>
    %413 = vector.broadcast %412 : vector<8x1xf32> to vector<8x8xf32>
    %414 = arith.subf %410, %413 : vector<8x8xf32>
    %415 = math.exp %414 : vector<8x8xf32>
    %cst_159 = arith.constant dense<0.000000e+00> : vector<8xf32>
    %416 = vector.multi_reduction <add>, %415, %cst_159 [1] : vector<8x8xf32> to vector<8xf32>
    %417 = vector.shape_cast %416 : vector<8xf32> to vector<8x1xf32>
    %418 = tpu.reciprocal %417 {approx = true} : vector<8x1xf32> -> vector<8x1xf32>
    %419 = vector.broadcast %418 : vector<8x1xf32> to vector<8x8xf32>
    %420 = arith.mulf %415, %419 : vector<8x8xf32>
    %421 = vector.extract_strided_slice %403 {offsets = [0, 0], sizes = [8, 8], strides = [1, 1]} : vector<8x32xf32> to vector<8x8xf32>
    %cst_160 = arith.constant dense<0.000000e+00> : vector<8x8xf32>
    %422 = tpu.matmul %420, %421, %cst_160 {dimension_numbers = #tpu.dot_dimension_numbers<[1], [0], [0], [1], [0, 0, 1, 1], [], []>} : vector<8x8xf32>, vector<8x8xf32>, vector<8x8xf32> -> vector<8x8xf32>
    %423 = vector.extract_strided_slice %369 {offsets = [0, 0], sizes = [8, 32], strides = [1, 1]} : vector<32x32xf32> to vector<8x32xf32>
    %cst_161 = arith.constant dense<0.000000e+00> : vector<8x32xf32>
    %424 = tpu.matmul %422, %423, %cst_161 {dimension_numbers = #tpu.dot_dimension_numbers<[1], [0], [0], [1], [0, 0, 1, 1], [], []>} : vector<8x8xf32>, vector<8x32xf32>, vector<8x32xf32> -> vector<8x32xf32>
    %425 = arith.addf %406, %424 : vector<8x32xf32>
    %426 = vector.extract_strided_slice %405 {offsets = [0, 8], sizes = [8, 8], strides = [1, 1]} : vector<8x32xf32> to vector<8x8xf32>
    %427 = vector.extract_strided_slice %402 {offsets = [0, 8], sizes = [8, 8], strides = [1, 1]} : vector<8x32xf32> to vector<8x8xf32>
    %cst_162 = arith.constant dense<0.000000e+00> : vector<8x8xf32>
    %428 = tpu.matmul %426, %427, %cst_162 {dimension_numbers = #tpu.dot_dimension_numbers<[1], [1], [0], [0], [0, 0, 1, 0], [], []>} : vector<8x8xf32>, vector<8x8xf32>, vector<8x8xf32> -> vector<8x8xf32>
    %429 = arith.addf %428, %9 : vector<8x8xf32>
    %cst_163 = arith.constant dense<0xFF800000> : vector<8xf32>
    %430 = vector.multi_reduction <maximumf>, %429, %cst_163 [1] : vector<8x8xf32> to vector<8xf32>
    %431 = vector.shape_cast %430 : vector<8xf32> to vector<8x1xf32>
    %432 = vector.broadcast %431 : vector<8x1xf32> to vector<8x8xf32>
    %433 = arith.subf %429, %432 : vector<8x8xf32>
    %434 = math.exp %433 : vector<8x8xf32>
    %cst_164 = arith.constant dense<0.000000e+00> : vector<8xf32>
    %435 = vector.multi_reduction <add>, %434, %cst_164 [1] : vector<8x8xf32> to vector<8xf32>
    %436 = vector.shape_cast %435 : vector<8xf32> to vector<8x1xf32>
    %437 = tpu.reciprocal %436 {approx = true} : vector<8x1xf32> -> vector<8x1xf32>
    %438 = vector.broadcast %437 : vector<8x1xf32> to vector<8x8xf32>
    %439 = arith.mulf %434, %438 : vector<8x8xf32>
    %440 = vector.extract_strided_slice %403 {offsets = [0, 8], sizes = [8, 8], strides = [1, 1]} : vector<8x32xf32> to vector<8x8xf32>
    %cst_165 = arith.constant dense<0.000000e+00> : vector<8x8xf32>
    %441 = tpu.matmul %439, %440, %cst_165 {dimension_numbers = #tpu.dot_dimension_numbers<[1], [0], [0], [1], [0, 0, 1, 1], [], []>} : vector<8x8xf32>, vector<8x8xf32>, vector<8x8xf32> -> vector<8x8xf32>
    %442 = vector.extract_strided_slice %369 {offsets = [8, 0], sizes = [8, 32], strides = [1, 1]} : vector<32x32xf32> to vector<8x32xf32>
    %cst_166 = arith.constant dense<0.000000e+00> : vector<8x32xf32>
    %443 = tpu.matmul %441, %442, %cst_166 {dimension_numbers = #tpu.dot_dimension_numbers<[1], [0], [0], [1], [0, 0, 1, 1], [], []>} : vector<8x8xf32>, vector<8x32xf32>, vector<8x32xf32> -> vector<8x32xf32>
    %444 = arith.addf %425, %443 : vector<8x32xf32>
    %445 = vector.extract_strided_slice %405 {offsets = [0, 16], sizes = [8, 8], strides = [1, 1]} : vector<8x32xf32> to vector<8x8xf32>
    %446 = vector.extract_strided_slice %402 {offsets = [0, 16], sizes = [8, 8], strides = [1, 1]} : vector<8x32xf32> to vector<8x8xf32>
    %cst_167 = arith.constant dense<0.000000e+00> : vector<8x8xf32>
    %447 = tpu.matmul %445, %446, %cst_167 {dimension_numbers = #tpu.dot_dimension_numbers<[1], [1], [0], [0], [0, 0, 1, 0], [], []>} : vector<8x8xf32>, vector<8x8xf32>, vector<8x8xf32> -> vector<8x8xf32>
    %448 = arith.addf %447, %9 : vector<8x8xf32>
    %cst_168 = arith.constant dense<0xFF800000> : vector<8xf32>
    %449 = vector.multi_reduction <maximumf>, %448, %cst_168 [1] : vector<8x8xf32> to vector<8xf32>
    %450 = vector.shape_cast %449 : vector<8xf32> to vector<8x1xf32>
    %451 = vector.broadcast %450 : vector<8x1xf32> to vector<8x8xf32>
    %452 = arith.subf %448, %451 : vector<8x8xf32>
    %453 = math.exp %452 : vector<8x8xf32>
    %cst_169 = arith.constant dense<0.000000e+00> : vector<8xf32>
    %454 = vector.multi_reduction <add>, %453, %cst_169 [1] : vector<8x8xf32> to vector<8xf32>
    %455 = vector.shape_cast %454 : vector<8xf32> to vector<8x1xf32>
    %456 = tpu.reciprocal %455 {approx = true} : vector<8x1xf32> -> vector<8x1xf32>
    %457 = vector.broadcast %456 : vector<8x1xf32> to vector<8x8xf32>
    %458 = arith.mulf %453, %457 : vector<8x8xf32>
    %459 = vector.extract_strided_slice %403 {offsets = [0, 16], sizes = [8, 8], strides = [1, 1]} : vector<8x32xf32> to vector<8x8xf32>
    %cst_170 = arith.constant dense<0.000000e+00> : vector<8x8xf32>
    %460 = tpu.matmul %458, %459, %cst_170 {dimension_numbers = #tpu.dot_dimension_numbers<[1], [0], [0], [1], [0, 0, 1, 1], [], []>} : vector<8x8xf32>, vector<8x8xf32>, vector<8x8xf32> -> vector<8x8xf32>
    %461 = vector.extract_strided_slice %369 {offsets = [16, 0], sizes = [8, 32], strides = [1, 1]} : vector<32x32xf32> to vector<8x32xf32>
    %cst_171 = arith.constant dense<0.000000e+00> : vector<8x32xf32>
    %462 = tpu.matmul %460, %461, %cst_171 {dimension_numbers = #tpu.dot_dimension_numbers<[1], [0], [0], [1], [0, 0, 1, 1], [], []>} : vector<8x8xf32>, vector<8x32xf32>, vector<8x32xf32> -> vector<8x32xf32>
    %463 = arith.addf %444, %462 : vector<8x32xf32>
    %464 = vector.extract_strided_slice %405 {offsets = [0, 24], sizes = [8, 8], strides = [1, 1]} : vector<8x32xf32> to vector<8x8xf32>
    %465 = vector.extract_strided_slice %402 {offsets = [0, 24], sizes = [8, 8], strides = [1, 1]} : vector<8x32xf32> to vector<8x8xf32>
    %cst_172 = arith.constant dense<0.000000e+00> : vector<8x8xf32>
    %466 = tpu.matmul %464, %465, %cst_172 {dimension_numbers = #tpu.dot_dimension_numbers<[1], [1], [0], [0], [0, 0, 1, 0], [], []>} : vector<8x8xf32>, vector<8x8xf32>, vector<8x8xf32> -> vector<8x8xf32>
    %467 = arith.addf %466, %9 : vector<8x8xf32>
    %cst_173 = arith.constant dense<0xFF800000> : vector<8xf32>
    %468 = vector.multi_reduction <maximumf>, %467, %cst_173 [1] : vector<8x8xf32> to vector<8xf32>
    %469 = vector.shape_cast %468 : vector<8xf32> to vector<8x1xf32>
    %470 = vector.broadcast %469 : vector<8x1xf32> to vector<8x8xf32>
    %471 = arith.subf %467, %470 : vector<8x8xf32>
    %472 = math.exp %471 : vector<8x8xf32>
    %cst_174 = arith.constant dense<0.000000e+00> : vector<8xf32>
    %473 = vector.multi_reduction <add>, %472, %cst_174 [1] : vector<8x8xf32> to vector<8xf32>
    %474 = vector.shape_cast %473 : vector<8xf32> to vector<8x1xf32>
    %475 = tpu.reciprocal %474 {approx = true} : vector<8x1xf32> -> vector<8x1xf32>
    %476 = vector.broadcast %475 : vector<8x1xf32> to vector<8x8xf32>
    %477 = arith.mulf %472, %476 : vector<8x8xf32>
    %478 = vector.extract_strided_slice %403 {offsets = [0, 24], sizes = [8, 8], strides = [1, 1]} : vector<8x32xf32> to vector<8x8xf32>
    %cst_175 = arith.constant dense<0.000000e+00> : vector<8x8xf32>
    %479 = tpu.matmul %477, %478, %cst_175 {dimension_numbers = #tpu.dot_dimension_numbers<[1], [0], [0], [1], [0, 0, 1, 1], [], []>} : vector<8x8xf32>, vector<8x8xf32>, vector<8x8xf32> -> vector<8x8xf32>
    %480 = vector.extract_strided_slice %369 {offsets = [24, 0], sizes = [8, 32], strides = [1, 1]} : vector<32x32xf32> to vector<8x32xf32>
    %cst_176 = arith.constant dense<0.000000e+00> : vector<8x32xf32>
    %481 = tpu.matmul %479, %480, %cst_176 {dimension_numbers = #tpu.dot_dimension_numbers<[1], [0], [0], [1], [0, 0, 1, 1], [], []>} : vector<8x8xf32>, vector<8x32xf32>, vector<8x32xf32> -> vector<8x32xf32>
    %482 = arith.addf %463, %481 : vector<8x32xf32>
    %483 = vector.broadcast %356 : vector<1x32xf32> to vector<8x32xf32>
    %484 = arith.addf %482, %483 : vector<8x32xf32>
    %485 = arith.addf %342, %484 : vector<8x32xf32>
    %cst_177 = arith.constant dense<0.000000e+00> : vector<8xf32>
    %486 = vector.multi_reduction <add>, %485, %cst_177 [1] : vector<8x32xf32> to vector<8xf32>
    %487 = vector.shape_cast %486 : vector<8xf32> to vector<8x1xf32>
    %cst_178 = arith.constant 3.200000e+01 : f32
    %488 = vector.broadcast %cst_178 : f32 to vector<8x1xf32>
    %489 = arith.divf %487, %488 : vector<8x1xf32>
    %490 = vector.broadcast %489 : vector<8x1xf32> to vector<8x32xf32>
    %491 = arith.subf %485, %490 : vector<8x32xf32>
    %492 = arith.mulf %491, %491 : vector<8x32xf32>
    %cst_179 = arith.constant dense<0.000000e+00> : vector<8xf32>
    %493 = vector.multi_reduction <add>, %492, %cst_179 [1] : vector<8x32xf32> to vector<8xf32>
    %494 = vector.shape_cast %493 : vector<8xf32> to vector<8x1xf32>
    %cst_180 = arith.constant 3.200000e+01 : f32
    %495 = vector.broadcast %cst_180 : f32 to vector<8x1xf32>
    %496 = arith.divf %494, %495 : vector<8x1xf32>
    %497 = vector.broadcast %489 : vector<8x1xf32> to vector<8x32xf32>
    %498 = arith.subf %485, %497 : vector<8x32xf32>
    %cst_181 = arith.constant 9.99999974E-6 : f32
    %499 = vector.broadcast %cst_181 : f32 to vector<8x1xf32>
    %500 = arith.addf %496, %499 : vector<8x1xf32>
    %501 = math.rsqrt %500 : vector<8x1xf32>
    %502 = vector.broadcast %501 : vector<8x1xf32> to vector<8x32xf32>
    %503 = arith.mulf %498, %502 : vector<8x32xf32>
    %504 = vector.broadcast %347 : vector<1x32xf32> to vector<8x32xf32>
    %505 = arith.mulf %503, %504 : vector<8x32xf32>
    %506 = vector.broadcast %348 : vector<1x32xf32> to vector<8x32xf32>
    %507 = arith.addf %505, %506 : vector<8x32xf32>
    %cst_182 = arith.constant dense<0.000000e+00> : vector<8x64xf32>
    %508 = tpu.matmul %507, %365, %cst_182 {dimension_numbers = #tpu.dot_dimension_numbers<[1], [0], [0], [1], [0, 0, 1, 1], [], []>} : vector<8x32xf32>, vector<32x64xf32>, vector<8x64xf32> -> vector<8x64xf32>
    %509 = vector.broadcast %355 : vector<1x64xf32> to vector<8x64xf32>
    %510 = arith.addf %508, %509 : vector<8x64xf32>
    %cst_183 = arith.constant dense<0.000000e+00> : vector<8x96xf32>
    %511 = tpu.matmul %3, %363, %cst_183 {dimension_numbers = #tpu.dot_dimension_numbers<[1], [0], [0], [1], [0, 0, 1, 1], [], []>} : vector<8x32xf32>, vector<32x96xf32>, vector<8x96xf32> -> vector<8x96xf32>
    %512 = vector.broadcast %354 : vector<1x96xf32> to vector<8x96xf32>
    %513 = arith.addf %511, %512 : vector<8x96xf32>
    %514 = vector.extract_strided_slice %510 {offsets = [0, 0], sizes = [8, 32], strides = [1, 1]} : vector<8x64xf32> to vector<8x32xf32>
    %515 = vector.extract_strided_slice %513 {offsets = [0, 0], sizes = [8, 32], strides = [1, 1]} : vector<8x96xf32> to vector<8x32xf32>
    %516 = vector.extract_strided_slice %513 {offsets = [0, 32], sizes = [8, 32], strides = [1, 1]} : vector<8x96xf32> to vector<8x32xf32>
    %cst_184 = arith.constant 0.353553385 : f32
    %517 = vector.broadcast %cst_184 : f32 to vector<8x32xf32>
    %518 = arith.mulf %514, %517 : vector<8x32xf32>
    %cst_185 = arith.constant 0.000000e+00 : f32
    %519 = vector.broadcast %cst_185 : f32 to vector<8x32xf32>
    %520 = vector.extract_strided_slice %518 {offsets = [0, 0], sizes = [8, 8], strides = [1, 1]} : vector<8x32xf32> to vector<8x8xf32>
    %521 = vector.extract_strided_slice %515 {offsets = [0, 0], sizes = [8, 8], strides = [1, 1]} : vector<8x32xf32> to vector<8x8xf32>
    %cst_186 = arith.constant dense<0.000000e+00> : vector<8x8xf32>
    %522 = tpu.matmul %520, %521, %cst_186 {dimension_numbers = #tpu.dot_dimension_numbers<[1], [1], [0], [0], [0, 0, 1, 0], [], []>} : vector<8x8xf32>, vector<8x8xf32>, vector<8x8xf32> -> vector<8x8xf32>
    %cst_187 = arith.constant dense<0xFF800000> : vector<8xf32>
    %523 = vector.multi_reduction <maximumf>, %522, %cst_187 [1] : vector<8x8xf32> to vector<8xf32>
    %524 = vector.shape_cast %523 : vector<8xf32> to vector<8x1xf32>
    %525 = vector.broadcast %524 : vector<8x1xf32> to vector<8x8xf32>
    %526 = arith.subf %522, %525 : vector<8x8xf32>
    %527 = math.exp %526 : vector<8x8xf32>
    %cst_188 = arith.constant dense<0.000000e+00> : vector<8xf32>
    %528 = vector.multi_reduction <add>, %527, %cst_188 [1] : vector<8x8xf32> to vector<8xf32>
    %529 = vector.shape_cast %528 : vector<8xf32> to vector<8x1xf32>
    %530 = tpu.reciprocal %529 {approx = true} : vector<8x1xf32> -> vector<8x1xf32>
    %531 = vector.broadcast %530 : vector<8x1xf32> to vector<8x8xf32>
    %532 = arith.mulf %527, %531 : vector<8x8xf32>
    %533 = vector.extract_strided_slice %516 {offsets = [0, 0], sizes = [8, 8], strides = [1, 1]} : vector<8x32xf32> to vector<8x8xf32>
    %cst_189 = arith.constant dense<0.000000e+00> : vector<8x8xf32>
    %534 = tpu.matmul %532, %533, %cst_189 {dimension_numbers = #tpu.dot_dimension_numbers<[1], [0], [0], [1], [0, 0, 1, 1], [], []>} : vector<8x8xf32>, vector<8x8xf32>, vector<8x8xf32> -> vector<8x8xf32>
    %535 = vector.extract_strided_slice %371 {offsets = [0, 0], sizes = [8, 32], strides = [1, 1]} : vector<32x32xf32> to vector<8x32xf32>
    %cst_190 = arith.constant dense<0.000000e+00> : vector<8x32xf32>
    %536 = tpu.matmul %534, %535, %cst_190 {dimension_numbers = #tpu.dot_dimension_numbers<[1], [0], [0], [1], [0, 0, 1, 1], [], []>} : vector<8x8xf32>, vector<8x32xf32>, vector<8x32xf32> -> vector<8x32xf32>
    %537 = arith.addf %519, %536 : vector<8x32xf32>
    %538 = vector.extract_strided_slice %518 {offsets = [0, 8], sizes = [8, 8], strides = [1, 1]} : vector<8x32xf32> to vector<8x8xf32>
    %539 = vector.extract_strided_slice %515 {offsets = [0, 8], sizes = [8, 8], strides = [1, 1]} : vector<8x32xf32> to vector<8x8xf32>
    %cst_191 = arith.constant dense<0.000000e+00> : vector<8x8xf32>
    %540 = tpu.matmul %538, %539, %cst_191 {dimension_numbers = #tpu.dot_dimension_numbers<[1], [1], [0], [0], [0, 0, 1, 0], [], []>} : vector<8x8xf32>, vector<8x8xf32>, vector<8x8xf32> -> vector<8x8xf32>
    %cst_192 = arith.constant dense<0xFF800000> : vector<8xf32>
    %541 = vector.multi_reduction <maximumf>, %540, %cst_192 [1] : vector<8x8xf32> to vector<8xf32>
    %542 = vector.shape_cast %541 : vector<8xf32> to vector<8x1xf32>
    %543 = vector.broadcast %542 : vector<8x1xf32> to vector<8x8xf32>
    %544 = arith.subf %540, %543 : vector<8x8xf32>
    %545 = math.exp %544 : vector<8x8xf32>
    %cst_193 = arith.constant dense<0.000000e+00> : vector<8xf32>
    %546 = vector.multi_reduction <add>, %545, %cst_193 [1] : vector<8x8xf32> to vector<8xf32>
    %547 = vector.shape_cast %546 : vector<8xf32> to vector<8x1xf32>
    %548 = tpu.reciprocal %547 {approx = true} : vector<8x1xf32> -> vector<8x1xf32>
    %549 = vector.broadcast %548 : vector<8x1xf32> to vector<8x8xf32>
    %550 = arith.mulf %545, %549 : vector<8x8xf32>
    %551 = vector.extract_strided_slice %516 {offsets = [0, 8], sizes = [8, 8], strides = [1, 1]} : vector<8x32xf32> to vector<8x8xf32>
    %cst_194 = arith.constant dense<0.000000e+00> : vector<8x8xf32>
    %552 = tpu.matmul %550, %551, %cst_194 {dimension_numbers = #tpu.dot_dimension_numbers<[1], [0], [0], [1], [0, 0, 1, 1], [], []>} : vector<8x8xf32>, vector<8x8xf32>, vector<8x8xf32> -> vector<8x8xf32>
    %553 = vector.extract_strided_slice %371 {offsets = [8, 0], sizes = [8, 32], strides = [1, 1]} : vector<32x32xf32> to vector<8x32xf32>
    %cst_195 = arith.constant dense<0.000000e+00> : vector<8x32xf32>
    %554 = tpu.matmul %552, %553, %cst_195 {dimension_numbers = #tpu.dot_dimension_numbers<[1], [0], [0], [1], [0, 0, 1, 1], [], []>} : vector<8x8xf32>, vector<8x32xf32>, vector<8x32xf32> -> vector<8x32xf32>
    %555 = arith.addf %537, %554 : vector<8x32xf32>
    %556 = vector.extract_strided_slice %518 {offsets = [0, 16], sizes = [8, 8], strides = [1, 1]} : vector<8x32xf32> to vector<8x8xf32>
    %557 = vector.extract_strided_slice %515 {offsets = [0, 16], sizes = [8, 8], strides = [1, 1]} : vector<8x32xf32> to vector<8x8xf32>
    %cst_196 = arith.constant dense<0.000000e+00> : vector<8x8xf32>
    %558 = tpu.matmul %556, %557, %cst_196 {dimension_numbers = #tpu.dot_dimension_numbers<[1], [1], [0], [0], [0, 0, 1, 0], [], []>} : vector<8x8xf32>, vector<8x8xf32>, vector<8x8xf32> -> vector<8x8xf32>
    %cst_197 = arith.constant dense<0xFF800000> : vector<8xf32>
    %559 = vector.multi_reduction <maximumf>, %558, %cst_197 [1] : vector<8x8xf32> to vector<8xf32>
    %560 = vector.shape_cast %559 : vector<8xf32> to vector<8x1xf32>
    %561 = vector.broadcast %560 : vector<8x1xf32> to vector<8x8xf32>
    %562 = arith.subf %558, %561 : vector<8x8xf32>
    %563 = math.exp %562 : vector<8x8xf32>
    %cst_198 = arith.constant dense<0.000000e+00> : vector<8xf32>
    %564 = vector.multi_reduction <add>, %563, %cst_198 [1] : vector<8x8xf32> to vector<8xf32>
    %565 = vector.shape_cast %564 : vector<8xf32> to vector<8x1xf32>
    %566 = tpu.reciprocal %565 {approx = true} : vector<8x1xf32> -> vector<8x1xf32>
    %567 = vector.broadcast %566 : vector<8x1xf32> to vector<8x8xf32>
    %568 = arith.mulf %563, %567 : vector<8x8xf32>
    %569 = vector.extract_strided_slice %516 {offsets = [0, 16], sizes = [8, 8], strides = [1, 1]} : vector<8x32xf32> to vector<8x8xf32>
    %cst_199 = arith.constant dense<0.000000e+00> : vector<8x8xf32>
    %570 = tpu.matmul %568, %569, %cst_199 {dimension_numbers = #tpu.dot_dimension_numbers<[1], [0], [0], [1], [0, 0, 1, 1], [], []>} : vector<8x8xf32>, vector<8x8xf32>, vector<8x8xf32> -> vector<8x8xf32>
    %571 = vector.extract_strided_slice %371 {offsets = [16, 0], sizes = [8, 32], strides = [1, 1]} : vector<32x32xf32> to vector<8x32xf32>
    %cst_200 = arith.constant dense<0.000000e+00> : vector<8x32xf32>
    %572 = tpu.matmul %570, %571, %cst_200 {dimension_numbers = #tpu.dot_dimension_numbers<[1], [0], [0], [1], [0, 0, 1, 1], [], []>} : vector<8x8xf32>, vector<8x32xf32>, vector<8x32xf32> -> vector<8x32xf32>
    %573 = arith.addf %555, %572 : vector<8x32xf32>
    %574 = vector.extract_strided_slice %518 {offsets = [0, 24], sizes = [8, 8], strides = [1, 1]} : vector<8x32xf32> to vector<8x8xf32>
    %575 = vector.extract_strided_slice %515 {offsets = [0, 24], sizes = [8, 8], strides = [1, 1]} : vector<8x32xf32> to vector<8x8xf32>
    %cst_201 = arith.constant dense<0.000000e+00> : vector<8x8xf32>
    %576 = tpu.matmul %574, %575, %cst_201 {dimension_numbers = #tpu.dot_dimension_numbers<[1], [1], [0], [0], [0, 0, 1, 0], [], []>} : vector<8x8xf32>, vector<8x8xf32>, vector<8x8xf32> -> vector<8x8xf32>
    %cst_202 = arith.constant dense<0xFF800000> : vector<8xf32>
    %577 = vector.multi_reduction <maximumf>, %576, %cst_202 [1] : vector<8x8xf32> to vector<8xf32>
    %578 = vector.shape_cast %577 : vector<8xf32> to vector<8x1xf32>
    %579 = vector.broadcast %578 : vector<8x1xf32> to vector<8x8xf32>
    %580 = arith.subf %576, %579 : vector<8x8xf32>
    %581 = math.exp %580 : vector<8x8xf32>
    %cst_203 = arith.constant dense<0.000000e+00> : vector<8xf32>
    %582 = vector.multi_reduction <add>, %581, %cst_203 [1] : vector<8x8xf32> to vector<8xf32>
    %583 = vector.shape_cast %582 : vector<8xf32> to vector<8x1xf32>
    %584 = tpu.reciprocal %583 {approx = true} : vector<8x1xf32> -> vector<8x1xf32>
    %585 = vector.broadcast %584 : vector<8x1xf32> to vector<8x8xf32>
    %586 = arith.mulf %581, %585 : vector<8x8xf32>
    %587 = vector.extract_strided_slice %516 {offsets = [0, 24], sizes = [8, 8], strides = [1, 1]} : vector<8x32xf32> to vector<8x8xf32>
    %cst_204 = arith.constant dense<0.000000e+00> : vector<8x8xf32>
    %588 = tpu.matmul %586, %587, %cst_204 {dimension_numbers = #tpu.dot_dimension_numbers<[1], [0], [0], [1], [0, 0, 1, 1], [], []>} : vector<8x8xf32>, vector<8x8xf32>, vector<8x8xf32> -> vector<8x8xf32>
    %589 = vector.extract_strided_slice %371 {offsets = [24, 0], sizes = [8, 32], strides = [1, 1]} : vector<32x32xf32> to vector<8x32xf32>
    %cst_205 = arith.constant dense<0.000000e+00> : vector<8x32xf32>
    %590 = tpu.matmul %588, %589, %cst_205 {dimension_numbers = #tpu.dot_dimension_numbers<[1], [0], [0], [1], [0, 0, 1, 1], [], []>} : vector<8x8xf32>, vector<8x32xf32>, vector<8x32xf32> -> vector<8x32xf32>
    %591 = arith.addf %573, %590 : vector<8x32xf32>
    %592 = vector.broadcast %357 : vector<1x32xf32> to vector<8x32xf32>
    %593 = arith.addf %591, %592 : vector<8x32xf32>
    %594 = vector.extract_strided_slice %513 {offsets = [0, 64], sizes = [8, 32], strides = [1, 1]} : vector<8x96xf32> to vector<8x32xf32>
    %595 = arith.negf %594 : vector<8x32xf32>
    %596 = math.exp %595 : vector<8x32xf32>
    %cst_206 = arith.constant 1.000000e+00 : f32
    %597 = vector.broadcast %cst_206 : f32 to vector<8x32xf32>
    %598 = arith.addf %597, %596 : vector<8x32xf32>
    %599 = arith.divf %597, %598 : vector<8x32xf32>
    %cst_207 = arith.constant 1.000000e+00 : f32
    %600 = vector.broadcast %cst_207 : f32 to vector<8x32xf32>
    %601 = arith.addf %600, %599 : vector<8x32xf32>
    %602 = arith.mulf %593, %601 : vector<8x32xf32>
    %603 = vector.extract_strided_slice %510 {offsets = [0, 32], sizes = [8, 32], strides = [1, 1]} : vector<8x64xf32> to vector<8x32xf32>
    %cst_208 = arith.constant dense<0.000000e+00> : vector<8x32xf32>
    %604 = tpu.matmul %602, %373, %cst_208 {dimension_numbers = #tpu.dot_dimension_numbers<[1], [0], [0], [1], [0, 0, 1, 1], [], []>} : vector<8x32xf32>, vector<32x32xf32>, vector<8x32xf32> -> vector<8x32xf32>
    %605 = arith.addf %603, %604 : vector<8x32xf32>
    %606 = arith.negf %605 : vector<8x32xf32>
    %607 = math.exp %606 : vector<8x32xf32>
    %cst_209 = arith.constant 1.000000e+00 : f32
    %608 = vector.broadcast %cst_209 : f32 to vector<8x32xf32>
    %609 = arith.addf %608, %607 : vector<8x32xf32>
    %610 = arith.divf %608, %609 : vector<8x32xf32>
    %611 = arith.mulf %610, %507 : vector<8x32xf32>
    %cst_210 = arith.constant 1.000000e+00 : f32
    %612 = vector.broadcast %cst_210 : f32 to vector<8x32xf32>
    %613 = arith.subf %612, %610 : vector<8x32xf32>
    %614 = arith.mulf %613, %602 : vector<8x32xf32>
    %615 = arith.addf %611, %614 : vector<8x32xf32>
    %cst_211 = arith.constant dense<0.000000e+00> : vector<8xf32>
    %616 = vector.multi_reduction <add>, %615, %cst_211 [1] : vector<8x32xf32> to vector<8xf32>
    %617 = vector.shape_cast %616 : vector<8xf32> to vector<8x1xf32>
    %cst_212 = arith.constant 3.200000e+01 : f32
    %618 = vector.broadcast %cst_212 : f32 to vector<8x1xf32>
    %619 = arith.divf %617, %618 : vector<8x1xf32>
    %620 = vector.broadcast %619 : vector<8x1xf32> to vector<8x32xf32>
    %621 = arith.subf %615, %620 : vector<8x32xf32>
    %622 = arith.mulf %621, %621 : vector<8x32xf32>
    %cst_213 = arith.constant dense<0.000000e+00> : vector<8xf32>
    %623 = vector.multi_reduction <add>, %622, %cst_213 [1] : vector<8x32xf32> to vector<8xf32>
    %624 = vector.shape_cast %623 : vector<8xf32> to vector<8x1xf32>
    %cst_214 = arith.constant 3.200000e+01 : f32
    %625 = vector.broadcast %cst_214 : f32 to vector<8x1xf32>
    %626 = arith.divf %624, %625 : vector<8x1xf32>
    %627 = vector.broadcast %619 : vector<8x1xf32> to vector<8x32xf32>
    %628 = arith.subf %615, %627 : vector<8x32xf32>
    %cst_215 = arith.constant 9.99999974E-6 : f32
    %629 = vector.broadcast %cst_215 : f32 to vector<8x1xf32>
    %630 = arith.addf %626, %629 : vector<8x1xf32>
    %631 = math.rsqrt %630 : vector<8x1xf32>
    %632 = vector.broadcast %631 : vector<8x1xf32> to vector<8x32xf32>
    %633 = arith.mulf %628, %632 : vector<8x32xf32>
    %634 = vector.broadcast %351 : vector<1x32xf32> to vector<8x32xf32>
    %635 = arith.mulf %633, %634 : vector<8x32xf32>
    %636 = vector.broadcast %352 : vector<1x32xf32> to vector<8x32xf32>
    %637 = arith.addf %635, %636 : vector<8x32xf32>
    %638 = arith.addf %485, %637 : vector<8x32xf32>
    %cst_216 = arith.constant dense<0.000000e+00> : vector<8xf32>
    %639 = vector.multi_reduction <add>, %638, %cst_216 [1] : vector<8x32xf32> to vector<8xf32>
    %640 = vector.shape_cast %639 : vector<8xf32> to vector<8x1xf32>
    %cst_217 = arith.constant 3.200000e+01 : f32
    %641 = vector.broadcast %cst_217 : f32 to vector<8x1xf32>
    %642 = arith.divf %640, %641 : vector<8x1xf32>
    %643 = vector.broadcast %642 : vector<8x1xf32> to vector<8x32xf32>
    %644 = arith.subf %638, %643 : vector<8x32xf32>
    %645 = arith.mulf %644, %644 : vector<8x32xf32>
    %cst_218 = arith.constant dense<0.000000e+00> : vector<8xf32>
    %646 = vector.multi_reduction <add>, %645, %cst_218 [1] : vector<8x32xf32> to vector<8xf32>
    %647 = vector.shape_cast %646 : vector<8xf32> to vector<8x1xf32>
    %cst_219 = arith.constant 3.200000e+01 : f32
    %648 = vector.broadcast %cst_219 : f32 to vector<8x1xf32>
    %649 = arith.divf %647, %648 : vector<8x1xf32>
    %650 = vector.broadcast %642 : vector<8x1xf32> to vector<8x32xf32>
    %651 = arith.subf %638, %650 : vector<8x32xf32>
    %cst_220 = arith.constant 9.99999974E-6 : f32
    %652 = vector.broadcast %cst_220 : f32 to vector<8x1xf32>
    %653 = arith.addf %649, %652 : vector<8x1xf32>
    %654 = math.rsqrt %653 : vector<8x1xf32>
    %655 = vector.broadcast %654 : vector<8x1xf32> to vector<8x32xf32>
    %656 = arith.mulf %651, %655 : vector<8x32xf32>
    %657 = vector.broadcast %349 : vector<1x32xf32> to vector<8x32xf32>
    %658 = arith.mulf %656, %657 : vector<8x32xf32>
    %659 = vector.broadcast %350 : vector<1x32xf32> to vector<8x32xf32>
    %660 = arith.addf %658, %659 : vector<8x32xf32>
    %cst_221 = arith.constant dense<0.000000e+00> : vector<8x64xf32>
    %661 = tpu.matmul %660, %367, %cst_221 {dimension_numbers = #tpu.dot_dimension_numbers<[1], [0], [0], [1], [0, 0, 1, 1], [], []>} : vector<8x32xf32>, vector<32x64xf32>, vector<8x64xf32> -> vector<8x64xf32>
    %662 = vector.broadcast %358 : vector<1x64xf32> to vector<8x64xf32>
    %663 = arith.addf %661, %662 : vector<8x64xf32>
    %cst_222 = arith.constant 5.000000e-01 : f32
    %664 = vector.broadcast %cst_222 : f32 to vector<8x64xf32>
    %665 = arith.mulf %664, %663 : vector<8x64xf32>
    %cst_223 = arith.constant 0.707106769 : f32
    %666 = vector.broadcast %cst_223 : f32 to vector<8x64xf32>
    %667 = arith.mulf %663, %666 : vector<8x64xf32>
    %668 = math.erf %667 : vector<8x64xf32>
    %cst_224 = arith.constant 1.000000e+00 : f32
    %669 = vector.broadcast %cst_224 : f32 to vector<8x64xf32>
    %670 = arith.addf %669, %668 : vector<8x64xf32>
    %671 = arith.mulf %665, %670 : vector<8x64xf32>
    %cst_225 = arith.constant dense<0.000000e+00> : vector<8x32xf32>
    %672 = tpu.matmul %671, %375, %cst_225 {dimension_numbers = #tpu.dot_dimension_numbers<[1], [0], [0], [1], [0, 0, 1, 1], [], []>} : vector<8x64xf32>, vector<64x32xf32>, vector<8x32xf32> -> vector<8x32xf32>
    %673 = arith.addf %638, %672 : vector<8x32xf32>
    %674 = vector.broadcast %359 : vector<1x32xf32> to vector<8x32xf32>
    %675 = arith.addf %673, %674 : vector<8x32xf32>
    %c0_226 = arith.constant 0 : index
    %c0_227 = arith.constant 0 : index
    %c0_228 = arith.constant 0 : index
    %676 = vector.load %arg8[%c0_226, %c0_227, %c0_228] : memref<1x8x32xf32, #tpu.memory_space<vmem>>, vector<1x8x32xf32>
    %677 = vector.shape_cast %676 : vector<1x8x32xf32> to vector<8x32xf32>
    %678 = vector.shape_cast %675 : vector<8x32xf32> to vector<1x8x32xf32>
    tpu.vector_store %arg8[%c0_226, %c0_227, %c0_228], %678 {strides = array<i32>} : memref<1x8x32xf32, #tpu.memory_space<vmem>>, vector<1x8x32xf32>,
    return
  }
  func.func @transform_0(%arg0: i32) -> (i32, i32, i32) {
    %c0_i32 = arith.constant 0 : i32
    %c0_i32_0 = arith.constant 0 : i32
    %c0_i32_1 = arith.constant 0 : i32
    return %arg0, %c0_i32, %c0_i32_0 : i32, i32, i32
  }
  func.func @transform_1(%arg0: i32) -> (i32, i32, i32) {
    %c0_i32 = arith.constant 0 : i32
    %c0_i32_0 = arith.constant 0 : i32
    %c0_i32_1 = arith.constant 0 : i32
    return %arg0, %c0_i32, %c0_i32_0 : i32, i32, i32
  }
  func.func @transform_2(%arg0: i32) -> (i32, i32, i32) {
    %c0_i32 = arith.constant 0 : i32
    %c0_i32_0 = arith.constant 0 : i32
    %c0_i32_1 = arith.constant 0 : i32
    %c0_i32_2 = arith.constant 0 : i32
    return %c0_i32, %c0_i32_0, %c0_i32_1 : i32, i32, i32
  }
  func.func @transform_3(%arg0: i32) -> (i32, i32, i32, i32) {
    %c0_i32 = arith.constant 0 : i32
    %c0_i32_0 = arith.constant 0 : i32
    %c0_i32_1 = arith.constant 0 : i32
    %c0_i32_2 = arith.constant 0 : i32
    %c0_i32_3 = arith.constant 0 : i32
    return %c0_i32, %c0_i32_0, %c0_i32_1, %c0_i32_2 : i32, i32, i32, i32
  }
  func.func @transform_4(%arg0: i32) -> (i32, i32, i32, i32) {
    %c0_i32 = arith.constant 0 : i32
    %c0_i32_0 = arith.constant 0 : i32
    %c0_i32_1 = arith.constant 0 : i32
    %c0_i32_2 = arith.constant 0 : i32
    %c0_i32_3 = arith.constant 0 : i32
    return %c0_i32, %c0_i32_0, %c0_i32_1, %c0_i32_2 : i32, i32, i32, i32
  }
  func.func @transform_5(%arg0: i32) -> (i32, i32, i32, i32) {
    %c0_i32 = arith.constant 0 : i32
    %c0_i32_0 = arith.constant 0 : i32
    %c0_i32_1 = arith.constant 0 : i32
    %c0_i32_2 = arith.constant 0 : i32
    %c0_i32_3 = arith.constant 0 : i32
    return %c0_i32, %c0_i32_0, %c0_i32_1, %c0_i32_2 : i32, i32, i32, i32
  }
  func.func @transform_6(%arg0: i32) -> (i32, i32, i32) {
    %c0_i32 = arith.constant 0 : i32
    %c0_i32_0 = arith.constant 0 : i32
    %c0_i32_1 = arith.constant 0 : i32
    %c0_i32_2 = arith.constant 0 : i32
    return %c0_i32, %c0_i32_0, %c0_i32_1 : i32, i32, i32
  }
  func.func @transform_7(%arg0: i32) -> (i32, i32, i32) {
    %c0_i32 = arith.constant 0 : i32
    %c0_i32_0 = arith.constant 0 : i32
    %c0_i32_1 = arith.constant 0 : i32
    return %arg0, %c0_i32, %c0_i32_0 : i32, i32, i32
  }
}

</mosaic_0001>

<bundles_post_ra>
// kernel: tpu_custom_call.1
= control target key start
LH: loop header
LB: loop body
LE: loop exit
PB: predicated region body
PF: predicated region fallthrough
CT: control target
= control target key end

     0   :  { %12 = vsyncpa [#allocation3], 0  ;;  %s7851_s0 = inlined_call_operand.vmem [shape: f32[2,8,32], index: 0, kind: input, shape index: {}]   ;;  %s7852_s1 = inlined_call_operand.hbm [shape: f32[2,8,32], index: 1, kind: input, shape index: {}]   ;;  %s7853_s2 = inlined_call_operand.hbm [shape: f32[2,16,128], index: 2, kind: input, shape index: {}]   ;;  %s7854_s3 = inlined_call_operand.hbm [shape: f32[2,2,32,96], index: 3, kind: input, shape index: {}]   ;;  %s7855_s4 = inlined_call_operand.hbm [shape: f32[2,2,32,64], index: 4, kind: input, shape index: {}]   ;;  %s7856_s5 = inlined_call_operand.vmem [shape: f32[2,3,32,32], index: 5, kind: input, shape index: {}]   ;;  %s7857_s6 = inlined_call_operand.vmem [shape: f32[2,64,32], index: 6, kind: input, shape index: {}]   ;;  %s7858_s7 = inlined_call_operand.hbm [shape: f32[2,8,32], index: 7, kind: output, shape index: {}]  }
   0x1   :  { %14 = vsyncpa [#allocation3 + $0x1], 0 }
   0x2   :  { %15 = vsyncpa [#allocation6], 0 }
   0x3   :  { %16 = vsyncpa [#allocation9], 0 }
   0x4   :  { %17 = vsyncpa [#allocation4], 0 }
   0x5   :  { %19 = vsyncpa [#allocation4 + $0x1], 0  ;;  %s6850_s24 = smov 0   ;;  %s6852_s25 = smov 0  }
   0x6   :  { %s6854_s26 = smov 0   ;;  %s6856_s27 = smov 0  }
   0x7 LB: > { %s6871_s28 = sadd.s32 4294967295, %s6786_s27   ;;  %s5639_s29 = sadd.s32 4294967294, %s6786_s27   ;;  %s6786_s27 = sphi %s6856_s27, %s7904_s27   ;;  %s6782_s26 = sphi %s6854_s26, %s7903_s26   ;;  %s6778_s25 = sphi %s6852_s25, %s7902_s25   ;;  %s6774_s24 = sphi %s6850_s24, %s7901_s24  }
   0x8   : > { %p71_p0 = scmp.ne.s32.totalorder %s6778_s25, %s6774_s24  ;;  %p7859_p1 = scmp.eq.s32.totalorder %s6871_s28, 0 }
   0x9   : > { %p206_p3 = scmp.eq.s32.totalorder %s5639_s29, 1  ;;  %p5640_p5 = scmp.ge.s32.totalorder %s6786_s27, 1 }
   0xa   : > { %p6880_p4 = por %p7859_p1, %p71_p0  ;;  %p213_p7 = scmp.lt.s32.totalorder %s6786_s27, 3 }
   0xb   : > { %p6885_p6 = por %p206_p3, %p71_p0  ;;  %s6788_s10 = smov [#allocation5]  }
   0xc   : > { %s7875_s30 = scalar_select %p6880_p4, 1, 0 }
   0xd   : > { %s7876_s8 = scalar_select %p6885_p6, 1, 0 }
   0xe   : > { %p6890_p8 = pnand %p5640_p5, %p213_p7  ;;  %s225_s11 = sshll.u32 %s6788_s10, 4  ;;  %s6894_s11 = int_to_ptr.vmem [resolvable:$true] %s225_s11 }
   0xf   : > { %7877 = sst [smem:[#allocation15_spill]] %s7876_s8  ;;  %s6789_s13 = smov [#allocation7]  }
  0x10   : > { %s7878_s9 = scalar_select %p6890_p8, 1, 0 }
  0x11   : > { %p6418_p9 = pneg %p6890_p8  ;;  %s238_s14 = sshll.u32 %s6789_s13, 4  ;;  %s6905_s14 = int_to_ptr.vmem [resolvable:$true] %s238_s14 }
  0x12   : > { %s6790_s15 = smov [#allocation8]   ;;  %s6598_s19 = scalar_lea.hbm %s7853_s2, 512 }
  0x13   : > { %p6901_p11 = pnand %p6418_p9, %p7859_p1  ;;  %s6907_s16 = sshll.u32 %s6790_s15, 4  ;;  %s252_s16 = int_to_ptr.vmem [resolvable:$true] %s6907_s16 }
  0x14   : > { %p6599_p12 = scmp.ne.s32.totalorder %s7853_s2, %s6598_s19  ;;  %p6605_p5 = scmp.lt.u32.totalorder %s6598_s19, %s7853_s2 }
  0x15   : > { %p6917_p13 = pneg %p6901_p11 }
  0x17   : > { %p6601_p0 = pnand %p6917_p13, %p6599_p12 }
  0x19   : > { %p6602_p3 = pneg %p6601_p0 }
  0x1b   : > { %p6607_p7 = pnand %p6605_p5, %p6602_p3 }
  0x1d   : > { %6610 = shalt.err (!%p6607_p7)
}
  0x1e   : > { %s6611_s10 = scalar_lea.vmem %s6894_s11, 512  ;;  %p6619_p2 = scmp.lt.s32.totalorder %s6894_s11, %s6894_s11 }
  0x1f   : > { %p6612_p9 = scmp.ne.s32.totalorder %s6894_s11, %s6611_s10  ;;  %p6620_p6 = scmp.lt.s32.totalorder %s6611_s10, %s6611_s10 }
  0x21   : > { %p6614_p10 = pnand %p6612_p9, %p6917_p13  ;;  %p6621_p12 = por %p6620_p6, %p6619_p2 }
  0x23   : > { %p6615_p1 = pneg %p6614_p10 }
  0x25   : > { %p6622_p0 = pnand %p6621_p12, %p6615_p1 }
  0x27   : > { %6625 = shalt.err (!%p6622_p0)
}
  0x28   : > { %s6791_s13 = smov 128   ;;  %s6792_s15 = smov 8  }
  0x29   : > { %6421 = dma.hbm_to_vmem [thread:$0]  (!%p6901_p11), %s7853_s2, 512, %s6894_s11, [#allocation6], %s6791_s13, %s6791_s13, %s6792_s15  }
  0x2a   : > { %s6626_s21 = scalar_lea.hbm %s7854_s3, 2048 }
  0x2b   : > { %p6627_p1 = scmp.ne.s32.totalorder %s7854_s3, %s6626_s21  ;;  %p6633_p10 = scmp.lt.u32.totalorder %s6626_s21, %s7854_s3 }
  0x2d   : > { %p6629_p2 = pnand %p6627_p1, %p6917_p13 }
  0x2f   : > { %p6630_p6 = pneg %p6629_p2 }
  0x31   : > { %p6635_p3 = pnand %p6633_p10, %p6630_p6 }
  0x33   : > { %6638 = shalt.err (!%p6635_p3)
}
  0x34   : > { %s6639_s11 = scalar_lea.vmem %s6905_s14, 2048  ;;  %p6647_p12 = scmp.lt.s32.totalorder %s6905_s14, %s6905_s14 }
  0x35   : > { %p6640_p5 = scmp.ne.s32.totalorder %s6905_s14, %s6639_s11  ;;  %p6648_p0 = scmp.lt.s32.totalorder %s6639_s11, %s6639_s11 }
  0x37   : > { %p6642_p7 = pnand %p6640_p5, %p6917_p13  ;;  %p6649_p1 = por %p6648_p0, %p6647_p12 }
  0x39   : > { %p6643_p9 = pneg %p6642_p7 }
  0x3b   : > { %p6650_p2 = pnand %p6649_p1, %p6643_p9 }
  0x3d   : > { %6653 = shalt.err (!%p6650_p2)
}
  0x3e   : > { %6424 = dma.hbm_to_vmem [thread:$0]  (!%p6901_p11), %s7854_s3, 2048, %s6905_s14, [#allocation6], %s6791_s13, %s6791_s13, %s6792_s15  }
  0x3f   : > { %s6654_s20 = scalar_lea.hbm %s7855_s4, 2048 }
  0x40   : > { %p6655_p6 = scmp.ne.s32.totalorder %s7855_s4, %s6654_s20  ;;  %p6661_p5 = scmp.lt.u32.totalorder %s6654_s20, %s7855_s4 }
  0x42   : > { %p6657_p10 = pnand %p6655_p6, %p6917_p13 }
  0x44   : > { %p6658_p3 = pneg %p6657_p10 }
  0x46   : > { %p6663_p7 = pnand %p6661_p5, %p6658_p3 }
  0x48   : > { %6666 = shalt.err (!%p6663_p7)
}
  0x49   : > { %s6667_s11 = scalar_lea.vmem %s252_s16, 2048  ;;  %p6675_p1 = scmp.lt.s32.totalorder %s252_s16, %s252_s16 }
  0x4a   : > { %p6668_p9 = scmp.ne.s32.totalorder %s252_s16, %s6667_s11  ;;  %p6676_p2 = scmp.lt.s32.totalorder %s6667_s11, %s6667_s11 }
  0x4c   : > { %p6670_p12 = pnand %p6668_p9, %p6917_p13  ;;  %p6677_p4 = por %p6676_p2, %p6675_p1 }
  0x4e   : > { %p6671_p0 = pneg %p6670_p12 }
  0x50   : > { %p6678_p8 = pnand %p6677_p4, %p6671_p0 }
  0x52   : > { %6681 = shalt.err (!%p6678_p8)
}
  0x53   : > { %6427 = dma.hbm_to_vmem [thread:$0]  (!%p6901_p11), %s7855_s4, 2048, %s252_s16, [#allocation9], %s6791_s13, %s6791_s13, %s6792_s15  }
  0x54   : > { %s6990_s22 = sadd.s32 1, %s6786_s27   ;;  %s58_s17 = sadd.s32 1, %s6782_s26 }
  0x55   : > { %s55_s12 = ssub.s32 %s6786_s27, %s6990_s22  ;;  %p65_p8 = scmp.ne.s32.totalorder %s6782_s26, %s6778_s25 }
  0x56   : > { %p56_p4 = scmp.eq.s32.totalorder %s55_s12, 0  ;;  %p66_p13 = scmp.eq.s32.totalorder %s6786_s27, 0 }
  0x57   : > { %p6439_p6 = scmp.lt.s32.totalorder %s6786_s27, 2  ;;  %p7881_p3 = scmp.eq.s32.totalorder %s6871_s28, 1 }
  0x58   : > { %s7000_s18 = scalar_select %p56_p4, %s6782_s26, %s58_s17  }
  0x59   : > { %p67_p10 = por %p66_p13, %p65_p8  ;;  %p7004_p5 = por %p7881_p3, %p65_p8 }
  0x5a   : > { %s278_s20 = sand.u32 1, %s6782_s26   ;;  %s5646_s21 = sshll.u32 %s6786_s27, 7 }
  0x5b   : > { %s5645_s16 = sshll.u32 %s278_s20, 3  ;;  %s7013_s23 = scalar_lea.hbm %s7852_s1, %s5646_s21 }
  0x5c   : > { %s282_s29 = scalar_lea.vmem [#allocation2], %s5645_s16  ;;  %p7015_p11 = pnand %p6439_p6, %p67_p10 }
  0x5d   : > { %s289_s10 = sshll.u32 %s282_s29, 4  ;;  %s279_s14 = scalar_lea.sflag [#allocation3], %s278_s20  ;;  %s7019_s10 = int_to_ptr.vmem [resolvable:$true] %s289_s10 }
  0x5e   : > { %s6682_s8 = scalar_lea.hbm %s7013_s23, 128  ;;  %p6684_p9 = pneg %p7015_p11 }
  0x5f   : > { %p6683_p7 = scmp.ne.s32.totalorder %s7013_s23, %s6682_s8  ;;  %s6687_s21 = scalar_lea.hbm %s7852_s1, 256 }
  0x60   : > { %p6688_p1 = scmp.lt.u32.totalorder %s7013_s23, %s7852_s1  ;;  %p6689_p2 = scmp.lt.u32.totalorder %s6687_s21, %s6682_s8 }
  0x61   : > { %p6685_p12 = pnand %p6684_p9, %p6683_p7  ;;  %p6691_p8 = scmp.lt.u32.totalorder %s6682_s8, %s7013_s23 }
  0x62   : > { %p6690_p4 = por %p6689_p2, %p6688_p1 }
  0x63   : > { %p6686_p0 = pneg %p6685_p12 }
  0x64   : > { %p6692_p13 = por %p6691_p8, %p6690_p4 }
  0x66   : > { %p6693_p6 = pnand %p6692_p13, %p6686_p0 }
  0x68   : > { %6696 = shalt.err (!%p6693_p6)
}
  0x69   : > { %s6697_s20 = scalar_lea.vmem %s7019_s10, 128  ;;  %s6793_s15 = smov [#allocation2]  }
  0x6a   : > { %p6698_p10 = scmp.ne.s32.totalorder %s7019_s10, %s6697_s20  ;;  %s6702_s29 = sshll.u32 %s6793_s15, 4  ;;  %s6703_s29 = int_to_ptr.vmem [resolvable:$false] %s6702_s29 }
  0x6b   : > { %s6704_s12 = scalar_lea.vmem %s6703_s29, 256  ;;  %p6705_p12 = scmp.lt.s32.totalorder %s7019_s10, %s6703_s29 }
  0x6c   : > { %p6700_p3 = pnand %p6698_p10, %p6684_p9  ;;  %p6706_p1 = scmp.lt.s32.totalorder %s6704_s12, %s6697_s20 }
  0x6e   : > { %p6701_p7 = pneg %p6700_p3  ;;  %p6707_p2 = por %p6706_p1, %p6705_p12 }
  0x70   : > { %p6708_p4 = pnand %p6707_p2, %p6701_p7 }
  0x72   : > { %6711 = shalt.err (!%p6708_p4)
}
  0x73   : > { %6431 = dma.hbm_to_vmem [thread:$0]  (!%p7015_p11), %s7013_s23, 128, %s7019_s10, %s279_s14  }
  0x74   : > { %p7884_p0 = scmp.ne.s32.totalorder %s7878_s9, 0 }
  0x75   : > { %s7049_s8 = sand.u32 (!%p7884_p0), 1, %s6778_s25   ;;  %p7885_p9 = scmp.ne.s32.totalorder (!%p7884_p0), %s7875_s30, 0 }
  0x76   : > { %298 = sbr.rel (%p7884_p0) target bundleno = 15226 (0x3b7a), region = 48  ;;  %s7863_s17 = sshll.u32 (!%p7884_p0), %s7049_s8, 3 }
  0x77   : > { %s301_s21 = scalar_lea.sflag (!%p7884_p0), [#allocation3], %s7049_s8  ;;  %s7055_s16 = scalar_lea.vmem (!%p7884_p0), [#allocation2], %s7863_s17 }
  0x7d   : > { %6757 = dma.done.wait (%p7885_p9), %s301_s21, 128  }
  0x7e   : > { %6759 = vsyncadd (%p7885_p9), %s301_s21, 4294967168  ;;  %p7886_p11 = scmp.eq.s32.totalorder %s6871_s28, 0 }
  0x80   : > { %6761 = dma.done.wait (%p7886_p11), [#allocation6], 2560   ;;  %p7887_p8 = pmov %p7886_p11 }
  0x82   : > { %6763 = vsyncadd (%p7887_p8), [#allocation6], 4294964736  ;;  %p7888_p13 = pmov %p7887_p8 }
  0x83   : > { %p7889_p6 = pmov %p7887_p8 }
  0x84   : > { %6765 = dma.done.wait (%p7888_p13), [#allocation9], 2048  }
  0x85   : > { %6767 = vsyncadd (%p7889_p6), [#allocation9], 4294965248  ;;  %p351_p10 = scmp.lt.s32.totalorder %s6871_s28, 1  ;;  %vm405_vm0 = vcmask 261120   ;;  %v365_v7 = vld [vmem:[#allocation7] sm:$0xff]  ;;  %v366_v8 = vld [vmem:[#allocation7 + $0x8] sm:$0xff]  ;;  %v357_v17 = vlaneseq }
  0x86   : > { %v367_v9 = vld [vmem:[#allocation7 + $0x10] sm:$0xff]  ;;  %v6794_v10 = vmov 0.0|0.0   ;;  %v6319_v11 = vpack.c.bf16 %v366_v8, %v365_v7  ;;  %v368_v12 = vld [vmem:[#allocation7 + $0x18] sm:$0xff]  ;;  %vm6795_vm1 = vmmov 0   ;;  %v6796_v13 = vmov 0.0   ;;  %v7093_v21 = vld [vmem:[#allocation5] sm:$0xff] }
  0x87   : > { %s352_s9 = scalar_select %p351_p10, %s6871_s28, 1  ;;  %6318 = vmatprep.subr.bf16.mxu1 %v6794_v10  ;;  %5938 = vmatprep.mubr.msk.f32.mxu1 %vm6795_vm1, %v6796_v13  ;;  %v6322_v14 = vpack.c.bf16 %v368_v12, %v367_v9  ;;  %v7088_v19 = vshrl.u32 %v357_v17, 7  ;;  %v7105_v29 = vld [vmem:[#allocation5 + $0x8] sm:$0xff]  ;;  %vm511_vm2 = vcmask 64512   ;;  %v360_v38 = vand.u32 127, %v357_v17  ;;  %v384_v58 = vld [vmem:[%s7856_s5 + $0x8] sm:$0xff] }
  0x88   : > { %5951 = vmatprep.subr.mxu0 %v6796_v13  ;;  %5953 = vmatprep.mubr.msk.f32.mxu0 %vm6795_vm1, %v6796_v13  ;;  %s6797_s14 = smov 96   ;;  %s6798_s13 = smov 120   ;;  %vm2859_vm4 = vcmask 523264  }
  0x89   : > { %s5653_s23 = sshll.u32 %s352_s9, 3  ;;  %6320 = vmatpush3.bf16.msra.mxu1 %v6319_v11  ;;  %v7091_v20 = vsub.s32 0, %v7088_v19  ;;  %v7096_v22 = vsub.s32 1, %v7088_v19  ;;  %s6799_s20 = smov 88   ;;  %vm361_vm3 = vcmp.gt.s32.totalorder %v360_v38, %v7088_v19 }
  0x8a   : > { %s354_s11 = scalar_lea.vmem %s7851_s0, %s5653_s23  ;;  %6321 = vmatprep.subr.bf16.mxu1 %v6794_v10  ;;  %v7133_v39 = vsel %vm361_vm3, -1e+30, %v6796_v13  ;;  %s7870_s15 = smov 56  }
  0x8b   : > { %v7074_v0 = vld [vmem:[%s354_s11] sm:$0xff]  ;;  %v423_v23 = vrot.slane %v7093_v21, %v7091_v20  ;;  %v428_v26 = vrot.slane %v7093_v21, %v7096_v22  ;;  %v433_v30 = vrot.slane %v7105_v29, %v7091_v20  ;;  %s6801_s29 = smov 64   ;;  %s7873_s12 = smov 80  }
  0x8c   : > { %v406_v1 = vsel %vm405_vm0, %v7074_v0, 0.0  ;;  %s7871_s21 = smov 112   ;;  %s7865_s11 = smov 48  }
  0x8d   : > { %407 = vadd.xlane.f32.xlu0 %v406_v1  ;;  %6323 = vmatpush3.bf16.msra.mxu1 %v6322_v14  ;;  %s7868_s9 = smov 104   ;;  %s7866_s23 = smov 72  }
  0x8e   : > { %5941 = vmatprep.subr.mxu1 %v6796_v13  ;;  %s7864_s10 = smov 40   ;;  %s6808_s17 = smov 32  }
  0x8f   : > { %s7896_s30 = smov 40  }
 0x11a   : > { %v408_v2 = vpop.xlane.xlu0 %407 }
 0x11b   : > { %v410_v3 = vmul.f32 0.03125, %v408_v2 }
 0x11d   : > { %v411_v4 = vsub.f32 %v7074_v0, %v410_v3 }
 0x11f   : > { %v412_v5 = vmul.f32 %v411_v4, %v411_v4 }
 0x121   : > { %v413_v6 = vsel %vm405_vm0, %v412_v5, 0.0 }
 0x122   : > { %414 = vadd.xlane.f32.xlu0 %v413_v6 }
 0x1af   : > { %v415_v15 = vpop.xlane.xlu0 %414 }
 0x1b0   : > { %v416_v16 = vmul.f32 0.03125, %v415_v15 }
 0x1b2   : > { %v417_v18 = vadd.f32 1e-05, %v416_v16 }
 0x1b4   : > { %6496 = vrsqrt.f32 %v417_v18 }
 0x1be   : > { %v6497_v24 = vpop.eup %6496 }
 0x1bf   : > { %v419_v25 = vmul.f32 %v6497_v24, %v411_v4  ;;  %v383_v4 = vld [vmem:[%s7856_s5] sm:$0xff] }
 0x1c1   : > { %v424_v27 = vmul.f32 %v423_v23, %v419_v25 }
 0x1c3   : > { %v429_v28 = vadd.f32 %v428_v26, %v424_v27 }
 0x1c5   : > { %5939 = vmatmul.mubr.msk.f32.vlgmr.msra.gmra.mrb[0].mxu1 %vm405_vm0, %v429_v28 }
 0x1c6   : > { %5943 = vmatprep.mubr.msk.f32.mxu1 %vm6795_vm1, %v6796_v13 }
 0x298   : > { %v503_v31 = vpop.f32.mrb[0].mxu1 }
 0x299   : > { %v7109_v32 = vadd.f32 %v503_v31, %v433_v30  ;;  %v5940_v33 = vpop.f32.mrb[1].mxu1 }
 0x29b   : > { %509 = vrot.lane.b32.xlu1 %v7109_v32, %s6797_s14  ;;  %v7114_v34 = vmul.f32 0.35355338, %v7109_v32 }
 0x29d   : > { %674 = vrot.lane.b32.xlu0 %v7114_v34, %s6798_s13 }
 0x29f   : > { %676 = vrot.lane.b32.xlu1 %v7109_v32, %s6799_s20 }
 0x30d   : > { %v510_v35 = vpop.permute.xlu1 %509 }
 0x30e   : > { %5942 = vmatpush3.xpose.msk.msra.mxu1 %vm511_vm2, %v510_v35 }
 0x30f   : > { %5946 = vmatprep.subr.mxu1 %v6796_v13  ;;  %v675_v37 = vpop.permute.xlu0 %674 }
 0x311   : > { %v677_v36 = vpop.permute.xlu1 %676  ;;  %5944 = vmatmul.mubr.msk.f32.vlgmr.msra.gmra.mrb[2].mxu1 %vm511_vm2, %v7114_v34 }
 0x312   : > { %5952 = vmatpush3.xpose.msk.msra.mxu0 %vm511_vm2, %v677_v36  ;;  %5948 = vmatprep.mubr.msk.f32.mxu1 %vm6795_vm1, %v6796_v13 }
 0x313   : > { %5961 = vmatprep.subr.mxu0 %v6796_v13 }
 0x315   : > { %5954 = vmatmul.mubr.msk.f32.vlgmr.msra.gmra.mrb[0].mxu0 %vm511_vm2, %v675_v37 }
 0x316   : > { %5963 = vmatprep.mubr.msk.f32.mxu0 %vm6795_vm1, %v6796_v13  ;;  %5962 = vmatpush3.msra.mxu0 %v384_v58 }
 0x317   : > { %5971 = vmatprep.subr.mxu0 %v6796_v13 }
 0x3e4   : > { %v583_v40 = vpop.f32.mrb[2].mxu1 }
 0x3e5   : > { %v584_v41 = vadd.f32 %v583_v40, %v7133_v39  ;;  %v5945_v42 = vpop.f32.mrb[3].mxu1  ;;  %v385_v40 = vld [vmem:[%s7856_s5 + $0x10] sm:$0xff] }
 0x3e7   : > { %v587_v43 = vsel %vm511_vm2, %v584_v41, -inf }
 0x3e8   : > { %v748_v44 = vpop.f32.mrb[0].mxu0  ;;  %588 = vmax.xlane.f32.xlu1 %v587_v43 }
 0x3e9   : > { %v749_v45 = vadd.f32 %v748_v44, %v7133_v39  ;;  %v5955_v46 = vpop.f32.mrb[1].mxu0 }
 0x3eb   : > { %v752_v47 = vsel %vm511_vm2, %v749_v45, -inf }
 0x3ec   : > { %753 = vmax.xlane.f32.xlu0 %v752_v47 }
 0x402   : > { %763 = vrot.lane.b32.xlu0 %v7109_v32, %s7870_s15  ;;  %s7890_s15 = smov 80  }
 0x475   : > { %v589_v48 = vpop.xlane.xlu1 %588 }
 0x476   : > { %v590_v49 = vsub.f32 %v584_v41, %v589_v48 }
 0x478   : > { %v591_v50 = vmul.f32 1.442695, %v590_v49 }
 0x479   : > { %v754_v51 = vpop.xlane.xlu0 %753 }
 0x47a   : > { %6498 = vpow2.f32 %v591_v50  ;;  %v755_v52 = vsub.f32 %v749_v45, %v754_v51 }
 0x47c   : > { %v756_v53 = vmul.f32 1.442695, %v755_v52  ;;  %v386_v52 = vld [vmem:[%s7856_s5 + $0x18] sm:$0xff] }
 0x47d   : > { %v764_v1 = vpop.permute.xlu0 %763 }
 0x47e   : > { %6500 = vpow2.f32 %v756_v53 }
 0x484   : > { %v6499_v54 = vpop.eup %6498 }
 0x485   : > { %v593_v55 = vsel %vm511_vm2, %v6499_v54, 0.0 }
 0x486   : > { %594 = vadd.xlane.f32.xlu1 %v593_v55 }
 0x488   : > { %v6501_v56 = vpop.eup %6500 }
 0x489   : > { %v758_v57 = vsel %vm511_vm2, %v6501_v56, 0.0 }
 0x48a   : > { %759 = vadd.xlane.f32.xlu1 %v758_v57 }
 0x49b   : > { %598 = vrot.lane.b32.xlu1 %v7109_v32, %s6801_s29 }
 0x49f   : > { %987 = vrot.lane.b32.xlu1 %v7109_v32, %s7873_s12 }
 0x4a3   : > { %985 = vrot.lane.b32.xlu1 %v7114_v34, %s7871_s21 }
 0x513   : > { %v595_v59 = vpop.xlane.xlu1 %594 }
 0x514   : > { %6502 = vrcp.f32 %v595_v59 }
 0x517   : > { %v760_v60 = vpop.xlane.xlu1 %759 }
 0x518   : > { %6504 = vrcp.f32 %v760_v60 }
 0x51b   : > { %v599_v61 = vpop.permute.xlu1 %598 }
 0x51c   : > { %5947 = vmatpush3.msra.mxu1 %v599_v61  ;;  %v7218_v61 = vsub.s32 3, %v7088_v19 }
 0x51d   : > { %5956 = vmatprep.subr.mxu1 %v6796_v13 }
 0x51e   : > { %v6503_v62 = vpop.eup %6502 }
 0x51f   : > { %v597_v63 = vmul.f32 %v6503_v62, %v6499_v54  ;;  %v988_v7 = vpop.permute.xlu1 %987  ;;  %v1466_v62 = vrot.slane %v7105_v29, %v7218_v61 }
 0x521   : > { %5949 = vmatmul.mubr.msk.f32.vlgmr.msra.gmra.mrb[4].mxu1 %vm511_vm2, %v597_v63 }
 0x522   : > { %v6505_v2 = vpop.eup %6504  ;;  %5957 = vmatpush3.msra.mxu1 %v764_v1  ;;  %5958 = vmatprep.mubr.msk.f32.mxu1 %vm6795_vm1, %v6796_v13 }
 0x523   : > { %v762_v3 = vmul.f32 %v6505_v2, %v6501_v56  ;;  %5966 = vmatprep.subr.mxu1 %v6796_v13  ;;  %v986_v11 = vpop.permute.xlu1 %985 }
 0x525   : > { %5959 = vmatmul.mubr.msk.f32.vlgmr.msra.gmra.mrb[6].mxu1 %vm511_vm2, %v762_v3 }
 0x526   : > { %5968 = vmatprep.mubr.msk.f32.mxu1 %vm6795_vm1, %v6796_v13  ;;  %5967 = vmatpush3.msra.mxu1 %v383_v4 }
 0x527   : > { %5976 = vmatprep.subr.mxu1 %v6796_v13 }
 0x5f4   : > { %v670_v5 = vpop.f32.mrb[4].mxu1 }
 0x5f5   : > { %v5950_v6 = vpop.f32.mrb[5].mxu1  ;;  %5969 = vmatmul.mubr.msk.f32.vlgmr.msra.gmra.mrb[8].mxu1 %vm511_vm2, %v670_v5 }
 0x5f6   : > { %5978 = vmatprep.mubr.msk.f32.mxu1 %vm6795_vm1, %v6796_v13 }
 0x5f8   : > { %v835_v8 = vpop.f32.mrb[6].mxu1 }
 0x5f9   : > { %v5960_v9 = vpop.f32.mrb[7].mxu1  ;;  %5964 = vmatmul.mubr.msk.f32.vlgmr.msra.gmra.mrb[2].mxu0 %vm511_vm2, %v835_v8 }
 0x5fa   : > { %5972 = vmatpush3.xpose.msk.msra.mxu0 %vm511_vm2, %v988_v7  ;;  %5973 = vmatprep.mubr.msk.f32.mxu0 %vm6795_vm1, %v6796_v13 }
 0x5fb   : > { %5981 = vmatprep.subr.mxu0 %v6796_v13 }
 0x5fd   : > { %5974 = vmatmul.mubr.msk.f32.vlgmr.msra.gmra.mrb[4].mxu0 %vm511_vm2, %v986_v11 }
 0x5fe   : > { %5983 = vmatprep.mubr.msk.f32.mxu0 %vm6795_vm1, %v6796_v13  ;;  %5982 = vmatpush3.msra.mxu0 %v385_v40 }
 0x5ff   : > { %5991 = vmatprep.subr.mxu0 %v6796_v13 }
 0x6c8   : > { %v981_v12 = vpop.f32.mrb[8].mxu1 }
 0x6c9   : > { %v5970_v14 = vpop.f32.mrb[9].mxu1 }
 0x6ca   : > { %v371_v14 = vld [vmem:[#allocation7 + $0x28] sm:$0xff] }
 0x6cc   : > { %v908_v15 = vpop.f32.mrb[2].mxu0 }
 0x6cd   : > { %v982_v16 = vadd.f32 %v981_v12, %v908_v15  ;;  %v5965_v17 = vpop.f32.mrb[3].mxu0  ;;  %v370_v12 = vld [vmem:[#allocation7 + $0x20] sm:$0xff] }
 0x6ce   : > { %v6331_v15 = vpack.c.bf16 %v371_v14, %v370_v12  ;;  %v375_v17 = vld [vmem:[#allocation8 + $0x8] sm:$0xff]  ;;  %v5655_v12 = vld [vmem:[%s7856_s5 + $0x28] sm:$0xff] }
 0x6d0   : > { %v1059_v18 = vpop.f32.mrb[4].mxu0 }
 0x6d1   : > { %v1060_v23 = vadd.f32 %v1059_v18, %v7133_v39  ;;  %v5975_v24 = vpop.f32.mrb[5].mxu0  ;;  %v372_v18 = vld [vmem:[#allocation7 + $0x30] sm:$0xff] }
 0x6d3   : > { %v1063_v25 = vsel %vm511_vm2, %v1060_v23, -inf }
 0x6d4   : > { %1064 = vmax.xlane.f32.xlu1 %v1063_v25  ;;  %v376_v25 = vld [vmem:[#allocation8 + $0x10] sm:$0xff] }
 0x6e5   : > { %1074 = vrot.lane.b32.xlu1 %v7109_v32, %s7865_s11  ;;  %s7893_s11 = smov 48  }
 0x6e9   : > { %1224 = vrot.lane.b32.xlu1 %v7114_v34, %s7868_s9 }
 0x761   : > { %v1065_v26 = vpop.xlane.xlu1 %1064 }
 0x762   : > { %v1066_v27 = vsub.f32 %v1060_v23, %v1065_v26  ;;  %v373_v23 = vld [vmem:[#allocation7 + $0x38] sm:$0xff] }
 0x763   : > { %v6334_v24 = vpack.c.bf16 %v373_v23, %v372_v18  ;;  %v377_v26 = vld [vmem:[#allocation8 + $0x18] sm:$0xff] }
 0x764   : > { %v1067_v28 = vmul.f32 1.442695, %v1066_v27  ;;  %v6328_v27 = vpack.c.bf16 %v377_v26, %v376_v25 }
 0x765   : > { %v1075_v30 = vpop.permute.xlu1 %1074 }
 0x766   : > { %6506 = vpow2.f32 %v1067_v28  ;;  %5977 = vmatpush3.msra.mxu1 %v1075_v30  ;;  %v356_v28 = vld [vmem:[%s7055_s16] sm:$0xff] }
 0x767   : > { %5986 = vmatprep.subr.mxu1 %v6796_v13 }
 0x769   : > { %v1225_v38 = vpop.permute.xlu1 %1224 }
 0x770   : > { %v6507_v31 = vpop.eup %6506 }
 0x771   : > { %v1069_v33 = vsel %vm511_vm2, %v6507_v31, 0.0 }
 0x772   : > { %1070 = vadd.xlane.f32.xlu0 %v1069_v33 }
 0x788   : > { %1226 = vrot.lane.b32.xlu0 %v7109_v32, %s7866_s23 }
 0x7ff   : > { %v1071_v35 = vpop.xlane.xlu0 %1070 }
 0x800   : > { %6508 = vrcp.f32 %v1071_v35  ;;  %v7238_v35 = vsub.s32 2, %v7088_v19 }
 0x803   : > { %v1227_v37 = vpop.permute.xlu0 %1226 }
 0x80a   : > { %v6509_v36 = vpop.eup %6508 }
 0x80b   : > { %v1073_v34 = vmul.f32 %v6509_v36, %v6507_v31  ;;  %v1485_v36 = vrot.slane %v7093_v21, %v7238_v35 }
 0x80d   : > { %5979 = vmatmul.mubr.msk.f32.vlgmr.msra.gmra.mrb[10].mxu1 %vm511_vm2, %v1073_v34 }
 0x80e   : > { %5987 = vmatpush3.xpose.msk.msra.mxu1 %vm511_vm2, %v1227_v37  ;;  %5988 = vmatprep.mubr.msk.f32.mxu1 %vm6795_vm1, %v6796_v13 }
 0x80f   : > { %5996 = vmatprep.subr.mxu1 %v6796_v13 }
 0x811   : > { %5989 = vmatmul.mubr.msk.f32.vlgmr.msra.gmra.mrb[12].mxu1 %vm511_vm2, %v1225_v38  ;;  %v1490_v38 = vrot.slane %v7093_v21, %v7218_v61 }
 0x812   : > { %5998 = vmatprep.mubr.msk.f32.mxu1 %vm6795_vm1, %v6796_v13  ;;  %5997 = vmatpush3.msra.mxu1 %v386_v52 }
 0x813   : > { %6330 = vmatprep.subr.bf16.mxu1 %v6794_v10 }
 0x8e0   : > { %v1146_v41 = vpop.f32.mrb[10].mxu1 }
 0x8e1   : > { %v5980_v42 = vpop.f32.mrb[11].mxu1  ;;  %5984 = vmatmul.mubr.msk.f32.vlgmr.msra.gmra.mrb[6].mxu0 %vm511_vm2, %v1146_v41 }
 0x8e2   : > { %5993 = vmatprep.mubr.msk.f32.mxu0 %vm6795_vm1, %v6796_v13  ;;  %v1572_v42 = vrot.slane %v7105_v29, %v7096_v22 }
 0x8e4   : > { %v1298_v43 = vpop.f32.mrb[12].mxu1 }
 0x8e5   : > { %v1299_v44 = vadd.f32 %v1298_v43, %v7133_v39  ;;  %v5990_v45 = vpop.f32.mrb[13].mxu1 }
 0x8e7   : > { %v1302_v46 = vsel %vm511_vm2, %v1299_v44, -inf }
 0x8e8   : > { %1303 = vmax.xlane.f32.xlu1 %v1302_v46  ;;  %v1495_v46 = vrot.slane %v7105_v29, %v7238_v35 }
 0x975   : > { %v1304_v47 = vpop.xlane.xlu1 %1303 }
 0x976   : > { %v1305_v48 = vsub.f32 %v1299_v44, %v1304_v47 }
 0x978   : > { %v1306_v49 = vmul.f32 1.442695, %v1305_v48 }
 0x97a   : > { %6510 = vpow2.f32 %v1306_v49 }
 0x984   : > { %v6511_v50 = vpop.eup %6510 }
 0x985   : > { %v1308_v51 = vsel %vm511_vm2, %v6511_v50, 0.0 }
 0x986   : > { %1309 = vadd.xlane.f32.xlu0 %v1308_v51 }
 0x99c   : > { %1313 = vrot.lane.b32.xlu0 %v7109_v32, %s7864_s10 }
 0x9b4   : > { %v1219_v53 = vpop.f32.mrb[6].mxu0 }
 0x9b5   : > { %v1223_v54 = vadd.f32 %v1219_v53, %v982_v16  ;;  %v5985_v55 = vpop.f32.mrb[7].mxu0  ;;  %v374_v16 = vld [vmem:[#allocation8] sm:$0xff] }
 0xa13   : > { %v1310_v56 = vpop.xlane.xlu0 %1309 }
 0xa14   : > { %6512 = vrcp.f32 %v1310_v56 }
 0xa17   : > { %v1314_v57 = vpop.permute.xlu0 %1313 }
 0xa18   : > { %5992 = vmatpush3.msra.mxu0 %v1314_v57 }
 0xa19   : > { %6324 = vmatprep.subr.bf16.mxu0 %v6794_v10 }
 0xa1e   : > { %v6513_v58 = vpop.eup %6512 }
 0xa1f   : > { %v1312_v59 = vmul.f32 %v6513_v58, %v6511_v50 }
 0xa21   : > { %5994 = vmatmul.mubr.msk.f32.vlgmr.msra.gmra.mrb[8].mxu0 %vm511_vm2, %v1312_v59 }
 0xa22   : > { %6009 = vmatprep.mubr.msk.f32.mxu0 %vm6795_vm1, %v6796_v13 }
 0xaf4   : > { %v1385_v32 = vpop.f32.mrb[8].mxu0 }
 0xaf5   : > { %v5995_v60 = vpop.f32.mrb[9].mxu0  ;;  %5999 = vmatmul.mubr.msk.f32.vlgmr.msra.gmra.mrb[14].mxu1 %vm511_vm2, %v1385_v32 }
 0xaf6   : > { %6020 = vmatprep.mubr.msk.f32.mxu1 %vm6795_vm1, %v6796_v13  ;;  %6332 = vmatpush3.bf16.msra.mxu1 %v6331_v15 }
 0xaf7   : > { %6333 = vmatprep.subr.bf16.mxu1 %v6794_v10 }
 0xafa   : > { %6335 = vmatpush3.bf16.msra.mxu1 %v6334_v24 }
 0xafb   : > { %6028 = vmatprep.subr.mxu1 %v6796_v13 }
 0xafd   : > { %6021 = vmatmul.mubr.msk.f32.vlgmr.msra.gmra.mrb[16].mxu1 %vm405_vm0, %v356_v28 }
 0xafe   : > { %6030 = vmatprep.mubr.msk.f32.mxu1 %vm6795_vm1, %v6796_v13 }
 0xbc8   : > { %v1458_v63 = vpop.f32.mrb[14].mxu1 }
 0xbc9   : > { %v1462_v1 = vadd.f32 %v1458_v63, %v1223_v54  ;;  %v6000_v2 = vpop.f32.mrb[15].mxu1 }
 0xbcb   : > { %v1467_v3 = vadd.f32 %v1466_v62, %v1462_v1 }
 0xbcd   : > { %v7223_v4 = vadd.f32 %v1467_v3, %v7074_v0  ;;  %v6325_v0 = vpack.c.bf16 %v375_v17, %v374_v16 }
 0xbcf   : > { %v1469_v5 = vsel %vm405_vm0, %v7223_v4, 0.0  ;;  %6326 = vmatpush3.bf16.msra.mxu0 %v6325_v0  ;;  %v5654_v0 = vld [vmem:[%s7856_s5 + $0x20] sm:$0xff] }
 0xbd0   : > { %1470 = vadd.xlane.f32.xlu1 %v1469_v5  ;;  %6327 = vmatprep.subr.bf16.mxu0 %v6794_v10  ;;  %v1642_v43 = vpop.f32.mrb[16].mxu1 }
 0xbd1   : > { %v7252_v44 = vadd.f32 %v1642_v43, %v1572_v42  ;;  %v6022_v45 = vpop.f32.mrb[17].mxu1 }
 0xbd3   : > { %6329 = vmatpush3.bf16.msra.mxu0 %v6328_v27 }
 0xbd4   : > { %6023 = vmatprep.subr.mxu0 %v6796_v13 }
 0xc5d   : > { %v1471_v6 = vpop.xlane.xlu1 %1470 }
 0xc5e   : > { %v1472_v7 = vmul.f32 0.03125, %v1471_v6 }
 0xc60   : > { %v1473_v8 = vsub.f32 %v7223_v4, %v1472_v7 }
 0xc62   : > { %v1474_v9 = vmul.f32 %v1473_v8, %v1473_v8 }
 0xc64   : > { %v1475_v11 = vsel %vm405_vm0, %v1474_v9, 0.0 }
 0xc65   : > { %1476 = vadd.xlane.f32.xlu1 %v1475_v11 }
 0xc76   : > { %1812 = vrot.lane.b32.xlu1 %v7252_v44, %s6798_s13 }
 0xcf2   : > { %v1477_v30 = vpop.xlane.xlu1 %1476 }
 0xcf3   : > { %v1478_v31 = vmul.f32 0.03125, %v1477_v30 }
 0xcf5   : > { %v1479_v33 = vadd.f32 1e-05, %v1478_v31 }
 0xcf6   : > { %v1813_v51 = vpop.permute.xlu1 %1812 }
 0xcf7   : > { %6514 = vrsqrt.f32 %v1479_v33 }
 0xd01   : > { %v6515_v34 = vpop.eup %6514 }
 0xd02   : > { %v1481_v37 = vmul.f32 %v6515_v34, %v1473_v8 }
 0xd04   : > { %v1486_v40 = vmul.f32 %v1485_v36, %v1481_v37 }
 0xd06   : > { %v7244_v41 = vadd.f32 %v1490_v38, %v1486_v40 }
 0xd08   : > { %6010 = vmatmul.mubr.msk.f32.vlgmr.msra.gmra.mrb[10].mxu0 %vm405_vm0, %v7244_v41 }
 0xd09   : > { %6025 = vmatprep.mubr.msk.f32.mxu0 %vm6795_vm1, %v6796_v13  ;;  %6024 = vmatpush3.xpose.msk.msra.mxu0 %vm511_vm2, %v7252_v44 }
 0xd0a   : > { %6033 = vmatprep.subr.mxu0 %v6796_v13 }
 0xddb   : > { %v1565_v47 = vpop.f32.mrb[10].mxu0 }
 0xddc   : > { %v7261_v48 = vadd.f32 %v1565_v47, %v1495_v46  ;;  %v6011_v49 = vpop.f32.mrb[11].mxu0 }
 0xdde   : > { %v7264_v50 = vmul.f32 0.35355338, %v7261_v48 }
 0xde0   : > { %1810 = vrot.lane.b32.xlu0 %v7264_v50, %s6798_s13  ;;  %6026 = vmatmul.mubr.msk.f32.vlgmr.msra.gmra.mrb[12].mxu0 %vm511_vm2, %v7264_v50 }
 0xde1   : > { %6034 = vmatpush3.xpose.msk.msra.mxu0 %vm511_vm2, %v1813_v51  ;;  %6035 = vmatprep.mubr.msk.f32.mxu0 %vm6795_vm1, %v6796_v13 }
 0xde2   : > { %6043 = vmatprep.subr.mxu0 %v6796_v13 }
 0xe52   : > { %v1811_v52 = vpop.permute.xlu0 %1810 }
 0xe53   : > { %6036 = vmatmul.mubr.msk.f32.vlgmr.msra.gmra.mrb[14].mxu0 %vm511_vm2, %v1811_v52 }
 0xe54   : > { %6045 = vmatprep.mubr.msk.f32.mxu0 %vm6795_vm1, %v6796_v13  ;;  %6044 = vmatpush3.msra.mxu0 %v5655_v12 }
 0xe55   : > { %6053 = vmatprep.subr.mxu0 %v6796_v13 }
 0xeb3   : > { %v1719_v53 = vpop.f32.mrb[12].mxu0 }
 0xeb4   : > { %v6027_v54 = vpop.f32.mrb[13].mxu0  ;;  %v1723_v55 = vsel %vm511_vm2, %v1719_v53, -inf }
 0xeb5   : > { %1724 = vmax.xlane.f32.xlu0 %v1723_v55  ;;  %v5656_v54 = vld [vmem:[%s7856_s5 + $0x30] sm:$0xff]  ;;  %v5697_v55 = vmul.f32 -1.442695, %v7252_v44 }
 0xf26   : > { %v1884_v56 = vpop.f32.mrb[14].mxu0 }
 0xf27   : > { %v6037_v57 = vpop.f32.mrb[15].mxu0  ;;  %v1888_v58 = vsel %vm511_vm2, %v1884_v56, -inf }
 0xf28   : > { %1889 = vmax.xlane.f32.xlu1 %v1888_v58 }
 0xf39   : > { %1734 = vrot.lane.b32.xlu1 %v7252_v44, %s6797_s14 }
 0xf3d   : > { %2123 = vrot.lane.b32.xlu1 %v7252_v44, %s7871_s21 }
 0xf41   : > { %2121 = vrot.lane.b32.xlu1 %v7264_v50, %s7871_s21  ;;  %s7892_s21 = smov 56  }
 0xf42   : > { %v1725_v59 = vpop.xlane.xlu0 %1724 }
 0xf43   : > { %v1726_v32 = vsub.f32 %v1719_v53, %v1725_v59 }
 0xf45   : > { %v1727_v60 = vmul.f32 1.442695, %v1726_v32 }
 0xf47   : > { %6516 = vpow2.f32 %v1727_v60 }
 0xf51   : > { %v6517_v62 = vpop.eup %6516 }
 0xf52   : > { %v1729_v63 = vsel %vm511_vm2, %v6517_v62, 0.0 }
 0xf53   : > { %1730 = vadd.xlane.f32.xlu0 %v1729_v63 }
 0xfb5   : > { %v1890_v1 = vpop.xlane.xlu1 %1889 }
 0xfb6   : > { %v1891_v2 = vsub.f32 %v1884_v56, %v1890_v1 }
 0xfb8   : > { %v1892_v3 = vmul.f32 1.442695, %v1891_v2 }
 0xfb9   : > { %v1735_v5 = vpop.permute.xlu1 %1734 }
 0xfba   : > { %6518 = vpow2.f32 %v1892_v3  ;;  %6029 = vmatpush3.msra.mxu1 %v1735_v5 }
 0xfbb   : > { %6038 = vmatprep.subr.mxu1 %v6796_v13 }
 0xfbd   : > { %v2124_v24 = vpop.permute.xlu1 %2123 }
 0xfc1   : > { %v2122_v27 = vpop.permute.xlu1 %2121 }
 0xfc4   : > { %v6519_v6 = vpop.eup %6518 }
 0xfc5   : > { %v1894_v7 = vsel %vm511_vm2, %v6519_v6, 0.0 }
 0xfc6   : > { %1895 = vadd.xlane.f32.xlu0 %v1894_v7 }
 0xfdc   : > { %1899 = vrot.lane.b32.xlu0 %v7252_v44, %s6799_s20 }
 0xfe0   : > { %v1731_v8 = vpop.xlane.xlu0 %1730 }
 0xfe1   : > { %6520 = vrcp.f32 %v1731_v8  ;;  %v5657_v8 = vld [vmem:[%s7856_s5 + $0x38] sm:$0xff] }
 0xfeb   : > { %v6521_v9 = vpop.eup %6520 }
 0xfec   : > { %v1733_v11 = vmul.f32 %v6521_v9, %v6517_v62 }
 0xfee   : > { %6031 = vmatmul.mubr.msk.f32.vlgmr.msra.gmra.mrb[18].mxu1 %vm511_vm2, %v1733_v11 }
 0xfef   : > { %6040 = vmatprep.mubr.msk.f32.mxu1 %vm6795_vm1, %v6796_v13 }
0x1053   : > { %v1896_v14 = vpop.xlane.xlu0 %1895 }
0x1054   : > { %6522 = vrcp.f32 %v1896_v14 }
0x1057   : > { %v1900_v15 = vpop.permute.xlu0 %1899 }
0x1058   : > { %6039 = vmatpush3.msra.mxu1 %v1900_v15 }
0x1059   : > { %6048 = vmatprep.subr.mxu1 %v6796_v13 }
0x105e   : > { %v6523_v16 = vpop.eup %6522 }
0x105f   : > { %v1898_v17 = vmul.f32 %v6523_v16, %v6519_v6 }
0x1061   : > { %6041 = vmatmul.mubr.msk.f32.vlgmr.msra.gmra.mrb[20].mxu1 %vm511_vm2, %v1898_v17 }
0x1062   : > { %6049 = vmatpush3.msra.mxu1 %v5654_v0  ;;  %6050 = vmatprep.mubr.msk.f32.mxu1 %vm6795_vm1, %v6796_v13  ;;  %v5658_v0 = vld [vmem:[%s7856_s5 + $0x40] sm:$0xff] }
0x1063   : > { %6058 = vmatprep.subr.mxu1 %v6796_v13 }
0x10c1   : > { %v1806_v18 = vpop.f32.mrb[18].mxu1 }
0x10c2   : > { %v6032_v23 = vpop.f32.mrb[19].mxu1  ;;  %6051 = vmatmul.mubr.msk.f32.vlgmr.msra.gmra.mrb[22].mxu1 %vm511_vm2, %v1806_v18  ;;  %v5659_v18 = vld [vmem:[%s7856_s5 + $0x48] sm:$0xff] }
0x10c3   : > { %6060 = vmatprep.mubr.msk.f32.mxu1 %vm6795_vm1, %v6796_v13  ;;  %v6337_v23 = vpack.c.bf16 %v5659_v18, %v5658_v0 }
0x1134   : > { %v1971_v25 = vpop.f32.mrb[20].mxu1 }
0x1135   : > { %v6042_v26 = vpop.f32.mrb[21].mxu1  ;;  %6046 = vmatmul.mubr.msk.f32.vlgmr.msra.gmra.mrb[16].mxu0 %vm511_vm2, %v1971_v25  ;;  %v5661_v25 = vld [vmem:[%s7856_s5 + $0x58] sm:$0xff] }
0x1136   : > { %6054 = vmatpush3.xpose.msk.msra.mxu0 %vm511_vm2, %v2124_v24  ;;  %6055 = vmatprep.mubr.msk.f32.mxu0 %vm6795_vm1, %v6796_v13  ;;  %v5660_v24 = vld [vmem:[%s7856_s5 + $0x50] sm:$0xff] }
0x1137   : > { %6063 = vmatprep.subr.mxu0 %v6796_v13  ;;  %v6340_v26 = vpack.c.bf16 %v5661_v25, %v5660_v24  ;;  %v379_v24 = vld [vmem:[#allocation8 + $0x20] sm:$0xff]  ;;  %v380_v25 = vld [vmem:[#allocation8 + $0x28] sm:$0xff] }
0x1139   : > { %6056 = vmatmul.mubr.msk.f32.vlgmr.msra.gmra.mrb[18].mxu0 %vm511_vm2, %v2122_v27  ;;  %v7377_v27 = vsub.s32 4, %v7088_v19 }
0x113a   : > { %6065 = vmatprep.mubr.msk.f32.mxu0 %vm6795_vm1, %v6796_v13  ;;  %6064 = vmatpush3.msra.mxu0 %v5656_v54 }
0x113b   : > { %6073 = vmatprep.subr.mxu0 %v6796_v13 }
0x1195   : > { %v2117_v28 = vpop.f32.mrb[22].mxu1 }
0x1196   : > { %v6052_v30 = vpop.f32.mrb[23].mxu1 }
0x1208   : > { %v2044_v31 = vpop.f32.mrb[16].mxu0 }
0x1209   : > { %v7316_v33 = vadd.f32 %v2117_v28, %v2044_v31  ;;  %v6047_v36 = vpop.f32.mrb[17].mxu0  ;;  %v2602_v28 = vrot.slane %v7105_v29, %v7377_v27 }
0x120c   : > { %v2195_v34 = vpop.f32.mrb[18].mxu0 }
0x120d   : > { %v6057_v37 = vpop.f32.mrb[19].mxu0  ;;  %v2199_v38 = vsel %vm511_vm2, %v2195_v34, -inf }
0x120e   : > { %2200 = vmax.xlane.f32.xlu0 %v2199_v38 }
0x1224   : > { %2210 = vrot.lane.b32.xlu0 %v7252_v44, %s7873_s12  ;;  %s7891_s12 = smov 112  }
0x1228   : > { %2360 = vrot.lane.b32.xlu0 %v7264_v50, %s7868_s9 }
0x129b   : > { %v2201_v40 = vpop.xlane.xlu0 %2200 }
0x129c   : > { %v2202_v42 = vsub.f32 %v2195_v34, %v2201_v40 }
0x129e   : > { %v2203_v43 = vmul.f32 1.442695, %v2202_v42 }
0x129f   : > { %v2211_v45 = vpop.permute.xlu0 %2210 }
0x12a0   : > { %6524 = vpow2.f32 %v2203_v43  ;;  %6059 = vmatpush3.msra.mxu1 %v2211_v45 }
0x12a1   : > { %6068 = vmatprep.subr.mxu1 %v6796_v13 }
0x12a3   : > { %v2361_v53 = vpop.permute.xlu0 %2360 }
0x12aa   : > { %v6525_v46 = vpop.eup %6524 }
0x12ab   : > { %v2205_v47 = vsel %vm511_vm2, %v6525_v46, 0.0 }
0x12ac   : > { %2206 = vadd.xlane.f32.xlu1 %v2205_v47 }
0x12bd   : > { %2362 = vrot.lane.b32.xlu1 %v7252_v44, %s7868_s9  ;;  %s7895_s9 = smov 72  }
0x1339   : > { %v2207_v49 = vpop.xlane.xlu1 %2206 }
0x133a   : > { %6526 = vrcp.f32 %v2207_v49 }
0x133b   : > { %6528 = vpow2.f32 %v5697_v55 }
0x133d   : > { %v2363_v50 = vpop.permute.xlu1 %2362 }
0x1344   : > { %v6527_v51 = vpop.eup %6526 }
0x1345   : > { %v2209_v52 = vmul.f32 %v6527_v51, %v6525_v46  ;;  %v6529_v57 = vpop.eup %6528 }
0x1346   : > { %v2607_v32 = vadd.f32 1.0, %v6529_v57 }
0x1347   : > { %6061 = vmatmul.mubr.msk.f32.vlgmr.msra.gmra.mrb[24].mxu1 %vm511_vm2, %v2209_v52 }
0x1348   : > { %6069 = vmatpush3.xpose.msk.msra.mxu1 %vm511_vm2, %v2363_v50  ;;  %6070 = vmatprep.mubr.msk.f32.mxu1 %vm6795_vm1, %v6796_v13  ;;  %6530 = vrcp.f32 %v2607_v32 }
0x1349   : > { %6078 = vmatprep.subr.mxu1 %v6796_v13 }
0x134b   : > { %6071 = vmatmul.mubr.msk.f32.vlgmr.msra.gmra.mrb[26].mxu1 %vm511_vm2, %v2361_v53 }
0x134c   : > { %6080 = vmatprep.mubr.msk.f32.mxu1 %vm6795_vm1, %v6796_v13  ;;  %6079 = vmatpush3.msra.mxu1 %v5657_v8 }
0x134d   : > { %6342 = vmatprep.subr.bf16.mxu1 %v6794_v10 }
0x1352   : > { %v6531_v63 = vpop.eup %6530 }
0x1353   : > { %v2610_v1 = vadd.f32 1.0, %v6531_v63 }
0x141a   : > { %v2282_v56 = vpop.f32.mrb[24].mxu1 }
0x141b   : > { %v6062_v58 = vpop.f32.mrb[25].mxu1  ;;  %6066 = vmatmul.mubr.msk.f32.vlgmr.msra.gmra.mrb[20].mxu0 %vm511_vm2, %v2282_v56 }
0x141c   : > { %6075 = vmatprep.mubr.msk.f32.mxu0 %vm6795_vm1, %v6796_v13 }
0x141e   : > { %v2434_v59 = vpop.f32.mrb[26].mxu1 }
0x141f   : > { %v6072_v60 = vpop.f32.mrb[27].mxu1  ;;  %v2438_v62 = vsel %vm511_vm2, %v2434_v59, -inf }
0x1420   : > { %2439 = vmax.xlane.f32.xlu1 %v2438_v62 }
0x1431   : > { %2612 = vrot.lane.b32.xlu1 %v2610_v1, %s6801_s29  ;;  %v2742_v1 = vsub.s32 7, %v7088_v19 }
0x14ad   : > { %v2440_v2 = vpop.xlane.xlu1 %2439 }
0x14ae   : > { %v2441_v3 = vsub.f32 %v2434_v59, %v2440_v2  ;;  %v2743_v2 = vrot.slane %v7093_v21, %v2742_v1 }
0x14b0   : > { %v2442_v5 = vmul.f32 1.442695, %v2441_v3 }
0x14b1   : > { %v2613_v34 = vpop.permute.xlu1 %2612 }
0x14b2   : > { %6532 = vpow2.f32 %v2442_v5 }
0x14bc   : > { %v6533_v6 = vpop.eup %6532 }
0x14bd   : > { %v2444_v7 = vsel %vm511_vm2, %v6533_v6, 0.0 }
0x14be   : > { %2445 = vadd.xlane.f32.xlu0 %v2444_v7 }
0x14d4   : > { %2449 = vrot.lane.b32.xlu0 %v7252_v44, %s7866_s23 }
0x14d8   : > { %2700 = vrot.lane.b32.xlu0 %v7244_v41, %s6808_s17 }
0x14ee   : > { %v2355_v9 = vpop.f32.mrb[20].mxu0 }
0x14ef   : > { %v2359_v11 = vadd.f32 %v2355_v9, %v7316_v33  ;;  %v6067_v12 = vpop.f32.mrb[21].mxu0 }
0x154b   : > { %v2446_v14 = vpop.xlane.xlu0 %2445 }
0x154c   : > { %6534 = vrcp.f32 %v2446_v14 }
0x154f   : > { %v2450_v15 = vpop.permute.xlu0 %2449 }
0x1550   : > { %6074 = vmatpush3.msra.mxu0 %v2450_v15 }
0x1551   : > { %6336 = vmatprep.subr.bf16.mxu0 %v6794_v10 }
0x1553   : > { %v2701_v51 = vpop.permute.xlu0 %2700 }
0x1556   : > { %v6535_v44 = vpop.eup %6534 }
0x1557   : > { %v2448_v16 = vmul.f32 %v6535_v44, %v6533_v6 }
0x1559   : > { %6076 = vmatmul.mubr.msk.f32.vlgmr.msra.gmra.mrb[22].mxu0 %vm511_vm2, %v2448_v16 }
0x155a   : > { %6091 = vmatprep.mubr.msk.f32.mxu0 %vm6795_vm1, %v6796_v13  ;;  %6338 = vmatpush3.bf16.msra.mxu0 %v6337_v23 }
0x155b   : > { %6339 = vmatprep.subr.bf16.mxu0 %v6794_v10 }
0x155e   : > { %6341 = vmatpush3.bf16.msra.mxu0 %v6340_v26  ;;  %v6343_v26 = vpack.c.bf16 %v380_v25, %v379_v24  ;;  %v2946_v24 = vld [vmem:[#allocation7 + $0x58] sm:$0xff] }
0x155f   : > { %6348 = vmatprep.subr.bf16.mxu0 %v6794_v10 }
0x162c   : > { %v2521_v41 = vpop.f32.mrb[22].mxu0 }
0x162d   : > { %v6077_v17 = vpop.f32.mrb[23].mxu0  ;;  %6081 = vmatmul.mubr.msk.f32.vlgmr.msra.gmra.mrb[28].mxu1 %vm511_vm2, %v2521_v41 }
0x162e   : > { %6102 = vmatprep.mubr.msk.f32.mxu1 %vm6795_vm1, %v6796_v13  ;;  %6344 = vmatpush3.bf16.msra.mxu1 %v6343_v26 }
0x162f   : > { %6345 = vmatprep.subr.bf16.mxu1 %v6794_v10 }
0x1700   : > { %v2594_v30 = vpop.f32.mrb[28].mxu1 }
0x1701   : > { %v2598_v31 = vadd.f32 %v2594_v30, %v2359_v11  ;;  %v6082_v33 = vpop.f32.mrb[29].mxu1  ;;  %v382_v30 = vld [vmem:[#allocation8 + $0x38] sm:$0xff] }
0x1703   : > { %v2603_v36 = vadd.f32 %v2602_v28, %v2598_v31  ;;  %v381_v28 = vld [vmem:[#allocation8 + $0x30] sm:$0xff] }
0x1705   : > { %v2615_v37 = vmul.f32 %v2613_v34, %v2603_v36  ;;  %v7413_v34 = vsub.s32 5, %v7088_v19 }
0x1707   : > { %6092 = vmatmul.mubr.msk.f32.vlgmr.msra.gmra.mrb[24].mxu0 %vm405_vm0, %v2615_v37 }
0x1708   : > { %6121 = vmatprep.mubr.msk.f32.mxu0 %vm6795_vm1, %v6796_v13 }
0x17da   : > { %v2685_v38 = vpop.f32.mrb[24].mxu0 }
0x17db   : > { %2690 = vrot.lane.b32.xlu1 %v2685_v38, %s6808_s17  ;;  %v6093_v40 = vpop.f32.mrb[25].mxu0 }
0x17df   : > { %2705 = vrot.lane.b32.xlu1 %v2615_v37, %s6808_s17  ;;  %v2770_v37 = vrot.slane %v7093_v21, %v7377_v27 }
0x184d   : > { %v2691_v42 = vpop.permute.xlu1 %2690 }
0x184e   : > { %v2693_v29 = vadd.f32 %v2691_v42, %v7261_v48  ;;  %v7390_v48 = vsub.s32 6, %v7088_v19  ;;  %v2775_v42 = vrot.slane %v7093_v21, %v7413_v34 }
0x1850   : > { %v5699_v43 = vmul.f32 -1.442695, %v2693_v29  ;;  %v2734_v57 = vrot.slane %v7093_v21, %v7390_v48  ;;  %v399_v21 = vld [vmem:[%s7857_s6 + $0x10] sm:$0xff] }
0x1851   : > { %v2706_v52 = vpop.permute.xlu1 %2705 }
0x1852   : > { %6536 = vpow2.f32 %v5699_v43 }
0x185c   : > { %v6537_v45 = vpop.eup %6536 }
0x185d   : > { %v2697_v46 = vadd.f32 1.0, %v6537_v45  ;;  %v397_v45 = vld [vmem:[%s7857_s6] sm:$0xff] }
0x185f   : > { %6538 = vrcp.f32 %v2697_v46  ;;  %v398_v46 = vld [vmem:[%s7857_s6 + $0x8] sm:$0xff] }
0x1869   : > { %v6539_v47 = vpop.eup %6538 }
0x186a   : > { %v2704_v49 = vsub.f32 1.0, %v6539_v47  ;;  %v2703_v50 = vmul.f32 %v6539_v47, %v2701_v51  ;;  %v6349_v47 = vpack.c.bf16 %v398_v46, %v397_v45 }
0x186c   : > { %v2708_v53 = vmul.f32 %v2706_v52, %v2704_v49  ;;  %6350 = vmatpush3.bf16.msra.mxu0 %v6349_v47  ;;  %v400_v49 = vld [vmem:[%s7857_s6 + $0x18] sm:$0xff]  ;;  %v401_v52 = vld [vmem:[%s7857_s6 + $0x20] sm:$0xff] }
0x186d   : > { %6351 = vmatprep.subr.bf16.mxu0 %v6794_v10  ;;  %v6352_v51 = vpack.c.bf16 %v400_v49, %v399_v21 }
0x186e   : > { %v2709_v54 = vadd.f32 %v2708_v53, %v2703_v50  ;;  %v402_v50 = vld [vmem:[%s7857_s6 + $0x28] sm:$0xff] }
0x186f   : > { %v6355_v53 = vpack.c.bf16 %v402_v50, %v401_v52 }
0x1870   : > { %2711 = vrot.lane.b32.xlu0 %v2709_v54, %s6797_s14  ;;  %6353 = vmatpush3.bf16.msra.mxu0 %v6352_v51 }
0x1871   : > { %6354 = vmatprep.subr.bf16.mxu0 %v6794_v10 }
0x1874   : > { %6356 = vmatpush3.bf16.msra.mxu0 %v6355_v53 }
0x1875   : > { %6357 = vmatprep.subr.bf16.mxu0 %v6794_v10 }
0x18e2   : > { %v2712_v55 = vpop.permute.xlu0 %2711 }
0x18e3   : > { %v2714_v56 = vsel %vm405_vm0, %v2712_v55, 0.0  ;;  %v404_v55 = vld [vmem:[%s7857_s6 + $0x38] sm:$0xff] }
0x18e4   : > { %2715 = vadd.xlane.f32.xlu1 %v2714_v56 }
0x18f5   : > { %2736 = vrot.lane.b32.xlu1 %v2734_v57, %s6808_s17  ;;  %v6596_v57 = vld [vmem:[#allocation5 + $0x8] sm:$0xff] }
0x1971   : > { %v2716_v58 = vpop.xlane.xlu1 %2715 }
0x1972   : > { %v2717_v59 = vmul.f32 0.03125, %v2716_v58  ;;  %v2780_v58 = vrot.slane %v6596_v57, %v7413_v34 }
0x1974   : > { %v2718_v32 = vsub.f32 %v2709_v54, %v2717_v59  ;;  %v403_v54 = vld [vmem:[%s7857_s6 + $0x30] sm:$0xff] }
0x1975   : > { %v2737_v8 = vpop.permute.xlu1 %2736  ;;  %v6358_v56 = vpack.c.bf16 %v404_v55, %v403_v54 }
0x1976   : > { %v2719_v60 = vmul.f32 %v2718_v32, %v2718_v32 }
0x1977   : > { %6359 = vmatpush3.bf16.msra.mxu0 %v6358_v56 }
0x1978   : > { %2721 = vrot.lane.b32.xlu0 %v2719_v60, %s6797_s14  ;;  %6145 = vmatprep.subr.mxu0 %v6796_v13 }
0x19ea   : > { %v2722_v62 = vpop.permute.xlu0 %2721 }
0x19eb   : > { %v2724_v63 = vsel %vm405_vm0, %v2722_v62, 0.0 }
0x19ec   : > { %2725 = vadd.xlane.f32.xlu0 %v2724_v63 }
0x1a02   : > { %2745 = vrot.lane.b32.xlu0 %v2743_v2, %s6808_s17 }
0x1a79   : > { %v2726_v3 = vpop.xlane.xlu0 %2725 }
0x1a7a   : > { %v2727_v5 = vmul.f32 0.03125, %v2726_v3 }
0x1a7c   : > { %v2728_v6 = vadd.f32 1e-05, %v2727_v5 }
0x1a7d   : > { %v2746_v11 = vpop.permute.xlu0 %2745 }
0x1a7e   : > { %6540 = vrsqrt.f32 %v2728_v6  ;;  %v2937_v6 = vrot.slane %v6596_v57, %v7390_v48 }
0x1a88   : > { %v6541_v7 = vpop.eup %6540 }
0x1a89   : > { %v2730_v9 = vmul.f32 %v6541_v7, %v2718_v32 }
0x1a8b   : > { %v2739_v12 = vmul.f32 %v2737_v8, %v2730_v9 }
0x1a8d   : > { %v2748_v14 = vadd.f32 %v2746_v11, %v2739_v12 }
0x1a8f   : > { %2750 = vrot.lane.b32.xlu1 %v2748_v14, %s6797_s14 }
0x1b01   : > { %v2751_v15 = vpop.permute.xlu1 %2750 }
0x1b02   : > { %v7404_v44 = vadd.f32 %v2751_v15, %v7223_v4  ;;  %v6346_v4 = vpack.c.bf16 %v382_v30, %v381_v28 }
0x1b04   : > { %v2754_v16 = vsel %vm405_vm0, %v7404_v44, 0.0  ;;  %6347 = vmatpush3.bf16.msra.mxu1 %v6346_v4  ;;  %v7464_v4 = vld [vmem:[#allocation5 + $0x10] sm:$0xff] }
0x1b05   : > { %2755 = vadd.xlane.f32.xlu1 %v2754_v16  ;;  %6360 = vmatprep.subr.bf16.mxu1 %v6794_v10 }
0x1b92   : > { %v2756_v41 = vpop.xlane.xlu1 %2755 }
0x1b93   : > { %v2757_v17 = vmul.f32 0.03125, %v2756_v41 }
0x1b95   : > { %v2758_v0 = vsub.f32 %v7404_v44, %v2757_v17 }
0x1b97   : > { %v2759_v18 = vmul.f32 %v2758_v0, %v2758_v0 }
0x1b99   : > { %v2760_v23 = vsel %vm405_vm0, %v2759_v18, 0.0  ;;  %v2944_v18 = vld [vmem:[#allocation7 + $0x48] sm:$0xff] }
0x1b9a   : > { %2761 = vadd.xlane.f32.xlu0 %v2760_v23 }
0x1c27   : > { %v2762_v31 = vpop.xlane.xlu0 %2761 }
0x1c28   : > { %v2763_v33 = vmul.f32 0.03125, %v2762_v31  ;;  %v3002_v31 = vrot.slane %v7464_v4, %v7091_v20 }
0x1c2a   : > { %v2764_v36 = vadd.f32 1e-05, %v2763_v33 }
0x1c2c   : > { %6542 = vrsqrt.f32 %v2764_v36 }
0x1c36   : > { %v6543_v38 = vpop.eup %6542 }
0x1c37   : > { %v2766_v40 = vmul.f32 %v6543_v38, %v2758_v0  ;;  %v2943_v0 = vld [vmem:[#allocation7 + $0x40] sm:$0xff] }
0x1c38   : > { %v6361_v23 = vpack.c.bf16 %v2944_v18, %v2943_v0  ;;  %v5702_v0 = vld [vmem:[%s7856_s5 + $0x60] sm:$0xff] }
0x1c39   : > { %v2771_v29 = vmul.f32 %v2770_v37, %v2766_v40  ;;  %v3007_v37 = vrot.slane %v7464_v4, %v7096_v22 }
0x1c3b   : > { %v2776_v43 = vadd.f32 %v2775_v42, %v2771_v29  ;;  %v7473_v42 = vld [vmem:[#allocation5 + $0x18] sm:$0xff] }
0x1c3c   : > { %v3012_v29 = vrot.slane %v7473_v42, %v7091_v20 }
0x1c3d   : > { %6103 = vmatmul.mubr.msk.f32.vlgmr.msra.gmra.mrb[30].mxu1 %vm405_vm0, %v2776_v43 }
0x1c3e   : > { %6132 = vmatprep.mubr.msk.f32.mxu1 %vm6795_vm1, %v6796_v13  ;;  %6362 = vmatpush3.bf16.msra.mxu1 %v6361_v23 }
0x1c3f   : > { %6363 = vmatprep.subr.bf16.mxu1 %v6794_v10 }
0x1d10   : > { %v2850_v59 = vpop.f32.mrb[30].mxu1 }
0x1d11   : > { %v2851_v32 = vadd.f32 %v2850_v59, %v2780_v58  ;;  %v6104_v60 = vpop.f32.mrb[31].mxu1 }
0x1d13   : > { %v2855_v62 = vmul.f32 0.70710677, %v2851_v32  ;;  %v2854_v2 = vmul.f32 0.5, %v2851_v32 }
0x1d15   : > { %6544 = verf.f32 %v2855_v62 }
0x1d1f   : > { %v6545_v63 = vpop.eup %6544 }
0x1d20   : > { %v2857_v3 = vadd.f32 1.0, %v6545_v63 }
0x1d22   : > { %v2858_v5 = vmul.f32 %v2857_v3, %v2854_v2 }
0x1d24   : > { %6122 = vmatmul.mubr.msk.f32.vlgmr.msra.gmra.mrb[26].mxu0 %vm2859_vm4, %v2858_v5 }
0x1d25   : > { %6147 = vmatprep.mubr.msk.f32.mxu0 %vm6795_vm1, %v6796_v13 }
0x1df7   : > { %v2929_v7 = vpop.f32.mrb[26].mxu0 }
0x1df8   : > { %v2933_v8 = vadd.f32 %v2929_v7, %v7404_v44  ;;  %v6123_v9 = vpop.f32.mrb[27].mxu0  ;;  %v2945_v44 = vld [vmem:[#allocation7 + $0x50] sm:$0xff] }
0x1df9   : > { %v6364_v25 = vpack.c.bf16 %v2946_v24, %v2945_v44 }
0x1dfa   : > { %v7456_v11 = vadd.f32 %v2937_v6, %v2933_v8  ;;  %v5703_v8 = vld [vmem:[%s7856_s5 + $0x68] sm:$0xff] }
0x1dfb   : > { %6365 = vmatpush3.bf16.msra.mxu1 %v6364_v25 }
0x1dfc   : > { %v2986_v12 = vsel %vm405_vm0, %v7456_v11, 0.0  ;;  %6135 = vmatprep.subr.mxu1 %v6796_v13 }
0x1dfd   : > { %2987 = vadd.xlane.f32.xlu0 %v2986_v12 }
0x1e8a   : > { %v2988_v14 = vpop.xlane.xlu0 %2987 }
0x1e8b   : > { %v2989_v15 = vmul.f32 0.03125, %v2988_v14 }
0x1e8d   : > { %v2990_v16 = vsub.f32 %v7456_v11, %v2989_v15 }
0x1e8f   : > { %v2991_v41 = vmul.f32 %v2990_v16, %v2990_v16 }
0x1e91   : > { %v2992_v17 = vsel %vm405_vm0, %v2991_v41, 0.0 }
0x1e92   : > { %2993 = vadd.xlane.f32.xlu1 %v2992_v17 }
0x1f1f   : > { %v2994_v26 = vpop.xlane.xlu1 %2993 }
0x1f20   : > { %v2995_v28 = vmul.f32 0.03125, %v2994_v26 }
0x1f22   : > { %v2996_v30 = vadd.f32 1e-05, %v2995_v28 }
0x1f24   : > { %6546 = vrsqrt.f32 %v2996_v30 }
0x1f2e   : > { %v6547_v33 = vpop.eup %6546 }
0x1f2f   : > { %v2998_v36 = vmul.f32 %v6547_v33, %v2990_v16 }
0x1f31   : > { %v3003_v38 = vmul.f32 %v3002_v31, %v2998_v36 }
0x1f33   : > { %v3008_v40 = vadd.f32 %v3007_v37, %v3003_v38 }
0x1f35   : > { %6133 = vmatmul.mubr.msk.f32.vlgmr.msra.gmra.mrb[32].mxu1 %vm405_vm0, %v3008_v40 }
0x1f36   : > { %6137 = vmatprep.mubr.msk.f32.mxu1 %vm6795_vm1, %v6796_v13 }
0x2008   : > { %v3082_v43 = vpop.f32.mrb[32].mxu1 }
0x2009   : > { %v7477_v45 = vadd.f32 %v3082_v43, %v3012_v29  ;;  %v6134_v46 = vpop.f32.mrb[33].mxu1 }
0x200b   : > { %3254 = vrot.lane.b32.xlu1 %v7477_v45, %s6799_s20  ;;  %3088 = vrot.lane.b32.xlu0 %v7477_v45, %s6797_s14  ;;  %v7484_v47 = vmul.f32 0.35355338, %v7477_v45 }
0x200f   : > { %3252 = vrot.lane.b32.xlu1 %v7484_v47, %s6798_s13 }
0x207d   : > { %v3255_v21 = vpop.permute.xlu1 %3254  ;;  %v3089_v49 = vpop.permute.xlu0 %3088 }
0x207e   : > { %6136 = vmatpush3.xpose.msk.msra.mxu1 %vm511_vm2, %v3089_v49  ;;  %6146 = vmatpush3.xpose.msk.msra.mxu0 %vm511_vm2, %v3255_v21 }
0x207f   : > { %6140 = vmatprep.subr.mxu1 %v6796_v13  ;;  %6155 = vmatprep.subr.mxu0 %v6796_v13 }
0x2081   : > { %v3253_v20 = vpop.permute.xlu1 %3252  ;;  %6138 = vmatmul.mubr.msk.f32.vlgmr.msra.gmra.mrb[34].mxu1 %vm511_vm2, %v7484_v47 }
0x2082   : > { %6148 = vmatmul.mubr.msk.f32.vlgmr.msra.gmra.mrb[28].mxu0 %vm511_vm2, %v3253_v20  ;;  %6142 = vmatprep.mubr.msk.f32.mxu1 %vm6795_vm1, %v6796_v13 }
0x2083   : > { %6157 = vmatprep.mubr.msk.f32.mxu0 %vm6795_vm1, %v6796_v13  ;;  %6156 = vmatpush3.msra.mxu0 %v5703_v8 }
0x2084   : > { %6165 = vmatprep.subr.mxu0 %v6796_v13 }
0x2154   : > { %v3161_v51 = vpop.f32.mrb[34].mxu1 }
0x2155   : > { %v3162_v52 = vadd.f32 %v3161_v51, %v7133_v39  ;;  %v6139_v50 = vpop.f32.mrb[35].mxu1  ;;  %v3326_v53 = vpop.f32.mrb[28].mxu0 }
0x2156   : > { %v3327_v54 = vadd.f32 %v3326_v53, %v7133_v39  ;;  %v6149_v55 = vpop.f32.mrb[29].mxu0 }
0x2157   : > { %v3165_v56 = vsel %vm511_vm2, %v3162_v52, -inf  ;;  %v5704_v55 = vld [vmem:[%s7856_s5 + $0x70] sm:$0xff] }
0x2158   : > { %3166 = vmax.xlane.f32.xlu0 %v3165_v56  ;;  %v3330_v57 = vsel %vm511_vm2, %v3327_v54, -inf }
0x2159   : > { %3331 = vmax.xlane.f32.xlu1 %v3330_v57 }
0x216a   : > { %3176 = vrot.lane.b32.xlu1 %v7477_v45, %s6801_s29 }
0x216e   : > { %3565 = vrot.lane.b32.xlu1 %v7477_v45, %s7890_s15 }
0x2172   : > { %3563 = vrot.lane.b32.xlu1 %v7484_v47, %s7891_s12 }
0x21e5   : > { %v3167_v58 = vpop.xlane.xlu0 %3166 }
0x21e6   : > { %v3168_v59 = vsub.f32 %v3162_v52, %v3167_v58  ;;  %v3332_v32 = vpop.xlane.xlu1 %3331 }
0x21e7   : > { %v3333_v60 = vsub.f32 %v3327_v54, %v3332_v32 }
0x21e8   : > { %v3169_v62 = vmul.f32 1.442695, %v3168_v59 }
0x21e9   : > { %v3334_v63 = vmul.f32 1.442695, %v3333_v60 }
0x21ea   : > { %6548 = vpow2.f32 %v3169_v62  ;;  %v3177_v2 = vpop.permute.xlu1 %3176 }
0x21eb   : > { %6141 = vmatpush3.msra.mxu1 %v3177_v2  ;;  %6550 = vpow2.f32 %v3334_v63 }
0x21ec   : > { %6150 = vmatprep.subr.mxu1 %v6796_v13 }
0x21ee   : > { %v3566_v44 = vpop.permute.xlu1 %3565 }
0x21f2   : > { %v3564_v26 = vpop.permute.xlu1 %3563 }
0x21f4   : > { %v6549_v3 = vpop.eup %6548 }
0x21f5   : > { %v3171_v5 = vsel %vm511_vm2, %v6549_v3, 0.0  ;;  %v6551_v6 = vpop.eup %6550 }
0x21f6   : > { %3172 = vadd.xlane.f32.xlu0 %v3171_v5  ;;  %v3336_v7 = vsel %vm511_vm2, %v6551_v6, 0.0 }
0x21fa   : > { %3337 = vadd.xlane.f32.xlu0 %v3336_v7 }
0x2210   : > { %3341 = vrot.lane.b32.xlu0 %v7477_v45, %s7892_s21  ;;  %s7894_s21 = smov 104  }
0x2283   : > { %v3173_v9 = vpop.xlane.xlu0 %3172 }
0x2284   : > { %6552 = vrcp.f32 %v3173_v9 }
0x2287   : > { %v3338_v12 = vpop.xlane.xlu0 %3337 }
0x2288   : > { %6554 = vrcp.f32 %v3338_v12 }
0x228b   : > { %v3342_v16 = vpop.permute.xlu0 %3341 }
0x228e   : > { %v6553_v14 = vpop.eup %6552 }
0x228f   : > { %v3175_v15 = vmul.f32 %v6553_v14, %v6549_v3 }
0x2291   : > { %6143 = vmatmul.mubr.msk.f32.vlgmr.msra.gmra.mrb[36].mxu1 %vm511_vm2, %v3175_v15 }
0x2292   : > { %v6555_v41 = vpop.eup %6554  ;;  %6151 = vmatpush3.msra.mxu1 %v3342_v16  ;;  %6152 = vmatprep.mubr.msk.f32.mxu1 %vm6795_vm1, %v6796_v13 }
0x2293   : > { %v3340_v17 = vmul.f32 %v6555_v41, %v6551_v6  ;;  %6160 = vmatprep.subr.mxu1 %v6796_v13  ;;  %v5705_v6 = vld [vmem:[%s7856_s5 + $0x78] sm:$0xff]  ;;  %v4044_v41 = vrot.slane %v7473_v42, %v7218_v61 }
0x2295   : > { %6153 = vmatmul.mubr.msk.f32.vlgmr.msra.gmra.mrb[38].mxu1 %vm511_vm2, %v3340_v17 }
0x2296   : > { %6162 = vmatprep.mubr.msk.f32.mxu1 %vm6795_vm1, %v6796_v13  ;;  %6161 = vmatpush3.msra.mxu1 %v5702_v0 }
0x2297   : > { %6170 = vmatprep.subr.mxu1 %v6796_v13 }
0x2364   : > { %v3248_v18 = vpop.f32.mrb[36].mxu1 }
0x2365   : > { %v6144_v23 = vpop.f32.mrb[37].mxu1  ;;  %6163 = vmatmul.mubr.msk.f32.vlgmr.msra.gmra.mrb[40].mxu1 %vm511_vm2, %v3248_v18 }
0x2366   : > { %6172 = vmatprep.mubr.msk.f32.mxu1 %vm6795_vm1, %v6796_v13 }
0x2368   : > { %v3413_v24 = vpop.f32.mrb[38].mxu1 }
0x2369   : > { %v6154_v25 = vpop.f32.mrb[39].mxu1  ;;  %6158 = vmatmul.mubr.msk.f32.vlgmr.msra.gmra.mrb[30].mxu0 %vm511_vm2, %v3413_v24 }
0x236a   : > { %6166 = vmatpush3.xpose.msk.msra.mxu0 %vm511_vm2, %v3566_v44  ;;  %6167 = vmatprep.mubr.msk.f32.mxu0 %vm6795_vm1, %v6796_v13 }
0x236b   : > { %6175 = vmatprep.subr.mxu0 %v6796_v13 }
0x236d   : > { %6168 = vmatmul.mubr.msk.f32.vlgmr.msra.gmra.mrb[32].mxu0 %vm511_vm2, %v3564_v26 }
0x236e   : > { %6177 = vmatprep.mubr.msk.f32.mxu0 %vm6795_vm1, %v6796_v13  ;;  %6176 = vmatpush3.msra.mxu0 %v5704_v55 }
0x236f   : > { %6185 = vmatprep.subr.mxu0 %v6796_v13 }
0x2438   : > { %v3559_v28 = vpop.f32.mrb[40].mxu1 }
0x2439   : > { %v6164_v30 = vpop.f32.mrb[41].mxu1 }
0x243c   : > { %v3486_v31 = vpop.f32.mrb[30].mxu0 }
0x243d   : > { %v3560_v33 = vadd.f32 %v3559_v28, %v3486_v31  ;;  %v6159_v36 = vpop.f32.mrb[31].mxu0 }
0x243e   : > { %v2949_v36 = vld [vmem:[#allocation7 + $0x68] sm:$0xff] }
0x2440   : > { %v3637_v37 = vpop.f32.mrb[32].mxu0 }
0x2441   : > { %v3638_v38 = vadd.f32 %v3637_v37, %v7133_v39  ;;  %v6169_v40 = vpop.f32.mrb[33].mxu0 }
0x2442   : > { %v2954_v40 = vld [vmem:[#allocation8 + $0x48] sm:$0xff] }
0x2443   : > { %v3641_v29 = vsel %vm511_vm2, %v3638_v38, -inf }
0x2444   : > { %3642 = vmax.xlane.f32.xlu0 %v3641_v29  ;;  %v2950_v29 = vld [vmem:[#allocation7 + $0x70] sm:$0xff] }
0x245a   : > { %3652 = vrot.lane.b32.xlu0 %v7477_v45, %s7893_s11 }
0x245e   : > { %3802 = vrot.lane.b32.xlu0 %v7484_v47, %s7894_s21 }
0x24d1   : > { %v3643_v43 = vpop.xlane.xlu0 %3642 }
0x24d2   : > { %v3644_v46 = vsub.f32 %v3638_v38, %v3643_v43  ;;  %v2953_v38 = vld [vmem:[#allocation8 + $0x40] sm:$0xff]  ;;  %v2951_v43 = vld [vmem:[#allocation7 + $0x78] sm:$0xff] }
0x24d4   : > { %v3645_v21 = vmul.f32 1.442695, %v3644_v46  ;;  %v6376_v46 = vpack.c.bf16 %v2951_v43, %v2950_v29 }
0x24d5   : > { %v3653_v49 = vpop.permute.xlu0 %3652 }
0x24d6   : > { %6556 = vpow2.f32 %v3645_v21  ;;  %6171 = vmatpush3.msra.mxu1 %v3653_v49  ;;  %v2955_v21 = vld [vmem:[#allocation8 + $0x50] sm:$0xff]  ;;  %v2956_v49 = vld [vmem:[#allocation8 + $0x58] sm:$0xff] }
0x24d7   : > { %6180 = vmatprep.subr.mxu1 %v6796_v13 }
0x24d9   : > { %v3803_v54 = vpop.permute.xlu0 %3802 }
0x24e0   : > { %v6557_v20 = vpop.eup %6556 }
0x24e1   : > { %v3647_v51 = vsel %vm511_vm2, %v6557_v20, 0.0 }
0x24e2   : > { %3648 = vadd.xlane.f32.xlu1 %v3647_v51  ;;  %v6597_v51 = vld [vmem:[%s7055_s16] sm:$0xff]  ;;  %s6809_s16 = smov [#allocation10]  }
0x24f3   : > { %3804 = vrot.lane.b32.xlu1 %v7477_v45, %s7895_s9 }
0x256f   : > { %v3649_v52 = vpop.xlane.xlu1 %3648 }
0x2570   : > { %6558 = vrcp.f32 %v3649_v52 }
0x2573   : > { %v3805_v47 = vpop.permute.xlu1 %3804 }
0x257a   : > { %v6559_v50 = vpop.eup %6558 }
0x257b   : > { %v3651_v53 = vmul.f32 %v6559_v50, %v6557_v20  ;;  %v6370_v20 = vpack.c.bf16 %v2956_v49, %v2955_v21 }
0x257d   : > { %6173 = vmatmul.mubr.msk.f32.vlgmr.msra.gmra.mrb[42].mxu1 %vm511_vm2, %v3651_v53 }
0x257e   : > { %6181 = vmatpush3.xpose.msk.msra.mxu1 %vm511_vm2, %v3805_v47  ;;  %6182 = vmatprep.mubr.msk.f32.mxu1 %vm6795_vm1, %v6796_v13  ;;  %v4063_v47 = vrot.slane %v7464_v4, %v7238_v35 }
0x257f   : > { %6190 = vmatprep.subr.mxu1 %v6796_v13 }
0x2581   : > { %6183 = vmatmul.mubr.msk.f32.vlgmr.msra.gmra.mrb[44].mxu1 %vm511_vm2, %v3803_v54 }
0x2582   : > { %6192 = vmatprep.mubr.msk.f32.mxu1 %vm6795_vm1, %v6796_v13  ;;  %6191 = vmatpush3.msra.mxu1 %v5705_v6 }
0x2583   : > { %6372 = vmatprep.subr.bf16.mxu1 %v6794_v10 }
0x2650   : > { %v3724_v56 = vpop.f32.mrb[42].mxu1 }
0x2651   : > { %v6174_v57 = vpop.f32.mrb[43].mxu1  ;;  %6178 = vmatmul.mubr.msk.f32.vlgmr.msra.gmra.mrb[34].mxu0 %vm511_vm2, %v3724_v56  ;;  %v4068_v56 = vrot.slane %v7464_v4, %v7218_v61  ;;  %v4073_v61 = vrot.slane %v7473_v42, %v7238_v35 }
0x2652   : > { %6187 = vmatprep.mubr.msk.f32.mxu0 %vm6795_vm1, %v6796_v13 }
0x2654   : > { %v3876_v58 = vpop.f32.mrb[44].mxu1 }
0x2655   : > { %v3877_v59 = vadd.f32 %v3876_v58, %v7133_v39  ;;  %v6184_v32 = vpop.f32.mrb[45].mxu1 }
0x2657   : > { %v3880_v60 = vsel %vm511_vm2, %v3877_v59, -inf }
0x2658   : > { %3881 = vmax.xlane.f32.xlu1 %v3880_v60 }
0x26e5   : > { %v3882_v62 = vpop.xlane.xlu1 %3881 }
0x26e6   : > { %v3883_v63 = vsub.f32 %v3877_v59, %v3882_v62  ;;  %v4150_v59 = vrot.slane %v7473_v42, %v7096_v22 }
0x26e8   : > { %v3884_v2 = vmul.f32 1.442695, %v3883_v63 }
0x26ea   : > { %6560 = vpow2.f32 %v3884_v2 }
0x26f4   : > { %v6561_v3 = vpop.eup %6560 }
0x26f5   : > { %v3886_v5 = vsel %vm511_vm2, %v6561_v3, 0.0 }
0x26f6   : > { %3887 = vadd.xlane.f32.xlu0 %v3886_v5 }
0x270c   : > { %3891 = vrot.lane.b32.xlu0 %v7477_v45, %s7896_s30 }
0x2724   : > { %v3797_v39 = vpop.f32.mrb[34].mxu0 }
0x2725   : > { %v3801_v7 = vadd.f32 %v3797_v39, %v3560_v33  ;;  %v6179_v8 = vpop.f32.mrb[35].mxu0  ;;  %v2948_v33 = vld [vmem:[#allocation7 + $0x60] sm:$0xff] }
0x2726   : > { %v6373_v37 = vpack.c.bf16 %v2949_v36, %v2948_v33 }
0x2783   : > { %v3888_v9 = vpop.xlane.xlu0 %3887 }
0x2784   : > { %6562 = vrcp.f32 %v3888_v9 }
0x2787   : > { %v3892_v12 = vpop.permute.xlu0 %3891 }
0x2788   : > { %6186 = vmatpush3.msra.mxu0 %v3892_v12 }
0x2789   : > { %6366 = vmatprep.subr.bf16.mxu0 %v6794_v10 }
0x278e   : > { %v6563_v14 = vpop.eup %6562 }
0x278f   : > { %v3890_v15 = vmul.f32 %v6563_v14, %v6561_v3 }
0x2791   : > { %6188 = vmatmul.mubr.msk.f32.vlgmr.msra.gmra.mrb[36].mxu0 %vm511_vm2, %v3890_v15 }
0x2792   : > { %6203 = vmatprep.mubr.msk.f32.mxu0 %vm6795_vm1, %v6796_v13 }
0x2864   : > { %v3963_v45 = vpop.f32.mrb[36].mxu0 }
0x2865   : > { %v6189_v16 = vpop.f32.mrb[37].mxu0  ;;  %6193 = vmatmul.mubr.msk.f32.vlgmr.msra.gmra.mrb[46].mxu1 %vm511_vm2, %v3963_v45 }
0x2866   : > { %6214 = vmatprep.mubr.msk.f32.mxu1 %vm6795_vm1, %v6796_v13  ;;  %6374 = vmatpush3.bf16.msra.mxu1 %v6373_v37 }
0x2867   : > { %6375 = vmatprep.subr.bf16.mxu1 %v6794_v10 }
0x286a   : > { %6377 = vmatpush3.bf16.msra.mxu1 %v6376_v46 }
0x286b   : > { %6222 = vmatprep.subr.mxu1 %v6796_v13 }
0x286d   : > { %6215 = vmatmul.mubr.msk.f32.vlgmr.msra.gmra.mrb[48].mxu1 %vm405_vm0, %v6597_v51 }
0x286e   : > { %6224 = vmatprep.mubr.msk.f32.mxu1 %vm6795_vm1, %v6796_v13 }
0x2938   : > { %v4036_v17 = vpop.f32.mrb[46].mxu1 }
0x2939   : > { %v4040_v0 = vadd.f32 %v4036_v17, %v3801_v7  ;;  %v6194_v18 = vpop.f32.mrb[47].mxu1 }
0x293b   : > { %v4045_v23 = vadd.f32 %v4044_v41, %v4040_v0 }
0x293d   : > { %v7584_v44 = vadd.f32 %v4045_v23, %v7456_v11  ;;  %v6367_v11 = vpack.c.bf16 %v2954_v40, %v2953_v38  ;;  %v5706_v40 = vld [vmem:[%s7856_s5 + $0x80] sm:$0xff] }
0x293f   : > { %v4047_v24 = vsel %vm405_vm0, %v7584_v44, 0.0  ;;  %6368 = vmatpush3.bf16.msra.mxu0 %v6367_v11 }
0x2940   : > { %4048 = vadd.xlane.f32.xlu1 %v4047_v24  ;;  %6369 = vmatprep.subr.bf16.mxu0 %v6794_v10  ;;  %v4217_v32 = vpop.f32.mrb[48].mxu1 }
0x2941   : > { %v7610_v60 = vadd.f32 %v4217_v32, %v4150_v59  ;;  %v6216_v62 = vpop.f32.mrb[49].mxu1 }
0x2943   : > { %6371 = vmatpush3.bf16.msra.mxu0 %v6370_v20 }
0x2944   : > { %6217 = vmatprep.subr.mxu0 %v6796_v13 }
0x29cd   : > { %v4049_v25 = vpop.xlane.xlu1 %4048 }
0x29ce   : > { %v4050_v26 = vmul.f32 0.03125, %v4049_v25 }
0x29d0   : > { %v4051_v28 = vsub.f32 %v7584_v44, %v4050_v26 }
0x29d2   : > { %v4052_v30 = vmul.f32 %v4051_v28, %v4051_v28 }
0x29d4   : > { %v4053_v31 = vsel %vm405_vm0, %v4052_v30, 0.0 }
0x29d5   : > { %4054 = vadd.xlane.f32.xlu1 %v4053_v31  ;;  %v5707_v31 = vld [vmem:[%s7856_s5 + $0x88] sm:$0xff] }
0x29e6   : > { %4387 = vrot.lane.b32.xlu1 %v7610_v60, %s6798_s13 }
0x2a62   : > { %v4055_v52 = vpop.xlane.xlu1 %4054 }
0x2a63   : > { %v4056_v50 = vmul.f32 0.03125, %v4055_v52 }
0x2a65   : > { %v4057_v53 = vadd.f32 1e-05, %v4056_v50 }
0x2a66   : > { %v4388_v5 = vpop.permute.xlu1 %4387 }
0x2a67   : > { %6564 = vrsqrt.f32 %v4057_v53 }
0x2a71   : > { %v6565_v54 = vpop.eup %6564 }
0x2a72   : > { %v4059_v55 = vmul.f32 %v6565_v54, %v4051_v28 }
0x2a74   : > { %v4064_v57 = vmul.f32 %v4063_v47, %v4059_v55 }
0x2a76   : > { %v7602_v58 = vadd.f32 %v4068_v56, %v4064_v57 }
0x2a78   : > { %6204 = vmatmul.mubr.msk.f32.vlgmr.msra.gmra.mrb[38].mxu0 %vm405_vm0, %v7602_v58 }
0x2a79   : > { %6219 = vmatprep.mubr.msk.f32.mxu0 %vm6795_vm1, %v6796_v13  ;;  %6218 = vmatpush3.xpose.msk.msra.mxu0 %vm511_vm2, %v7610_v60 }
0x2a7a   : > { %6227 = vmatprep.subr.mxu0 %v6796_v13 }
0x2b4b   : > { %v4143_v63 = vpop.f32.mrb[38].mxu0 }
0x2b4c   : > { %v7619_v2 = vadd.f32 %v4143_v63, %v4073_v61  ;;  %v6205_v3 = vpop.f32.mrb[39].mxu0 }
0x2b4e   : > { %v7622_v22 = vmul.f32 0.35355338, %v7619_v2 }
0x2b50   : > { %4385 = vrot.lane.b32.xlu0 %v7622_v22, %s6798_s13  ;;  %6220 = vmatmul.mubr.msk.f32.vlgmr.msra.gmra.mrb[40].mxu0 %vm511_vm2, %v7622_v22  ;;  %s6716_s13 = sshll.u32 %s6809_s16, 4  ;;  %s6717_s13 = int_to_ptr.vmem [resolvable:$false] %s6716_s13 }
0x2b51   : > { %6228 = vmatpush3.xpose.msk.msra.mxu0 %vm511_vm2, %v4388_v5  ;;  %6229 = vmatprep.mubr.msk.f32.mxu0 %vm6795_vm1, %v6796_v13 }
0x2b52   : > { %6237 = vmatprep.subr.mxu0 %v6796_v13 }
0x2bc2   : > { %v4386_v35 = vpop.permute.xlu0 %4385 }
0x2bc3   : > { %6230 = vmatmul.mubr.msk.f32.vlgmr.msra.gmra.mrb[42].mxu0 %vm511_vm2, %v4386_v35 }
0x2bc4   : > { %6239 = vmatprep.mubr.msk.f32.mxu0 %vm6795_vm1, %v6796_v13  ;;  %6238 = vmatpush3.msra.mxu0 %v5707_v31 }
0x2bc5   : > { %6247 = vmatprep.subr.mxu0 %v6796_v13 }
0x2c23   : > { %v4294_v6 = vpop.f32.mrb[40].mxu0 }
0x2c24   : > { %v6221_v39 = vpop.f32.mrb[41].mxu0  ;;  %v4298_v7 = vsel %vm511_vm2, %v4294_v6, -inf }
0x2c25   : > { %4299 = vmax.xlane.f32.xlu0 %v4298_v7  ;;  %v5757_v39 = vmul.f32 -1.442695, %v7610_v60 }
0x2c96   : > { %v4459_v8 = vpop.f32.mrb[42].mxu0 }
0x2c97   : > { %v6231_v9 = vpop.f32.mrb[43].mxu0  ;;  %v4463_v12 = vsel %vm511_vm2, %v4459_v8, -inf }
0x2c98   : > { %4464 = vmax.xlane.f32.xlu1 %v4463_v12 }
0x2ca9   : > { %4309 = vrot.lane.b32.xlu1 %v7610_v60, %s6797_s14 }
0x2cad   : > { %4698 = vrot.lane.b32.xlu1 %v7610_v60, %s7891_s12 }
0x2cb1   : > { %4696 = vrot.lane.b32.xlu1 %v7622_v22, %s7891_s12 }
0x2cb2   : > { %v4300_v14 = vpop.xlane.xlu0 %4299 }
0x2cb3   : > { %v4301_v15 = vsub.f32 %v4294_v6, %v4300_v14  ;;  %v5708_v6 = vld [vmem:[%s7856_s5 + $0x90] sm:$0xff] }
0x2cb5   : > { %v4302_v45 = vmul.f32 1.442695, %v4301_v15 }
0x2cb7   : > { %6566 = vpow2.f32 %v4302_v45 }
0x2cc1   : > { %v6567_v16 = vpop.eup %6566 }
0x2cc2   : > { %v4304_v41 = vsel %vm511_vm2, %v6567_v16, 0.0 }
0x2cc3   : > { %4305 = vadd.xlane.f32.xlu0 %v4304_v41 }
0x2d25   : > { %v4465_v17 = vpop.xlane.xlu1 %4464 }
0x2d26   : > { %v4466_v0 = vsub.f32 %v4459_v8, %v4465_v17 }
0x2d28   : > { %v4467_v18 = vmul.f32 1.442695, %v4466_v0 }
0x2d29   : > { %v4310_v23 = vpop.permute.xlu1 %4309 }
0x2d2a   : > { %6568 = vpow2.f32 %v4467_v18  ;;  %6223 = vmatpush3.msra.mxu1 %v4310_v23 }
0x2d2b   : > { %6232 = vmatprep.subr.mxu1 %v6796_v13 }
0x2d2d   : > { %v4699_v43 = vpop.permute.xlu1 %4698 }
0x2d31   : > { %v4697_v49 = vpop.permute.xlu1 %4696 }
0x2d34   : > { %v6569_v24 = vpop.eup %6568 }
0x2d35   : > { %v4469_v25 = vsel %vm511_vm2, %v6569_v24, 0.0 }
0x2d36   : > { %4470 = vadd.xlane.f32.xlu0 %v4469_v25  ;;  %v5709_v25 = vld [vmem:[%s7856_s5 + $0x98] sm:$0xff] }
0x2d4c   : > { %4474 = vrot.lane.b32.xlu0 %v7610_v60, %s6799_s20  ;;  %s6718_s20 = scalar_lea.vmem %s6717_s13, 256 }
0x2d50   : > { %v4306_v26 = vpop.xlane.xlu0 %4305 }
0x2d51   : > { %6570 = vrcp.f32 %v4306_v26 }
0x2d5b   : > { %v6571_v28 = vpop.eup %6570 }
0x2d5c   : > { %v4308_v30 = vmul.f32 %v6571_v28, %v6567_v16 }
0x2d5e   : > { %6225 = vmatmul.mubr.msk.f32.vlgmr.msra.gmra.mrb[50].mxu1 %vm511_vm2, %v4308_v30 }
0x2d5f   : > { %6234 = vmatprep.mubr.msk.f32.mxu1 %vm6795_vm1, %v6796_v13 }
0x2dc3   : > { %v4471_v33 = vpop.xlane.xlu0 %4470 }
0x2dc4   : > { %6572 = vrcp.f32 %v4471_v33 }
0x2dc7   : > { %v4475_v36 = vpop.permute.xlu0 %4474 }
0x2dc8   : > { %6233 = vmatpush3.msra.mxu1 %v4475_v36 }
0x2dc9   : > { %6242 = vmatprep.subr.mxu1 %v6796_v13 }
0x2dce   : > { %v6573_v37 = vpop.eup %6572 }
0x2dcf   : > { %v4473_v38 = vmul.f32 %v6573_v37, %v6569_v24 }
0x2dd1   : > { %6235 = vmatmul.mubr.msk.f32.vlgmr.msra.gmra.mrb[52].mxu1 %vm511_vm2, %v4473_v38  ;;  %v5710_v38 = vld [vmem:[%s7856_s5 + $0xa0] sm:$0xff] }
0x2dd2   : > { %6243 = vmatpush3.msra.mxu1 %v5706_v40  ;;  %6244 = vmatprep.mubr.msk.f32.mxu1 %vm6795_vm1, %v6796_v13  ;;  %v5711_v40 = vld [vmem:[%s7856_s5 + $0xa8] sm:$0xff] }
0x2dd3   : > { %6252 = vmatprep.subr.mxu1 %v6796_v13 }
0x2e31   : > { %v4381_v11 = vpop.f32.mrb[50].mxu1 }
0x2e32   : > { %v6226_v29 = vpop.f32.mrb[51].mxu1  ;;  %6245 = vmatmul.mubr.msk.f32.vlgmr.msra.gmra.mrb[54].mxu1 %vm511_vm2, %v4381_v11  ;;  %v6379_v11 = vpack.c.bf16 %v5711_v40, %v5710_v38  ;;  %v2961_v38 = vld [vmem:[#allocation8 + $0x78] sm:$0xff] }
0x2e33   : > { %6254 = vmatprep.mubr.msk.f32.mxu1 %vm6795_vm1, %v6796_v13  ;;  %v5712_v29 = vld [vmem:[%s7856_s5 + $0xb0] sm:$0xff] }
0x2ea4   : > { %v4546_v46 = vpop.f32.mrb[52].mxu1 }
0x2ea5   : > { %v6236_v21 = vpop.f32.mrb[53].mxu1  ;;  %6240 = vmatmul.mubr.msk.f32.vlgmr.msra.gmra.mrb[44].mxu0 %vm511_vm2, %v4546_v46 }
0x2ea6   : > { %6248 = vmatpush3.xpose.msk.msra.mxu0 %vm511_vm2, %v4699_v43  ;;  %6249 = vmatprep.mubr.msk.f32.mxu0 %vm6795_vm1, %v6796_v13  ;;  %v5713_v43 = vld [vmem:[%s7856_s5 + $0xb8] sm:$0xff]  ;;  %v5177_v21 = vrot.slane %v7473_v42, %v7377_v27 }
0x2ea7   : > { %6257 = vmatprep.subr.mxu0 %v6796_v13  ;;  %v6382_v46 = vpack.c.bf16 %v5713_v43, %v5712_v29 }
0x2ea9   : > { %6250 = vmatmul.mubr.msk.f32.vlgmr.msra.gmra.mrb[46].mxu0 %vm511_vm2, %v4697_v49 }
0x2eaa   : > { %6259 = vmatprep.mubr.msk.f32.mxu0 %vm6795_vm1, %v6796_v13  ;;  %6258 = vmatpush3.msra.mxu0 %v5708_v6 }
0x2eab   : > { %6267 = vmatprep.subr.mxu0 %v6796_v13 }
0x2f05   : > { %v4692_v20 = vpop.f32.mrb[54].mxu1 }
0x2f06   : > { %v6246_v51 = vpop.f32.mrb[55].mxu1 }
0x2f78   : > { %v4619_v52 = vpop.f32.mrb[44].mxu0 }
0x2f79   : > { %v7674_v50 = vadd.f32 %v4692_v20, %v4619_v52  ;;  %v6241_v53 = vpop.f32.mrb[45].mxu0 }
0x2f7c   : > { %v4770_v47 = vpop.f32.mrb[46].mxu0 }
0x2f7d   : > { %v6251_v54 = vpop.f32.mrb[47].mxu0  ;;  %v4774_v55 = vsel %vm511_vm2, %v4770_v47, -inf }
0x2f7e   : > { %4775 = vmax.xlane.f32.xlu0 %v4774_v55 }
0x2f94   : > { %4785 = vrot.lane.b32.xlu0 %v7610_v60, %s7890_s15  ;;  %s5763_s15 = sshll.u32 %s6871_s28, 7  ;;  %s5515_s28 = scalar_lea.sflag [#allocation4], %s7049_s8 }
0x2f95   : > { %s7806_s11 = scalar_lea.hbm %s7858_s7, %s5763_s15 }
0x2f98   : > { %4935 = vrot.lane.b32.xlu0 %v7622_v22, %s7894_s21 }
0x300b   : > { %v4776_v56 = vpop.xlane.xlu0 %4775 }
0x300c   : > { %v4777_v57 = vsub.f32 %v4770_v47, %v4776_v56 }
0x300e   : > { %v4778_v59 = vmul.f32 1.442695, %v4777_v57 }
0x300f   : > { %v4786_v32 = vpop.permute.xlu0 %4785 }
0x3010   : > { %6574 = vpow2.f32 %v4778_v59  ;;  %6253 = vmatpush3.msra.mxu1 %v4786_v32 }
0x3011   : > { %6262 = vmatprep.subr.mxu1 %v6796_v13 }
0x3013   : > { %v4936_v35 = vpop.permute.xlu0 %4935 }
0x301a   : > { %v6575_v62 = vpop.eup %6574 }
0x301b   : > { %v4780_v61 = vsel %vm511_vm2, %v6575_v62, 0.0 }
0x301c   : > { %4781 = vadd.xlane.f32.xlu1 %v4780_v61 }
0x302d   : > { %4937 = vrot.lane.b32.xlu1 %v7610_v60, %s7894_s21  ;;  %s7897_s21 = sshll.u32 %s7049_s8, 3 }
0x302e   : > { %s350_s10 = scalar_lea.vmem [#allocation10], %s7897_s21 }
0x302f   : > { %s5528_s30 = sshll.u32 %s350_s10, 4  ;;  %s7808_s30 = int_to_ptr.vmem [resolvable:$true] %s5528_s30 }
0x3030   : > { %s6712_s23 = scalar_lea.vmem %s7808_s30, 128  ;;  %p6719_p1 = scmp.lt.s32.totalorder %s7808_s30, %s6717_s13 }
0x3031   : > { %p6713_p3 = scmp.ne.s32.totalorder %s7808_s30, %s6712_s23  ;;  %p6720_p2 = scmp.lt.s32.totalorder %s6718_s20, %s6712_s23 }
0x3033   : > { %p6714_p7 = pnand %p6713_p3, %p7004_p5  ;;  %p6721_p4 = por %p6720_p2, %p6719_p1 }
0x3035   : > { %p6715_p12 = pneg %p6714_p7 }
0x3037   : > { %p6722_p0 = pnand %p6721_p4, %p6715_p12 }
0x30a9   : > { %v4782_v63 = vpop.xlane.xlu1 %4781 }
0x30aa   : > { %6576 = vrcp.f32 %v4782_v63 }
0x30ab   : > { %6578 = vpow2.f32 %v5757_v39 }
0x30ad   : > { %v4938_v22 = vpop.permute.xlu1 %4937 }
0x30b4   : > { %v6577_v3 = vpop.eup %6576 }
0x30b5   : > { %v4784_v5 = vmul.f32 %v6577_v3, %v6575_v62  ;;  %v6579_v8 = vpop.eup %6578 }
0x30b6   : > { %v5182_v14 = vadd.f32 1.0, %v6579_v8 }
0x30b7   : > { %6255 = vmatmul.mubr.msk.f32.vlgmr.msra.gmra.mrb[56].mxu1 %vm511_vm2, %v4784_v5 }
0x30b8   : > { %6263 = vmatpush3.xpose.msk.msra.mxu1 %vm511_vm2, %v4938_v22  ;;  %6264 = vmatprep.mubr.msk.f32.mxu1 %vm6795_vm1, %v6796_v13  ;;  %6580 = vrcp.f32 %v5182_v14 }
0x30b9   : > { %6272 = vmatprep.subr.mxu1 %v6796_v13 }
0x30bb   : > { %6265 = vmatmul.mubr.msk.f32.vlgmr.msra.gmra.mrb[58].mxu1 %vm511_vm2, %v4936_v35 }
0x30bc   : > { %6274 = vmatprep.mubr.msk.f32.mxu1 %vm6795_vm1, %v6796_v13  ;;  %6273 = vmatpush3.msra.mxu1 %v5709_v25 }
0x30bd   : > { %6384 = vmatprep.subr.bf16.mxu1 %v6794_v10 }
0x30c2   : > { %v6581_v16 = vpop.eup %6580 }
0x30c3   : > { %v5185_v41 = vadd.f32 1.0, %v6581_v16 }
0x318a   : > { %v4857_v7 = vpop.f32.mrb[56].mxu1 }
0x318b   : > { %v6256_v9 = vpop.f32.mrb[57].mxu1  ;;  %6260 = vmatmul.mubr.msk.f32.vlgmr.msra.gmra.mrb[48].mxu0 %vm511_vm2, %v4857_v7 }
0x318c   : > { %6269 = vmatprep.mubr.msk.f32.mxu0 %vm6795_vm1, %v6796_v13 }
0x318e   : > { %v5009_v12 = vpop.f32.mrb[58].mxu1 }
0x318f   : > { %v6266_v15 = vpop.f32.mrb[59].mxu1  ;;  %v5013_v45 = vsel %vm511_vm2, %v5009_v12, -inf }
0x3190   : > { %5014 = vmax.xlane.f32.xlu1 %v5013_v45  ;;  %v5318_v15 = vrot.slane %v7464_v4, %v2742_v1 }
0x31a1   : > { %5187 = vrot.lane.b32.xlu1 %v5185_v41, %s6801_s29 }
0x321d   : > { %v5015_v17 = vpop.xlane.xlu1 %5014 }
0x321e   : > { %v5016_v0 = vsub.f32 %v5009_v12, %v5015_v17 }
0x3220   : > { %v5017_v18 = vmul.f32 1.442695, %v5016_v0 }
0x3222   : > { %6582 = vpow2.f32 %v5017_v18 }
0x322c   : > { %v6583_v23 = vpop.eup %6582 }
0x322d   : > { %v5019_v24 = vsel %vm511_vm2, %v6583_v23, 0.0 }
0x322e   : > { %5020 = vadd.xlane.f32.xlu0 %v5019_v24 }
0x3244   : > { %5024 = vrot.lane.b32.xlu0 %v7610_v60, %s7895_s9 }
0x3248   : > { %5275 = vrot.lane.b32.xlu0 %v7602_v58, %s6808_s17 }
0x325e   : > { %v4930_v26 = vpop.f32.mrb[48].mxu0 }
0x325f   : > { %v4934_v28 = vadd.f32 %v4930_v26, %v7674_v50  ;;  %v6261_v30 = vpop.f32.mrb[49].mxu0  ;;  %v5188_v50 = vpop.permute.xlu1 %5187 }
0x32bb   : > { %v5021_v31 = vpop.xlane.xlu0 %5020 }
0x32bc   : > { %6584 = vrcp.f32 %v5021_v31 }
0x32bf   : > { %v5025_v33 = vpop.permute.xlu0 %5024 }
0x32c0   : > { %6268 = vmatpush3.msra.mxu0 %v5025_v33 }
0x32c1   : > { %6378 = vmatprep.subr.bf16.mxu0 %v6794_v10 }
0x32c3   : > { %v5276_v63 = vpop.permute.xlu0 %5275 }
0x32c6   : > { %v6585_v60 = vpop.eup %6584 }
0x32c7   : > { %v5023_v36 = vmul.f32 %v6585_v60, %v6583_v23 }
0x32c9   : > { %6270 = vmatmul.mubr.msk.f32.vlgmr.msra.gmra.mrb[50].mxu0 %vm511_vm2, %v5023_v36  ;;  %v2958_v36 = vld [vmem:[#allocation8 + $0x60] sm:$0xff] }
0x32ca   : > { %6285 = vmatprep.mubr.msk.f32.mxu0 %vm6795_vm1, %v6796_v13  ;;  %6380 = vmatpush3.bf16.msra.mxu0 %v6379_v11 }
0x32cb   : > { %6381 = vmatprep.subr.bf16.mxu0 %v6794_v10 }
0x32ce   : > { %6383 = vmatpush3.bf16.msra.mxu0 %v6382_v46  ;;  %v5345_v46 = vrot.slane %v7464_v4, %v7377_v27  ;;  %v5716_v27 = vld [vmem:[%s7857_s6 + $0x50] sm:$0xff] }
0x32cf   : > { %6390 = vmatprep.subr.bf16.mxu0 %v6794_v10 }
0x339c   : > { %v5096_v58 = vpop.f32.mrb[50].mxu0 }
0x339d   : > { %v6271_v37 = vpop.f32.mrb[51].mxu0  ;;  %6275 = vmatmul.mubr.msk.f32.vlgmr.msra.gmra.mrb[60].mxu1 %vm511_vm2, %v5096_v58  ;;  %v2959_v58 = vld [vmem:[#allocation8 + $0x68] sm:$0xff] }
0x339e   : > { %6296 = vmatprep.mubr.msk.f32.mxu1 %vm6795_vm1, %v6796_v13  ;;  %v6385_v37 = vpack.c.bf16 %v2959_v58, %v2958_v36 }
0x33a0   : > { %6386 = vmatpush3.bf16.msra.mxu1 %v6385_v37 }
0x33a1   : > { %6387 = vmatprep.subr.bf16.mxu1 %v6794_v10 }
0x3470   : > { %v5169_v49 = vpop.f32.mrb[60].mxu1 }
0x3471   : > { %v5173_v20 = vadd.f32 %v5169_v49, %v4934_v28  ;;  %v6276_v51 = vpop.f32.mrb[61].mxu1 }
0x3473   : > { %v5178_v52 = vadd.f32 %v5177_v21, %v5173_v20  ;;  %v5350_v20 = vrot.slane %v7464_v4, %v7413_v34 }
0x3475   : > { %v5190_v53 = vmul.f32 %v5188_v50, %v5178_v52  ;;  %v5714_v50 = vld [vmem:[%s7857_s6 + $0x40] sm:$0xff] }
0x3477   : > { %6286 = vmatmul.mubr.msk.f32.vlgmr.msra.gmra.mrb[52].mxu0 %vm405_vm0, %v5190_v53 }
0x3478   : > { %6315 = vmatprep.mubr.msk.f32.mxu0 %vm6795_vm1, %v6796_v13 }
0x354a   : > { %v5260_v47 = vpop.f32.mrb[52].mxu0 }
0x354b   : > { %5265 = vrot.lane.b32.xlu1 %v5260_v47, %s6808_s17  ;;  %v6287_v54 = vpop.f32.mrb[53].mxu0 }
0x354f   : > { %5280 = vrot.lane.b32.xlu1 %v5190_v53, %s6808_s17  ;;  %v5715_v53 = vld [vmem:[%s7857_s6 + $0x48] sm:$0xff] }
0x3550   : > { %v6391_v47 = vpack.c.bf16 %v5715_v53, %v5714_v50 }
0x3552   : > { %6392 = vmatpush3.bf16.msra.mxu0 %v6391_v47 }
0x3553   : > { %6393 = vmatprep.subr.bf16.mxu0 %v6794_v10 }
0x35bd   : > { %v5266_v55 = vpop.permute.xlu1 %5265 }
0x35be   : > { %v5268_v56 = vadd.f32 %v5266_v55, %v7619_v2  ;;  %v5309_v2 = vrot.slane %v7464_v4, %v7390_v48  ;;  %v5717_v4 = vld [vmem:[%s7857_s6 + $0x58] sm:$0xff]  ;;  %v5718_v55 = vld [vmem:[%s7857_s6 + $0x60] sm:$0xff] }
0x35bf   : > { %v6394_v54 = vpack.c.bf16 %v5717_v4, %v5716_v27 }
0x35c0   : > { %v5759_v57 = vmul.f32 -1.442695, %v5268_v56  ;;  %v5719_v56 = vld [vmem:[%s7857_s6 + $0x68] sm:$0xff] }
0x35c1   : > { %v5281_v3 = vpop.permute.xlu1 %5280  ;;  %6395 = vmatpush3.bf16.msra.mxu0 %v6394_v54 }
0x35c2   : > { %6586 = vpow2.f32 %v5759_v57  ;;  %6396 = vmatprep.subr.bf16.mxu0 %v6794_v10  ;;  %v6397_v57 = vpack.c.bf16 %v5719_v56, %v5718_v55 }
0x35c5   : > { %6398 = vmatpush3.bf16.msra.mxu0 %v6397_v57 }
0x35c6   : > { %6399 = vmatprep.subr.bf16.mxu0 %v6794_v10 }
0x35cc   : > { %v6587_v59 = vpop.eup %6586 }
0x35cd   : > { %v5272_v32 = vadd.f32 1.0, %v6587_v59  ;;  %v5720_v59 = vld [vmem:[%s7857_s6 + $0x70] sm:$0xff] }
0x35cf   : > { %6588 = vrcp.f32 %v5272_v32  ;;  %v5721_v32 = vld [vmem:[%s7857_s6 + $0x78] sm:$0xff] }
0x35d9   : > { %v6589_v62 = vpop.eup %6588 }
0x35da   : > { %v5279_v61 = vsub.f32 1.0, %v6589_v62  ;;  %v5278_v5 = vmul.f32 %v6589_v62, %v5276_v63  ;;  %v6400_v62 = vpack.c.bf16 %v5721_v32, %v5720_v59 }
0x35dc   : > { %v5283_v13 = vmul.f32 %v5281_v3, %v5279_v61  ;;  %6401 = vmatpush3.bf16.msra.mxu0 %v6400_v62  ;;  %v5355_v61 = vrot.slane %v7473_v42, %v7413_v34 }
0x35de   : > { %v5284_v22 = vadd.f32 %v5283_v13, %v5278_v5 }
0x35e0   : > { %5286 = vrot.lane.b32.xlu0 %v5284_v22, %s6797_s14 }
0x3652   : > { %v5287_v35 = vpop.permute.xlu0 %5286 }
0x3653   : > { %v5289_v6 = vsel %vm405_vm0, %v5287_v35, 0.0 }
0x3654   : > { %5290 = vadd.xlane.f32.xlu1 %v5289_v6 }
0x3665   : > { %5311 = vrot.lane.b32.xlu1 %v5309_v2, %s6808_s17  ;;  %v5511_v2 = vrot.slane %v7473_v42, %v7390_v48 }
0x36e1   : > { %v5291_v39 = vpop.xlane.xlu1 %5290 }
0x36e2   : > { %v5292_v7 = vmul.f32 0.03125, %v5291_v39 }
0x36e4   : > { %v5293_v8 = vsub.f32 %v5284_v22, %v5292_v7 }
0x36e5   : > { %v5312_v0 = vpop.permute.xlu1 %5311 }
0x36e6   : > { %v5294_v9 = vmul.f32 %v5293_v8, %v5293_v8 }
0x36e8   : > { %5296 = vrot.lane.b32.xlu0 %v5294_v9, %s6797_s14 }
0x375a   : > { %v5297_v12 = vpop.permute.xlu0 %5296 }
0x375b   : > { %v5299_v14 = vsel %vm405_vm0, %v5297_v12, 0.0 }
0x375c   : > { %5300 = vadd.xlane.f32.xlu0 %v5299_v14 }
0x3772   : > { %5320 = vrot.lane.b32.xlu0 %v5318_v15, %s6808_s17 }
0x37e9   : > { %v5301_v45 = vpop.xlane.xlu0 %5300 }
0x37ea   : > { %v5302_v16 = vmul.f32 0.03125, %v5301_v45 }
0x37ec   : > { %v5303_v41 = vadd.f32 1e-05, %v5302_v16 }
0x37ed   : > { %v5321_v23 = vpop.permute.xlu0 %5320 }
0x37ee   : > { %6590 = vrsqrt.f32 %v5303_v41 }
0x37f8   : > { %v6591_v17 = vpop.eup %6590 }
0x37f9   : > { %v5305_v18 = vmul.f32 %v6591_v17, %v5293_v8 }
0x37fb   : > { %v5314_v24 = vmul.f32 %v5312_v0, %v5305_v18 }
0x37fd   : > { %v5323_v25 = vadd.f32 %v5321_v23, %v5314_v24 }
0x37ff   : > { %5325 = vrot.lane.b32.xlu1 %v5323_v25, %s6797_s14 }
0x3871   : > { %v5326_v26 = vpop.permute.xlu1 %5325 }
0x3872   : > { %v7755_v28 = vadd.f32 %v5326_v26, %v7584_v44  ;;  %v2960_v44 = vld [vmem:[#allocation8 + $0x70] sm:$0xff] }
0x3873   : > { %v6388_v40 = vpack.c.bf16 %v2961_v38, %v2960_v44 }
0x3874   : > { %v5329_v19 = vsel %vm405_vm0, %v7755_v28, 0.0 }
0x3875   : > { %5330 = vadd.xlane.f32.xlu1 %v5329_v19  ;;  %6389 = vmatpush3.bf16.msra.mxu1 %v6388_v40 }
0x3902   : > { %v5331_v1 = vpop.xlane.xlu1 %5330 }
0x3903   : > { %v5332_v30 = vmul.f32 0.03125, %v5331_v1 }
0x3905   : > { %v5333_v31 = vsub.f32 %v7755_v28, %v5332_v30 }
0x3907   : > { %v5334_v33 = vmul.f32 %v5333_v31, %v5333_v31 }
0x3909   : > { %v5335_v60 = vsel %vm405_vm0, %v5334_v33, 0.0 }
0x390a   : > { %5336 = vadd.xlane.f32.xlu0 %v5335_v60 }
0x3997   : > { %v5337_v11 = vpop.xlane.xlu0 %5336 }
0x3998   : > { %v5338_v29 = vmul.f32 0.03125, %v5337_v11 }
0x399a   : > { %v5339_v43 = vadd.f32 1e-05, %v5338_v29 }
0x399c   : > { %6592 = vrsqrt.f32 %v5339_v43 }
0x39a6   : > { %v6593_v21 = vpop.eup %6592 }
0x39a7   : > { %v5341_v49 = vmul.f32 %v6593_v21, %v5333_v31 }
0x39a9   : > { %v5346_v51 = vmul.f32 %v5345_v46, %v5341_v49 }
0x39ab   : > { %v5351_v52 = vadd.f32 %v5350_v20, %v5346_v51 }
0x39ad   : > { %6297 = vmatmul.mubr.msk.f32.vlgmr.msra.gmra.mrb[62].mxu1 %vm405_vm0, %v5351_v52 }
0x3a80   : > { %v5425_v63 = vpop.f32.mrb[62].mxu1 }
0x3a81   : > { %v5426_v3 = vadd.f32 %v5425_v63, %v5355_v61  ;;  %v6298_v5 = vpop.f32.mrb[63].mxu1 }
0x3a83   : > { %v5430_v13 = vmul.f32 0.70710677, %v5426_v3  ;;  %v5429_v22 = vmul.f32 0.5, %v5426_v3 }
0x3a85   : > { %6594 = verf.f32 %v5430_v13 }
0x3a8f   : > { %v6595_v10 = vpop.eup %6594 }
0x3a90   : > { %v5432_v35 = vadd.f32 1.0, %v6595_v10 }
0x3a92   : > { %v5433_v6 = vmul.f32 %v5432_v35, %v5429_v22 }
0x3a94   : > { %6316 = vmatmul.mubr.msk.f32.vlgmr.msra.gmra.mrb[54].mxu0 %vm2859_vm4, %v5433_v6 }
0x3b67   : > { %v5503_v39 = vpop.f32.mrb[54].mxu0 }
0x3b68   : > { %v5507_v34 = vadd.f32 %v5503_v39, %v7755_v28  ;;  %v6317_v7 = vpop.f32.mrb[55].mxu0 }
0x3b6a   : > { %v5512_v8 = vadd.f32 %v5511_v2, %v5507_v34 }
0x3b6c   : > { %5513 = vst.msk [vmem:[%s350_s10] sm:$0xff] %vm405_vm0, %v5512_v8 }
0x3b6d   : > { %6725 = shalt.err (!%p6722_p0)
}
0x3b6e   : > { %s6726_s8 = scalar_lea.hbm %s7806_s11, 128  ;;  %s6730_s17 = scalar_lea.hbm %s7858_s7, 256 }
0x3b6f   : > { %p6727_p9 = scmp.ne.s32.totalorder %s7806_s11, %s6726_s8  ;;  %p6731_p13 = scmp.lt.u32.totalorder %s7806_s11, %s7858_s7 }
0x3b70   : > { %p6732_p6 = scmp.lt.u32.totalorder %s6730_s17, %s6726_s8  ;;  %p6734_p3 = scmp.lt.u32.totalorder %s6726_s8, %s7806_s11 }
0x3b71   : > { %p6728_p11 = pnand %p6727_p9, %p7004_p5 }
0x3b72   : > { %p6733_p10 = por %p6732_p6, %p6731_p13 }
0x3b73   : > { %p6729_p8 = pneg %p6728_p11 }
0x3b74   : > { %p6735_p7 = por %p6734_p3, %p6733_p10 }
0x3b76   : > { %p6736_p12 = pnand %p6735_p7, %p6729_p8 }
0x3b78   : > { %6739 = shalt.err (!%p6736_p12)
}
0x3b79   : > { %6416 = dma.vmem_to_hbm [thread:$0]  (%p7004_p5), %s7808_s30, 128, %s7806_s11, %s5515_s28  }
0x3b7a PF: > { %s7898_s10 = sld [smem:[#allocation15_spill]]  ;;  %s5540_s29 = sand.u32 1, %s6774_s24  }
0x3b7b   : > { %p7900_p2 = scmp.ge.s32.totalorder %s6786_s27, 2  ;;  %s5541_s9 = scalar_lea.sflag [#allocation4], %s5540_s29 }
0x3b80   : > { %p7899_p1 = scmp.ne.s32.totalorder %s7898_s10, 0 }
0x3b82   : > { %p6433_p4 = pnand %p7900_p2, %p7899_p1 }
0x3b84   : > { %6769 = dma.done.wait (!%p6433_p4), %s5541_s9, 128  }
0x3b85   : > { %6771 = vsyncadd (!%p6433_p4), %s5541_s9, 4294967168  ;;  %p22_p0 = scmp.ge.s32.totalorder %s6990_s22, 4   ;;  %s7901_s24 = smov %s6778_s25 }
0x3b86   : > { %s7902_s25 = smov %s6782_s26  ;;  %s7903_s26 = smov %s7000_s18 }
0x3b87   : > { %s7904_s27 = smov %s6990_s22  ;;  %24 = sbr.rel (!%p22_p0) target bundleno = 7 (0x7), region = 121 }
0x3b8e   :  { %5546 = vsyncpa [#allocation3], 1 }
0x3b8f   :  { %5548 = vsyncpa [#allocation3 + $0x1], 1 }
0x3b90   :  { %5549 = vsyncpa [#allocation6], 1 }
0x3b91   :  { %5550 = vsyncpa [#allocation9], 1 }
0x3b92   :  { %5551 = vsyncpa [#allocation4], 1 }
0x3b93   :  { %5553 = vsyncpa [#allocation4 + $0x1], 1 }

</bundles_post_ra>
